<compile_context>
chip_gen: v7x
topology: tpu7x:2x2x1
jax: 0.10.0
libtpu: 0.0.40
codegen_flags: <defaults>
</compile_context>

<pallas_src>
import jax
import jax.numpy as jnp
import numpy as np
from jax import lax
from jax.experimental import pallas as pl
from jax.experimental.pallas import tpu as pltpu

LANE = 128


def _round_up(x, m):
    return (x + m - 1) // m * m


def _pick_row_tile(h, target):
    """Largest divisor of h that is <= target (never collapses to h unless needed)."""
    th = max(1, min(target, h))
    while h % th:
        th -= 1
    return th


# ------------------------------ kernel --------------------------------------

def _bottleneck_kernel(x_ref, top_ref, bot_ref, w1_ref, b1_ref, w2_ref, b2_ref,
                       w3_ref, b3_ref, o_ref, patches_ref):
    """One (batch, row-tile) grid point.

    x_ref    : (1, TH, W, Cp)   bf16  input row tile (also residual source)
    top_ref  : (1, 1,  W, Cp)   bf16  image row above the tile (clamped at border)
    bot_ref  : (1, 1,  W, Cp)   bf16  image row below the tile (clamped at border)
    w1_ref   : (Cp, Cm)         bf16  1x1 conv, bn1 scale folded in
    w2_ref   : (9*Cm, Cm)       bf16  3x3 conv as im2col matrix, bn2 scale folded
    w3_ref   : (Cm, Co)         bf16  1x1 conv, bn3 scale folded in
    b*_ref   : (1, C)           f32   bn shifts
    o_ref    : (1, TH, W, Co)         output tile
    patches_ref : (TH*W, 9*Cm)  bf16  VMEM scratch for the im2col patches
    """
    TH, W, Cp = x_ref.shape[1], x_ref.shape[2], x_ref.shape[3]
    Cm = w1_ref.shape[1]
    Co = w3_ref.shape[1]
    n_mid = TH * W

    r = pl.program_id(1)
    n_rt = pl.num_programs(1)

    x2d = x_ref[0].reshape(n_mid, Cp)                      # bf16 residual source
    top = top_ref[0, 0]                                    # (W, Cp)
    bot = bot_ref[0, 0]                                    # (W, Cp)
    zpix = jnp.zeros((1, Cp), x2d.dtype)
    # Extended slab: one dummy pixel at each end so every 3x3 tap is a static
    # slice y1[off:off+n_mid] with off = dy*W + dx in [0, 2W+2] (no rolls).
    slab = jnp.concatenate([zpix, top, x2d, bot, zpix], axis=0)   # (n_mid+2W+2, Cp)

    # ---- conv1 (1x1, bn1 scale folded) + shift + ReLU, cast to bf16 once ----
    y1 = jnp.dot(slab, w1_ref[...], preferred_element_type=jnp.float32)
    y1 = jnp.maximum(y1 + b1_ref[...], 0.0).astype(jnp.bfloat16)

    # ---- conv2 (3x3, pad=1): im2col taps written straight into VMEM scratch --
    # Horizontal (dx) border masks: required for every tile; lane-broadcast of
    # a tiny (n_mid, 1) bf16 multiplier.
    col = lax.broadcasted_iota(jnp.int32, (n_mid, 1), 0) % W
    keep_left = (col > 0).astype(jnp.bfloat16)       # dx==0 taps read column c-1
    keep_right = (col < W - 1).astype(jnp.bfloat16)  # dx==2 taps read column c+1

    for dy in range(3):
        for dx in range(3):
            off = dy * W + dx                        # offset into extended slab
            t = y1[off:off + n_mid]
            if dx == 0:
                t = t * keep_left
            elif dx == 2:
                t = t * keep_right
            tap = dy * 3 + dx
            patches_ref[:, tap * Cm:(tap + 1) * Cm] = t

    # Vertical zero padding: only the two image-border row tiles pay for it.
    # (Whatever the clamped halo rows contained, these overwrites make the
    #  dy==0 / dy==2 taps of the border output rows exactly the conv padding.)
    @pl.when(r == 0)
    def _():
        patches_ref[0:W, 0:3 * Cm] = jnp.zeros((W, 3 * Cm), jnp.bfloat16)

    @pl.when(r == n_rt - 1)
    def _():
        patches_ref[n_mid - W:n_mid, 6 * Cm:9 * Cm] = jnp.zeros(
            (W, 3 * Cm), jnp.bfloat16)

    y2 = jnp.dot(patches_ref[...], w2_ref[...], preferred_element_type=jnp.float32)
    y2 = jnp.maximum(y2 + b2_ref[...], 0.0).astype(jnp.bfloat16)

    # ---- conv3 (1x1, bn3 scale folded) + shift + residual + ReLU -----------
    y3 = jnp.dot(y2, w3_ref[...], preferred_element_type=jnp.float32)
    y3 = y3 + b3_ref[...]
    out = jnp.maximum(y3 + x2d.astype(jnp.float32), 0.0)   # Cp == Co (identity)
    o_ref[0] = out.reshape(TH, W, Co).astype(o_ref.dtype)


# --------------------------- parameter packing -------------------------------

def pack_params(params, lane=LANE):
    """Fold BN scales into conv weights, pad channels to lane multiples,
    cast MXU operands to bf16 (shifts stay f32)."""
    (w1, s1, b1, w2, s2, b2, w3, s3, b3) = params
    Cin, Cmid = w1.shape
    Cout = w3.shape[1]
    Cin_p = _round_up(Cin, lane)
    Cmid_p = _round_up(Cmid, lane)
    Cout_p = _round_up(Cout, lane)

    w1f = jnp.pad(w1 * s1, ((0, Cin_p - Cin), (0, Cmid_p - Cmid)))
    w2f = jnp.pad(w2 * s2[:, None, :],
                  ((0, 0), (0, Cmid_p - Cmid), (0, Cmid_p - Cmid)))
    w2f = w2f.reshape(9 * Cmid_p, Cmid_p)            # tap-major im2col weight
    w3f = jnp.pad(w3 * s3, ((0, Cmid_p - Cmid), (0, Cout_p - Cout)))

    b1p = jnp.pad(b1, ((0, 0), (0, Cmid_p - Cmid)))
    b2p = jnp.pad(b2, ((0, 0), (0, Cmid_p - Cmid)))
    b3p = jnp.pad(b3, ((0, 0), (0, Cout_p - Cout)))

    return (w1f.astype(jnp.bfloat16), b1p,
            w2f.astype(jnp.bfloat16), b2p,
            w3f.astype(jnp.bfloat16), b3p)


# ------------------------------ wrappers -------------------------------------

def intermediate_block_nhwc(x_nhwc, params, *, row_tile=32,
                            out_dtype=jnp.float32, return_padded=False):
    """x_nhwc: (N, H, W, Cin).  Returns (N, H, W, Cout) (or channel-padded if
    return_padded=True, for chaining blocks without the unpad pass)."""
    N, H, W, Cin = x_nhwc.shape
    Cout = params[6].shape[1]
    assert Cout == Cin, "identity residual requires in_channels == 4*inter_channels"

    w1k, b1k, w2k, b2k, w3k, b3k = pack_params(params)
    Cin_p, Cmid_p = w1k.shape
    Cout_p = w3k.shape[1]

    TH = _pick_row_tile(H, row_tile)
    n_rt = H // TH
    n_mid = TH * W

    # bf16 activations in HBM (halves the dominant DMA traffic); channel-pad to
    # a lane multiple so every load/store is lane-dense.
    x_p = x_nhwc.astype(jnp.bfloat16)
    if Cin_p != Cin:
        x_p = jnp.pad(x_p, ((0, 0), (0, 0), (0, 0), (0, Cin_p - Cin)))

    flops = 2 * N * H * W * (Cin_p * Cmid_p + 9 * Cmid_p * Cmid_p
                             + Cmid_p * Cout_p)
    out_isz = jnp.dtype(out_dtype).itemsize
    bytes_accessed = (2 * x_p.size
                      + out_isz * N * H * W * Cout_p
                      + 2 * (w1k.size + w2k.size + w3k.size)
                      + 4 * (b1k.size + b2k.size + b3k.size))

    out_p = pl.pallas_call(
        _bottleneck_kernel,
        out_shape=jax.ShapeDtypeStruct((N, H, W, Cout_p), out_dtype),
        grid=(N, n_rt),
        in_specs=[
            pl.BlockSpec((1, TH, W, Cin_p), lambda b, r: (b, r, 0, 0)),
            # Halo rows fetched straight from x via clamped index maps -- no
            # wrapper-side halo array / extra HBM passes.  At the image border
            # the clamped row is never read at an unmasked patch position.
            pl.BlockSpec((1, 1, W, Cin_p),
                         lambda b, r: (b, jnp.maximum(r * TH - 1, 0), 0, 0)),
            pl.BlockSpec((1, 1, W, Cin_p),
                         lambda b, r: (b, jnp.minimum(r * TH + TH, H - 1), 0, 0)),
            pl.BlockSpec((Cin_p, Cmid_p), lambda b, r: (0, 0)),
            pl.BlockSpec((1, Cmid_p), lambda b, r: (0, 0)),
            pl.BlockSpec((9 * Cmid_p, Cmid_p), lambda b, r: (0, 0)),
            pl.BlockSpec((1, Cmid_p), lambda b, r: (0, 0)),
            pl.BlockSpec((Cmid_p, Cout_p), lambda b, r: (0, 0)),
            pl.BlockSpec((1, Cout_p), lambda b, r: (0, 0)),
        ],
        out_specs=pl.BlockSpec((1, TH, W, Cout_p), lambda b, r: (b, r, 0, 0)),
        scratch_shapes=[pltpu.VMEM((n_mid, 9 * Cmid_p), jnp.bfloat16)],
        compiler_params=pltpu.CompilerParams(
            dimension_semantics=("parallel", "parallel"),
            vmem_limit_bytes=64 * 1024 * 1024),
        cost_estimate=pl.CostEstimate(flops=flops, transcendentals=0,
                                      bytes_accessed=bytes_accessed),
    )(x_p, x_p, x_p, w1k, b1k, w2k, b2k, w3k, b3k)

    if return_padded:
        return out_p
    return out_p[..., :Cout]


def intermediate_block_pallas(x_nchw, params, *, row_tile=32):
    """PyTorch-facing NCHW wrapper.  When chaining blocks, prefer
    `intermediate_block_nhwc(..., return_padded=True)` to avoid the
    NCHW<->NHWC transposes and the channel unpad pass."""
    x_nhwc = jnp.transpose(x_nchw, (0, 2, 3, 1))
    out = intermediate_block_nhwc(x_nhwc, params, row_tile=row_tile,
                                  out_dtype=jnp.float32)
    return jnp.transpose(out, (0, 3, 1, 2))


# --------------------------- parameter setup ---------------------------------

def _fold_bn(gamma, beta, mean, var, eps=1e-5):
    scale = gamma / jnp.sqrt(var + eps)
    shift = beta - mean * scale
    return scale[None, :], shift[None, :]


def make_params(key, in_channels, inter_channels):
    expansion = 4
    out_channels = inter_channels * expansion
    ks = jax.random.split(key, 12)

    def kaiming(k, fan_in, shape):
        bound = jnp.sqrt(6.0 / fan_in)
        return jax.random.uniform(k, shape, jnp.float32, -bound, bound)

    # conv weights stored matmul-ready: (Cin, Cout) and (taps, Cin, Cout)
    w1 = kaiming(ks[0], in_channels, (in_channels, inter_channels))
    w2 = kaiming(ks[1], 9 * inter_channels, (9, inter_channels, inter_channels))
    w3 = kaiming(ks[2], inter_channels, (inter_channels, out_channels))

    def bn(kg, kb, km, kv, c):
        gamma = 1.0 + 0.1 * jax.random.normal(kg, (c,), jnp.float32)
        beta = 0.1 * jax.random.normal(kb, (c,), jnp.float32)
        mean = 0.1 * jax.random.normal(km, (c,), jnp.float32)
        var = jax.random.uniform(kv, (c,), jnp.float32, 0.5, 1.5)
        return _fold_bn(gamma, beta, mean, var)

    s1, b1 = bn(ks[3], ks[4], ks[5], ks[6], inter_channels)
    s2, b2 = bn(ks[7], ks[8], ks[9], ks[10], inter_channels)
    s3, b3 = bn(ks[11], ks[3], ks[7], ks[0], out_channels)

    return (w1, s1, b1, w2, s2, b2, w3, s3, b3)


# --------------------------- pure-JAX reference ------------------------------

def reference(x_nchw, params):
    (w1, s1, b1, w2, s2, b2, w3, s3, b3) = params
    Cmid = w1.shape[1]
    x = jnp.transpose(x_nchw, (0, 2, 3, 1))  # NHWC
    dn = ("NHWC", "HWIO", "NHWC")

    def conv(v, w_hwio, pad):
        return lax.conv_general_dilated(v, w_hwio, (1, 1), pad,
                                        dimension_numbers=dn)

    y = conv(x, w1[None, None], "VALID")
    y = jnp.maximum(y * s1[0] + b1[0], 0.0)
    y = conv(y, w2.reshape(3, 3, Cmid, Cmid), "SAME")
    y = jnp.maximum(y * s2[0] + b2[0], 0.0)
    y = conv(y, w3[None, None], "VALID")
    y = y * s3[0] + b3[0]
    y = jnp.maximum(y + x, 0.0)
    return jnp.transpose(y, (0, 3, 1, 2))


if __name__ == "__main__":
    key = jax.random.PRNGKey(0)
    k_x, k_p = jax.random.split(key)

    N, Cin, H, W = 2, 16, 16, 16        # in_channels = 16
    inter_channels = 4                  # expansion 4 -> out_channels = 16

    x = jax.random.normal(k_x, (N, Cin, H, W), jnp.float32)
    params = make_params(k_p, Cin, inter_channels)

    fn = jax.jit(intermediate_block_pallas)
    out = jax.block_until_ready(fn(x, params))

    ref = jax.block_until_ready(reference(x, params))
    # Kernel matmuls use bf16 operands (and bf16 activation I/O) with f32
    # accumulation, so compare against the f32 reference with relaxed tolerance.
    np.testing.assert_allclose(np.asarray(out), np.asarray(ref),
                               rtol=5e-2, atol=1e-1)

    print("KERNEL_OK")
</pallas_src>

<mosaic_0001>
module attributes {stable_mosaic.version = 11 : i64} {
  func.func @_bottleneck_kernel(%arg0: i32, %arg1: i32, %arg2: memref<1x16x16x128xbf16, #tpu.memory_space<vmem>>, %arg3: memref<1x1x16x128xbf16, #tpu.memory_space<vmem>>, %arg4: memref<1x1x16x128xbf16, #tpu.memory_space<vmem>>, %arg5: memref<128x128xbf16, #tpu.memory_space<vmem>>, %arg6: memref<1x128xf32, #tpu.memory_space<vmem>>, %arg7: memref<1152x128xbf16, #tpu.memory_space<vmem>>, %arg8: memref<1x128xf32, #tpu.memory_space<vmem>>, %arg9: memref<128x128xbf16, #tpu.memory_space<vmem>>, %arg10: memref<1x128xf32, #tpu.memory_space<vmem>>, %arg11: memref<1x16x16x128xf32, #tpu.memory_space<vmem>>, %arg12: memref<256x1152xbf16, #tpu.memory_space<vmem>>) attributes {dimension_semantics = [#tpu.dimension_semantics<parallel>, #tpu.dimension_semantics<parallel>], iteration_bounds = array<i64: 2, 1>, scalar_prefetch = 0 : i64, scratch_operands = 1 : i64, tpu.core_type = #tpu.core_type<tc>, window_params = [{transform_indices = @transform_0, window_bounds = array<i64: 1, 16, 16, 128>}, {transform_indices = @transform_1, window_bounds = array<i64: 1, 1, 16, 128>}, {transform_indices = @transform_2, window_bounds = array<i64: 1, 1, 16, 128>}, {pipeline_mode = #tpu.pipeline_mode<synchronous>, transform_indices = @transform_3, window_bounds = array<i64: 128, 128>}, {pipeline_mode = #tpu.pipeline_mode<synchronous>, transform_indices = @transform_4, window_bounds = array<i64: 1, 128>}, {pipeline_mode = #tpu.pipeline_mode<synchronous>, transform_indices = @transform_5, window_bounds = array<i64: 1152, 128>}, {pipeline_mode = #tpu.pipeline_mode<synchronous>, transform_indices = @transform_6, window_bounds = array<i64: 1, 128>}, {pipeline_mode = #tpu.pipeline_mode<synchronous>, transform_indices = @transform_7, window_bounds = array<i64: 128, 128>}, {pipeline_mode = #tpu.pipeline_mode<synchronous>, transform_indices = @transform_8, window_bounds = array<i64: 1, 128>}, {transform_indices = @transform_9, window_bounds = array<i64: 1, 16, 16, 128>}]} {
    %c0 = arith.constant 0 : index
    %c0_0 = arith.constant 0 : index
    %c0_1 = arith.constant 0 : index
    %c0_2 = arith.constant 0 : index
    %0 = vector.load %arg2[%c0, %c0_0, %c0_1, %c0_2] : memref<1x16x16x128xbf16, #tpu.memory_space<vmem>>, vector<1x16x16x128xbf16>
    %1 = vector.shape_cast %0 : vector<1x16x16x128xbf16> to vector<16x16x128xbf16>
    %2 = vector.shape_cast %1 : vector<16x16x128xbf16> to vector<256x128xbf16>
    %c0_3 = arith.constant 0 : index
    %c0_4 = arith.constant 0 : index
    %c0_5 = arith.constant 0 : index
    %c0_6 = arith.constant 0 : index
    %3 = vector.load %arg3[%c0_3, %c0_4, %c0_5, %c0_6] : memref<1x1x16x128xbf16, #tpu.memory_space<vmem>>, vector<1x1x16x128xbf16>
    %4 = vector.shape_cast %3 : vector<1x1x16x128xbf16> to vector<16x128xbf16>
    %c0_7 = arith.constant 0 : index
    %c0_8 = arith.constant 0 : index
    %c0_9 = arith.constant 0 : index
    %c0_10 = arith.constant 0 : index
    %5 = vector.load %arg4[%c0_7, %c0_8, %c0_9, %c0_10] : memref<1x1x16x128xbf16, #tpu.memory_space<vmem>>, vector<1x1x16x128xbf16>
    %6 = vector.shape_cast %5 : vector<1x1x16x128xbf16> to vector<16x128xbf16>
    %cst = arith.constant 0.000000e+00 : bf16
    %7 = vector.broadcast %cst : bf16 to vector<1x128xbf16>
    %8 = tpu.concatenate %7, %4, %2, %6, %7 in 0 : vector<1x128xbf16>, vector<16x128xbf16>, vector<256x128xbf16>, vector<16x128xbf16>, vector<1x128xbf16> -> vector<290x128xbf16>
    %c0_11 = arith.constant 0 : index
    %c0_12 = arith.constant 0 : index
    %9 = vector.load %arg5[%c0_11, %c0_12] : memref<128x128xbf16, #tpu.memory_space<vmem>>, vector<128x128xbf16>
    %cst_13 = arith.constant dense<0.000000e+00> : vector<290x128xf32>
    %10 = tpu.matmul %8, %9, %cst_13 {dimension_numbers = #tpu.dot_dimension_numbers<[1], [0], [0], [1], [0, 0, 1, 1], [], []>} : vector<290x128xbf16>, vector<128x128xbf16>, vector<290x128xf32> -> vector<290x128xf32>
    %c0_14 = arith.constant 0 : index
    %c0_15 = arith.constant 0 : index
    %11 = vector.load %arg6[%c0_14, %c0_15] : memref<1x128xf32, #tpu.memory_space<vmem>>, vector<1x128xf32>
    %12 = vector.broadcast %11 : vector<1x128xf32> to vector<290x128xf32>
    %13 = arith.addf %10, %12 : vector<290x128xf32>
    %cst_16 = arith.constant 0.000000e+00 : f32
    %14 = vector.broadcast %cst_16 : f32 to vector<290x128xf32>
    %15 = arith.maximumf %13, %14 : vector<290x128xf32>
    %16 = arith.truncf %15 : vector<290x128xf32> to vector<290x128xbf16>
    %17 = tpu.iota {dimensions = array<i32: 0>} : vector<256x1xi32>
    %c16_i32 = arith.constant 16 : i32
    %c0_i32 = arith.constant 0 : i32
    %18 = arith.cmpi eq, %c16_i32, %c0_i32 : i32
    %c1_i32 = arith.constant 1 : i32
    %19 = arith.select %18, %c1_i32, %c16_i32 : i32
    %20 = vector.broadcast %19 : i32 to vector<256x1xi32>
    %21 = arith.remsi %17, %20 : vector<256x1xi32>
    %c0_i32_17 = arith.constant 0 : i32
    %22 = vector.broadcast %c0_i32_17 : i32 to vector<256x1xi32>
    %23 = arith.cmpi ne, %21, %22 : vector<256x1xi32>
    %c0_i32_18 = arith.constant 0 : i32
    %24 = vector.broadcast %c0_i32_18 : i32 to vector<256x1xi32>
    %25 = arith.cmpi slt, %21, %24 : vector<256x1xi32>
    %c0_i32_19 = arith.constant 0 : i32
    %26 = arith.cmpi slt, %19, %c0_i32_19 : i32
    %27 = vector.broadcast %26 : i1 to vector<256x1xi1>
    %28 = vector.broadcast %27 : vector<256x1xi1> to vector<256x1xi1>
    %29 = arith.xori %25, %28 : vector<256x1xi1>
    %30 = arith.andi %29, %23 : vector<256x1xi1>
    %31 = vector.broadcast %19 : i32 to vector<256x1xi32>
    %32 = arith.addi %21, %31 : vector<256x1xi32>
    %33 = arith.select %30, %32, %21 : vector<256x1xi1>, vector<256x1xi32>
    %c0_i32_20 = arith.constant 0 : i32
    %34 = vector.broadcast %c0_i32_20 : i32 to vector<256x1xi32>
    %35 = arith.cmpi sgt, %33, %34 : vector<256x1xi32>
    %36 = arith.extui %35 : vector<256x1xi1> to vector<256x1xi32>
    %37 = arith.sitofp %36 : vector<256x1xi32> to vector<256x1xf32>
    %38 = arith.truncf %37 : vector<256x1xf32> to vector<256x1xbf16>
    %c15_i32 = arith.constant 15 : i32
    %39 = vector.broadcast %c15_i32 : i32 to vector<256x1xi32>
    %40 = arith.cmpi slt, %33, %39 : vector<256x1xi32>
    %41 = arith.extui %40 : vector<256x1xi1> to vector<256x1xi32>
    %42 = arith.sitofp %41 : vector<256x1xi32> to vector<256x1xf32>
    %43 = arith.truncf %42 : vector<256x1xf32> to vector<256x1xbf16>
    %44 = vector.extract_strided_slice %16 {offsets = [0, 0], sizes = [256, 128], strides = [1, 1]} : vector<290x128xbf16> to vector<256x128xbf16>
    %45 = vector.broadcast %38 : vector<256x1xbf16> to vector<256x128xbf16>
    %46 = arith.mulf %44, %45 : vector<256x128xbf16>
    %c0_21 = arith.constant 0 : index
    %c0_22 = arith.constant 0 : index
    %47 = vector.load %arg12[%c0_21, %c0_22] : memref<256x1152xbf16, #tpu.memory_space<vmem>>, vector<256x128xbf16>
    tpu.vector_store %arg12[%c0_21, %c0_22], %46 {strides = array<i32>} : memref<256x1152xbf16, #tpu.memory_space<vmem>>, vector<256x128xbf16>,
    %48 = vector.extract_strided_slice %16 {offsets = [1, 0], sizes = [256, 128], strides = [1, 1]} : vector<290x128xbf16> to vector<256x128xbf16>
    %c0_23 = arith.constant 0 : index
    %c128 = arith.constant 128 : index
    %49 = vector.load %arg12[%c0_23, %c128] : memref<256x1152xbf16, #tpu.memory_space<vmem>>, vector<256x128xbf16>
    tpu.vector_store %arg12[%c0_23, %c128], %48 {strides = array<i32>} : memref<256x1152xbf16, #tpu.memory_space<vmem>>, vector<256x128xbf16>,
    %50 = vector.extract_strided_slice %16 {offsets = [2, 0], sizes = [256, 128], strides = [1, 1]} : vector<290x128xbf16> to vector<256x128xbf16>
    %51 = vector.broadcast %43 : vector<256x1xbf16> to vector<256x128xbf16>
    %52 = arith.mulf %50, %51 : vector<256x128xbf16>
    %c0_24 = arith.constant 0 : index
    %c256 = arith.constant 256 : index
    %53 = vector.load %arg12[%c0_24, %c256] : memref<256x1152xbf16, #tpu.memory_space<vmem>>, vector<256x128xbf16>
    tpu.vector_store %arg12[%c0_24, %c256], %52 {strides = array<i32>} : memref<256x1152xbf16, #tpu.memory_space<vmem>>, vector<256x128xbf16>,
    %54 = vector.extract_strided_slice %16 {offsets = [16, 0], sizes = [256, 128], strides = [1, 1]} : vector<290x128xbf16> to vector<256x128xbf16>
    %55 = vector.broadcast %38 : vector<256x1xbf16> to vector<256x128xbf16>
    %56 = arith.mulf %54, %55 : vector<256x128xbf16>
    %c0_25 = arith.constant 0 : index
    %c384 = arith.constant 384 : index
    %57 = vector.load %arg12[%c0_25, %c384] : memref<256x1152xbf16, #tpu.memory_space<vmem>>, vector<256x128xbf16>
    tpu.vector_store %arg12[%c0_25, %c384], %56 {strides = array<i32>} : memref<256x1152xbf16, #tpu.memory_space<vmem>>, vector<256x128xbf16>,
    %58 = vector.extract_strided_slice %16 {offsets = [17, 0], sizes = [256, 128], strides = [1, 1]} : vector<290x128xbf16> to vector<256x128xbf16>
    %c0_26 = arith.constant 0 : index
    %c512 = arith.constant 512 : index
    %59 = vector.load %arg12[%c0_26, %c512] : memref<256x1152xbf16, #tpu.memory_space<vmem>>, vector<256x128xbf16>
    tpu.vector_store %arg12[%c0_26, %c512], %58 {strides = array<i32>} : memref<256x1152xbf16, #tpu.memory_space<vmem>>, vector<256x128xbf16>,
    %60 = vector.extract_strided_slice %16 {offsets = [18, 0], sizes = [256, 128], strides = [1, 1]} : vector<290x128xbf16> to vector<256x128xbf16>
    %61 = vector.broadcast %43 : vector<256x1xbf16> to vector<256x128xbf16>
    %62 = arith.mulf %60, %61 : vector<256x128xbf16>
    %c0_27 = arith.constant 0 : index
    %c640 = arith.constant 640 : index
    %63 = vector.load %arg12[%c0_27, %c640] : memref<256x1152xbf16, #tpu.memory_space<vmem>>, vector<256x128xbf16>
    tpu.vector_store %arg12[%c0_27, %c640], %62 {strides = array<i32>} : memref<256x1152xbf16, #tpu.memory_space<vmem>>, vector<256x128xbf16>,
    %64 = vector.extract_strided_slice %16 {offsets = [32, 0], sizes = [256, 128], strides = [1, 1]} : vector<290x128xbf16> to vector<256x128xbf16>
    %65 = vector.broadcast %38 : vector<256x1xbf16> to vector<256x128xbf16>
    %66 = arith.mulf %64, %65 : vector<256x128xbf16>
    %c0_28 = arith.constant 0 : index
    %c768 = arith.constant 768 : index
    %67 = vector.load %arg12[%c0_28, %c768] : memref<256x1152xbf16, #tpu.memory_space<vmem>>, vector<256x128xbf16>
    tpu.vector_store %arg12[%c0_28, %c768], %66 {strides = array<i32>} : memref<256x1152xbf16, #tpu.memory_space<vmem>>, vector<256x128xbf16>,
    %68 = vector.extract_strided_slice %16 {offsets = [33, 0], sizes = [256, 128], strides = [1, 1]} : vector<290x128xbf16> to vector<256x128xbf16>
    %c0_29 = arith.constant 0 : index
    %c896 = arith.constant 896 : index
    %69 = vector.load %arg12[%c0_29, %c896] : memref<256x1152xbf16, #tpu.memory_space<vmem>>, vector<256x128xbf16>
    tpu.vector_store %arg12[%c0_29, %c896], %68 {strides = array<i32>} : memref<256x1152xbf16, #tpu.memory_space<vmem>>, vector<256x128xbf16>,
    %70 = vector.extract_strided_slice %16 {offsets = [34, 0], sizes = [256, 128], strides = [1, 1]} : vector<290x128xbf16> to vector<256x128xbf16>
    %71 = vector.broadcast %43 : vector<256x1xbf16> to vector<256x128xbf16>
    %72 = arith.mulf %70, %71 : vector<256x128xbf16>
    %c0_30 = arith.constant 0 : index
    %c1024 = arith.constant 1024 : index
    %73 = vector.load %arg12[%c0_30, %c1024] : memref<256x1152xbf16, #tpu.memory_space<vmem>>, vector<256x128xbf16>
    tpu.vector_store %arg12[%c0_30, %c1024], %72 {strides = array<i32>} : memref<256x1152xbf16, #tpu.memory_space<vmem>>, vector<256x128xbf16>,
    %c0_i32_31 = arith.constant 0 : i32
    %74 = arith.cmpi eq, %arg1, %c0_i32_31 : i32
    %75 = arith.extui %74 : i1 to i32
    %c0_i32_32 = arith.constant 0 : i32
    %76 = arith.cmpi ne, %75, %c0_i32_32 : i32
    scf.if %76 {
      %cst_53 = arith.constant 0.000000e+00 : bf16
      %102 = vector.broadcast %cst_53 : bf16 to vector<16x384xbf16>
      %c0_54 = arith.constant 0 : index
      %c0_55 = arith.constant 0 : index
      %103 = vector.load %arg12[%c0_54, %c0_55] : memref<256x1152xbf16, #tpu.memory_space<vmem>>, vector<16x384xbf16>
      tpu.vector_store %arg12[%c0_54, %c0_55], %102 {strides = array<i32>} : memref<256x1152xbf16, #tpu.memory_space<vmem>>, vector<16x384xbf16>,
    } else {
    }
    %c0_i32_33 = arith.constant 0 : i32
    %77 = arith.cmpi eq, %arg1, %c0_i32_33 : i32
    %78 = arith.extui %77 : i1 to i32
    %c0_i32_34 = arith.constant 0 : i32
    %79 = arith.cmpi ne, %78, %c0_i32_34 : i32
    scf.if %79 {
      %cst_53 = arith.constant 0.000000e+00 : bf16
      %102 = vector.broadcast %cst_53 : bf16 to vector<16x384xbf16>
      %c240 = arith.constant 240 : index
      %c768_54 = arith.constant 768 : index
      %103 = vector.load %arg12[%c240, %c768_54] : memref<256x1152xbf16, #tpu.memory_space<vmem>>, vector<16x384xbf16>
      tpu.vector_store %arg12[%c240, %c768_54], %102 {strides = array<i32>} : memref<256x1152xbf16, #tpu.memory_space<vmem>>, vector<16x384xbf16>,
    } else {
    }
    %c0_35 = arith.constant 0 : index
    %c0_36 = arith.constant 0 : index
    %80 = vector.load %arg12[%c0_35, %c0_36] : memref<256x1152xbf16, #tpu.memory_space<vmem>>, vector<256x1152xbf16>
    %c0_37 = arith.constant 0 : index
    %c0_38 = arith.constant 0 : index
    %81 = vector.load %arg7[%c0_37, %c0_38] : memref<1152x128xbf16, #tpu.memory_space<vmem>>, vector<1152x128xbf16>
    %cst_39 = arith.constant dense<0.000000e+00> : vector<256x128xf32>
    %82 = tpu.matmul %80, %81, %cst_39 {dimension_numbers = #tpu.dot_dimension_numbers<[1], [0], [0], [1], [0, 0, 1, 1], [], []>} : vector<256x1152xbf16>, vector<1152x128xbf16>, vector<256x128xf32> -> vector<256x128xf32>
    %c0_40 = arith.constant 0 : index
    %c0_41 = arith.constant 0 : index
    %83 = vector.load %arg8[%c0_40, %c0_41] : memref<1x128xf32, #tpu.memory_space<vmem>>, vector<1x128xf32>
    %84 = vector.broadcast %83 : vector<1x128xf32> to vector<256x128xf32>
    %85 = arith.addf %82, %84 : vector<256x128xf32>
    %cst_42 = arith.constant 0.000000e+00 : f32
    %86 = vector.broadcast %cst_42 : f32 to vector<256x128xf32>
    %87 = arith.maximumf %85, %86 : vector<256x128xf32>
    %88 = arith.truncf %87 : vector<256x128xf32> to vector<256x128xbf16>
    %c0_43 = arith.constant 0 : index
    %c0_44 = arith.constant 0 : index
    %89 = vector.load %arg9[%c0_43, %c0_44] : memref<128x128xbf16, #tpu.memory_space<vmem>>, vector<128x128xbf16>
    %cst_45 = arith.constant dense<0.000000e+00> : vector<256x128xf32>
    %90 = tpu.matmul %88, %89, %cst_45 {dimension_numbers = #tpu.dot_dimension_numbers<[1], [0], [0], [1], [0, 0, 1, 1], [], []>} : vector<256x128xbf16>, vector<128x128xbf16>, vector<256x128xf32> -> vector<256x128xf32>
    %c0_46 = arith.constant 0 : index
    %c0_47 = arith.constant 0 : index
    %91 = vector.load %arg10[%c0_46, %c0_47] : memref<1x128xf32, #tpu.memory_space<vmem>>, vector<1x128xf32>
    %92 = vector.broadcast %91 : vector<1x128xf32> to vector<256x128xf32>
    %93 = arith.addf %90, %92 : vector<256x128xf32>
    %94 = arith.extf %2 : vector<256x128xbf16> to vector<256x128xf32>
    %95 = arith.addf %93, %94 : vector<256x128xf32>
    %cst_48 = arith.constant 0.000000e+00 : f32
    %96 = vector.broadcast %cst_48 : f32 to vector<256x128xf32>
    %97 = arith.maximumf %95, %96 : vector<256x128xf32>
    %98 = vector.shape_cast %97 : vector<256x128xf32> to vector<16x16x128xf32>
    %c0_49 = arith.constant 0 : index
    %c0_50 = arith.constant 0 : index
    %c0_51 = arith.constant 0 : index
    %c0_52 = arith.constant 0 : index
    %99 = vector.load %arg11[%c0_49, %c0_50, %c0_51, %c0_52] : memref<1x16x16x128xf32, #tpu.memory_space<vmem>>, vector<1x16x16x128xf32>
    %100 = vector.shape_cast %99 : vector<1x16x16x128xf32> to vector<16x16x128xf32>
    %101 = vector.shape_cast %98 : vector<16x16x128xf32> to vector<1x16x16x128xf32>
    tpu.vector_store %arg11[%c0_49, %c0_50, %c0_51, %c0_52], %101 {strides = array<i32>} : memref<1x16x16x128xf32, #tpu.memory_space<vmem>>, vector<1x16x16x128xf32>,
    return
  }
  func.func @transform_0(%arg0: i32, %arg1: i32) -> (i32, i32, i32, i32) {
    %c0_i32 = arith.constant 0 : i32
    %c0_i32_0 = arith.constant 0 : i32
    %c0_i32_1 = arith.constant 0 : i32
    return %arg0, %arg1, %c0_i32, %c0_i32_0 : i32, i32, i32, i32
  }
  func.func @transform_1(%arg0: i32, %arg1: i32) -> (i32, i32, i32, i32) {
    %c16_i32 = arith.constant 16 : i32
    %0 = arith.muli %arg1, %c16_i32 : i32
    %c1_i32 = arith.constant 1 : i32
    %1 = arith.subi %0, %c1_i32 : i32
    %c0_i32 = arith.constant 0 : i32
    %2 = arith.maxsi %1, %c0_i32 : i32
    %c0_i32_0 = arith.constant 0 : i32
    %c0_i32_1 = arith.constant 0 : i32
    %c0_i32_2 = arith.constant 0 : i32
    return %arg0, %2, %c0_i32_0, %c0_i32_1 : i32, i32, i32, i32
  }
  func.func @transform_2(%arg0: i32, %arg1: i32) -> (i32, i32, i32, i32) {
    %c16_i32 = arith.constant 16 : i32
    %0 = arith.muli %arg1, %c16_i32 : i32
    %c16_i32_0 = arith.constant 16 : i32
    %1 = arith.addi %0, %c16_i32_0 : i32
    %c15_i32 = arith.constant 15 : i32
    %2 = arith.minsi %1, %c15_i32 : i32
    %c0_i32 = arith.constant 0 : i32
    %c0_i32_1 = arith.constant 0 : i32
    %c0_i32_2 = arith.constant 0 : i32
    return %arg0, %2, %c0_i32, %c0_i32_1 : i32, i32, i32, i32
  }
  func.func @transform_3(%arg0: i32, %arg1: i32) -> (i32, i32) {
    %c0_i32 = arith.constant 0 : i32
    %c0_i32_0 = arith.constant 0 : i32
    %c0_i32_1 = arith.constant 0 : i32
    return %c0_i32, %c0_i32_0 : i32, i32
  }
  func.func @transform_4(%arg0: i32, %arg1: i32) -> (i32, i32) {
    %c0_i32 = arith.constant 0 : i32
    %c0_i32_0 = arith.constant 0 : i32
    %c0_i32_1 = arith.constant 0 : i32
    return %c0_i32, %c0_i32_0 : i32, i32
  }
  func.func @transform_5(%arg0: i32, %arg1: i32) -> (i32, i32) {
    %c0_i32 = arith.constant 0 : i32
    %c0_i32_0 = arith.constant 0 : i32
    %c0_i32_1 = arith.constant 0 : i32
    return %c0_i32, %c0_i32_0 : i32, i32
  }
  func.func @transform_6(%arg0: i32, %arg1: i32) -> (i32, i32) {
    %c0_i32 = arith.constant 0 : i32
    %c0_i32_0 = arith.constant 0 : i32
    %c0_i32_1 = arith.constant 0 : i32
    return %c0_i32, %c0_i32_0 : i32, i32
  }
  func.func @transform_7(%arg0: i32, %arg1: i32) -> (i32, i32) {
    %c0_i32 = arith.constant 0 : i32
    %c0_i32_0 = arith.constant 0 : i32
    %c0_i32_1 = arith.constant 0 : i32
    return %c0_i32, %c0_i32_0 : i32, i32
  }
  func.func @transform_8(%arg0: i32, %arg1: i32) -> (i32, i32) {
    %c0_i32 = arith.constant 0 : i32
    %c0_i32_0 = arith.constant 0 : i32
    %c0_i32_1 = arith.constant 0 : i32
    return %c0_i32, %c0_i32_0 : i32, i32
  }
  func.func @transform_9(%arg0: i32, %arg1: i32) -> (i32, i32, i32, i32) {
    %c0_i32 = arith.constant 0 : i32
    %c0_i32_0 = arith.constant 0 : i32
    %c0_i32_1 = arith.constant 0 : i32
    return %arg0, %arg1, %c0_i32, %c0_i32_0 : i32, i32, i32, i32
  }
}

</mosaic_0001>

<bundles_post_ra>
// kernel: intermediate_block_pallas.1
= control target key start
LH: loop header
LB: loop body
LE: loop exit
PB: predicated region body
PF: predicated region fallthrough
CT: control target
= control target key end

     0   :  { %s8341_s0 = inlined_call_operand.hbm [shape: bf16[2,16,16,128], index: 0, kind: input, shape index: {}, may-alias: {0,1,2}]   ;;  %s8342_s1 = inlined_call_operand.hbm [shape: bf16[2,16,16,128], index: 1, kind: input, shape index: {}, may-alias: {0,1,2}]   ;;  %s8343_s2 = inlined_call_operand.hbm [shape: bf16[2,16,16,128], index: 2, kind: input, shape index: {}, may-alias: {0,1,2}]   ;;  %s8344_s3 = inlined_call_operand.hbm [shape: bf16[128,128], index: 3, kind: input, shape index: {}]   ;;  %s8345_s4 = inlined_call_operand.hbm [shape: f32[1,128], index: 4, kind: input, shape index: {}]   ;;  %s8346_s5 = inlined_call_operand.hbm [shape: bf16[1152,128], index: 5, kind: input, shape index: {}]   ;;  %s8347_s6 = inlined_call_operand.hbm [shape: f32[1,128], index: 6, kind: input, shape index: {}]   ;;  %s8348_s7 = inlined_call_operand.hbm [shape: bf16[128,128], index: 7, kind: input, shape index: {}]   ;;  %s8349_s8 = inlined_call_operand.hbm [shape: f32[1,128], index: 8, kind: input, shape index: {}]   ;;  %s8350_s9 = inlined_call_operand.hbm [shape: f32[2,16,16,128], index: 9, kind: output, shape index: {}]  }
   0x1   :  { %8417 = sst [smem:[#allocation70_spill]] %s8342_s1 }
   0x2   :  { %8418 = sst [smem:[#allocation71_spill]] %s8344_s3 }
   0x3   :  { %8419 = sst [smem:[#allocation72_spill]] %s8346_s5 }
   0x4   :  { %8420 = sst [smem:[#allocation73_spill]] %s8348_s7 }
   0x5   :  { %8421 = sst [smem:[#allocation74_spill]] %s8350_s9 }
   0x6   :  { %14 = vsyncpa [#allocation4], 0 }
   0x7   :  { %16 = vsyncpa [#allocation4 + $0x1], 0 }
   0x8   :  { %17 = vsyncpa [#allocation7], 0 }
   0x9   :  { %19 = vsyncpa [#allocation7 + $0x1], 0 }
   0xa   :  { %20 = vsyncpa [#allocation10], 0 }
   0xb   :  { %21 = vsyncpa [#allocation13], 0 }
   0xc   :  { %22 = vsyncpa [#allocation16], 0 }
   0xd   :  { %23 = vsyncpa [#allocation5], 0 }
   0xe   :  { %25 = vsyncpa [#allocation5 + $0x1], 0  ;;  %s6274_s30 = smov 0   ;;  %s6276_s10 = smov 0  }
   0xf   :  { %s6278_s11 = smov 0   ;;  %s6280_s12 = smov 0  }
  0x10   :  { %s6282_s13 = smov 0   ;;  %s6284_s14 = smov 0  }
  0x11 LB: > { %8422 = sst [smem:[#allocation25_spill]] %s6184_s30  ;;  %s6305_s15 = sadd.s32 4294967295, %s6204_s14   ;;  %s6204_s14 = sphi %s6284_s14, %s31_s14   ;;  %s6200_s13 = sphi %s6282_s13, %s8724_s13   ;;  %s6196_s12 = sphi %s6280_s12, %s8723_s12   ;;  %s6192_s11 = sphi %s6278_s11, %s8727_s11   ;;  %s6188_s10 = sphi %s6276_s10, %s8726_s10   ;;  %s6184_s30 = sphi %s6274_s30, %s8725_s30  }
  0x12   : > { %8423 = sst [smem:[#allocation26_spill]] %s6192_s11  ;;  %p4653_p0 = scmp.ge.s32.totalorder %s6204_s14, 1 }
  0x13   : > { %8424 = sst [smem:[#allocation27_spill]] %s6196_s12  ;;  %p8353_p1 = scmp.eq.s32.totalorder %s6305_s15, 0 }
  0x14   : > { %8425 = sst [smem:[#allocation28_spill]] %s6200_s13  ;;  %p302_p2 = scmp.lt.s32.totalorder %s6204_s14, 3 }
  0x15   : > { %8426 = sst [smem:[#allocation29_spill]] %s6204_s14  ;;  %s6206_s17 = smov [#allocation9]  }
  0x16   : > { %p6310_p3 = pnand %p4653_p0, %p302_p2  ;;  %s314_s18 = sshll.u32 %s6206_s17, 4  ;;  %s6314_s18 = int_to_ptr.vmem [resolvable:$true] %s314_s18 }
  0x17   : > { %s6207_s20 = smov [#allocation12]   ;;  %s6208_s22 = smov [#allocation15]  }
  0x18   : > { %s8427_s16 = scalar_select %p6310_p3, 1, 0 }
  0x19   : > { %p5592_p4 = pneg %p6310_p3  ;;  %s338_s21 = sshll.u32 %s6207_s20, 4  ;;  %s6325_s21 = int_to_ptr.vmem [resolvable:$true] %s338_s21 }
  0x1a   : > { %8428 = sst [smem:[#allocation30_spill]] %s8427_s16  ;;  %s6327_s23 = sshll.u32 %s6208_s22, 4  ;;  %s363_s23 = int_to_ptr.vmem [resolvable:$true] %s6327_s23 }
  0x1b   : > { %p6321_p6 = pnand %p5592_p4, %p8353_p1  ;;  %s8430_s3 = sld [smem:[#allocation71_spill]] }
  0x1d   : > { %s8429_s19 = scalar_select %p6321_p6, 1, 0 }
  0x1e   : > { %p6337_p8 = pneg %p6321_p6 }
  0x20   : > { %s8431_s29 = scalar_select %p6337_p8, 1, 0 }
  0x21   : > { %s5848_s26 = scalar_lea.hbm %s8430_s3, 1024 }
  0x22   : > { %p5849_p7 = scmp.ne.s32.totalorder %s8430_s3, %s5848_s26  ;;  %p5855_p11 = scmp.lt.u32.totalorder %s5848_s26, %s8430_s3 }
  0x24   : > { %p5851_p9 = pnand %p6337_p8, %p5849_p7 }
  0x26   : > { %p5852_p10 = pneg %p5851_p9 }
  0x28   : > { %p5857_p12 = pnand %p5855_p11, %p5852_p10 }
  0x2a   : > { %5860 = shalt.err (!%p5857_p12)
}
  0x2b   : > { %s5861_s22 = scalar_lea.vmem %s6314_s18, 1024  ;;  %p5869_p4 = scmp.lt.s32.totalorder %s6314_s18, %s6314_s18 }
  0x2c   : > { %p5862_p13 = scmp.ne.s32.totalorder %s6314_s18, %s5861_s22  ;;  %p5870_p5 = scmp.lt.s32.totalorder %s5861_s22, %s5861_s22 }
  0x2e   : > { %p5864_p0 = pnand %p5862_p13, %p6337_p8  ;;  %p5871_p7 = por %p5870_p5, %p5869_p4 }
  0x30   : > { %p5865_p2 = pneg %p5864_p0 }
  0x32   : > { %p5872_p9 = pnand %p5871_p7, %p5865_p2 }
  0x34   : > { %5875 = shalt.err (!%p5872_p9)
}
  0x35   : > { %s8355_s24 = smov 64   ;;  %s8357_s25 = smov 4  }
  0x36   : > { %5595 = dma.hbm_to_vmem [thread:$0]  (!%p6321_p6), %s8430_s3, 1024, %s6314_s18, [#allocation10], %s8355_s24, %s8355_s24, %s8357_s25  }
  0x37   : > { %s8432_s5 = sld [smem:[#allocation72_spill]] }
  0x3d   : > { %s5876_s20 = scalar_lea.hbm %s8432_s5, 9216 }
  0x3e   : > { %p5877_p5 = scmp.ne.s32.totalorder %s8432_s5, %s5876_s20  ;;  %p5883_p12 = scmp.lt.u32.totalorder %s5876_s20, %s8432_s5 }
  0x40   : > { %p5879_p10 = pnand %p5877_p5, %p6337_p8 }
  0x42   : > { %p5880_p11 = pneg %p5879_p10 }
  0x44   : > { %p5885_p13 = pnand %p5883_p12, %p5880_p11 }
  0x46   : > { %5888 = shalt.err (!%p5885_p13)
}
  0x47   : > { %s5889_s18 = scalar_lea.vmem %s6325_s21, 9216  ;;  %p5897_p7 = scmp.lt.s32.totalorder %s6325_s21, %s6325_s21 }
  0x48   : > { %p5890_p0 = scmp.ne.s32.totalorder %s6325_s21, %s5889_s18  ;;  %p5898_p9 = scmp.lt.s32.totalorder %s5889_s18, %s5889_s18 }
  0x4a   : > { %p5892_p2 = pnand %p5890_p0, %p6337_p8  ;;  %p5899_p5 = por %p5898_p9, %p5897_p7 }
  0x4c   : > { %p5893_p4 = pneg %p5892_p2 }
  0x4e   : > { %p5900_p10 = pnand %p5899_p5, %p5893_p4 }
  0x50   : > { %5903 = shalt.err (!%p5900_p10)
}
  0x51   : > { %5601 = dma.hbm_to_vmem [thread:$0]  (!%p6321_p6), %s8432_s5, 9216, %s6325_s21, [#allocation13], %s8355_s24, %s8355_s24, %s8357_s25  }
  0x52   : > { %s8433_s7 = sld [smem:[#allocation73_spill]] }
  0x58   : > { %s5904_s27 = scalar_lea.hbm %s8433_s7, 1024 }
  0x59   : > { %p5905_p11 = scmp.ne.s32.totalorder %s8433_s7, %s5904_s27  ;;  %p5911_p0 = scmp.lt.u32.totalorder %s5904_s27, %s8433_s7 }
  0x5b   : > { %p5907_p12 = pnand %p5905_p11, %p6337_p8 }
  0x5d   : > { %p5908_p13 = pneg %p5907_p12 }
  0x5f   : > { %p5913_p2 = pnand %p5911_p0, %p5908_p13 }
  0x61   : > { %5916 = shalt.err (!%p5913_p2)
}
  0x62   : > { %s5917_s18 = scalar_lea.vmem %s363_s23, 1024  ;;  %p5925_p5 = scmp.lt.s32.totalorder %s363_s23, %s363_s23 }
  0x63   : > { %p5918_p4 = scmp.ne.s32.totalorder %s363_s23, %s5917_s18  ;;  %p5926_p10 = scmp.lt.s32.totalorder %s5917_s18, %s5917_s18 }
  0x65   : > { %p5920_p7 = pnand %p5918_p4, %p6337_p8  ;;  %p5927_p1 = por %p5926_p10, %p5925_p5 }
  0x67   : > { %p5921_p9 = pneg %p5920_p7 }
  0x69   : > { %p5928_p3 = pnand %p5927_p1, %p5921_p9 }
  0x6b   : > { %5931 = shalt.err (!%p5928_p3)
}
  0x6c   : > { %5607 = dma.hbm_to_vmem [thread:$0]  (!%p6321_p6), %s8433_s7, 1024, %s363_s23, [#allocation16], %s8355_s24, %s8355_s24, %s8357_s25  }
  0x6d   : > { %s4652_s12 = sadd.s32 4294967294, %s6204_s14   ;;  %s43_s16 = sadd.s32 1, %s6200_s13 }
  0x6e   : > { %s52_s26 = sadd.s32 1, %s6192_s11  ;;  %p45_p1 = scmp.ge.s32.totalorder %s43_s16, 2 }
  0x6f   : > { %p59_p3 = scmp.ne.s32.totalorder %s6192_s11, %s6188_s10  ;;  %p60_p11 = scmp.eq.s32.totalorder %s6204_s14, 0 }
  0x70   : > { %p65_p12 = scmp.ne.s32.totalorder %s6188_s10, %s6184_s30  ;;  %s8729_s16 = smov (%p45_p1, %s43_s16), 0 }
  0x71   : > { %8434 = sst [smem:[#allocation31_spill]] %s8729_s16  ;;  %p61_p13 = por %p60_p11, %p59_p3 }
  0x72   : > { %p8435_p0 = scmp.eq.s32.totalorder %s6305_s15, 0  ;;  %s47_s23 = ssub.s32 %s6200_s13, %s8729_s16 }
  0x73   : > { %p289_p4 = scmp.eq.s32.totalorder %s6305_s15, 1  ;;  %p50_p7 = scmp.eq.s32.totalorder %s47_s23, 0 }
  0x74   : > { %p6421_p2 = por %p8435_p0, %p65_p12  ;;  %p295_p9 = scmp.eq.s32.totalorder %s4652_s12, 1 }
  0x75   : > { %p6428_p5 = por %p289_p4, %p59_p3  ;;  %p5631_p10 = scmp.lt.s32.totalorder %s6204_s14, 2 }
  0x76   : > { %s8436_s27 = scalar_select %p6421_p2, 1, 0 }
  0x77   : > { %s8437_s28 = scalar_select %p6428_p5, 1, 0 }
  0x78   : > { %s6434_s17 = scalar_select %p50_p7, %s6192_s11, %s52_s26  }
  0x79   : > { %p6436_p1 = por %p295_p9, %p65_p12  ;;  %s6441_s22 = sand.u32 1, %s6192_s11  }
  0x7a   : > { %8438 = sst [smem:[#allocation32_spill]] %s6434_s17  ;;  %s6444_s18 = sshll.u32 %s6200_s13, 11 }
  0x7b   : > { %s8439_s20 = scalar_select %p6436_p1, 1, 0 }
  0x7c   : > { %p6446_p11 = pnand %p5631_p10, %p61_p13  ;;  %s411_s9 = sand.u32 1, %s6204_s14  }
  0x7d   : > { %8440 = sst [smem:[#allocation33_spill]] %s8439_s20  ;;  %s4664_s12 = sshll.u32 %s6441_s22, 3 }
  0x7e   : > { %s8441_s21 = scalar_select %p6446_p11, 1, 0 }
  0x7f   : > { %s8442_s1 = sld [smem:[#allocation70_spill]]  ;;  %s415_s25 = scalar_lea.vmem [#allocation6], %s4664_s12 }
  0x80   : > { %s428_s3 = sshll.u32 %s415_s25, 4  ;;  %s6460_s5 = scalar_lea.vmem [#allocation8], %s4664_s12  ;;  %s6458_s3 = int_to_ptr.vmem [resolvable:$true] %s428_s3 }
  0x81   : > { %s455_s7 = sshll.u32 %s6460_s5, 4  ;;  %s6463_s16 = scalar_lea.sflag [#allocation7], %s411_s9  ;;  %s6498_s7 = int_to_ptr.vmem [resolvable:$true] %s455_s7 }
  0x82   : > { %p6469_p12 = pneg %p6446_p11 }
  0x84   : > { %s8443_s23 = scalar_select %p6469_p12, 1, 0 }
  0x85   : > { %s6456_s24 = scalar_lea.hbm %s8442_s1, %s6444_s18  ;;  %s5937_s12 = scalar_lea.hbm %s8442_s1, 4096 }
  0x86   : > { %s5932_s13 = scalar_lea.hbm %s6456_s24, 128  ;;  %p5938_p4 = scmp.lt.u32.totalorder %s6456_s24, %s8442_s1 }
  0x87   : > { %p5933_p3 = scmp.ne.s32.totalorder %s6456_s24, %s5932_s13  ;;  %p5939_p7 = scmp.lt.u32.totalorder %s5937_s12, %s5932_s13 }
  0x88   : > { %p5941_p10 = scmp.lt.u32.totalorder %s5932_s13, %s6456_s24 }
  0x89   : > { %p5935_p13 = pnand %p6469_p12, %p5933_p3  ;;  %p5940_p9 = por %p5939_p7, %p5938_p4 }
  0x8b   : > { %p5936_p0 = pneg %p5935_p13  ;;  %p5942_p1 = por %p5941_p10, %p5940_p9 }
  0x8d   : > { %p5943_p5 = pnand %p5942_p1, %p5936_p0 }
  0x8f   : > { %5946 = shalt.err (!%p5943_p5)
}
  0x90   : > { %s5947_s9 = scalar_lea.vmem %s6458_s3, 128  ;;  %s6211_s25 = smov [#allocation6]  }
  0x91   : > { %p5948_p3 = scmp.ne.s32.totalorder %s6458_s3, %s5947_s9  ;;  %s5952_s26 = sshll.u32 %s6211_s25, 4  ;;  %s5953_s26 = int_to_ptr.vmem [resolvable:$false] %s5952_s26 }
  0x92   : > { %s5954_s11 = scalar_lea.vmem %s5953_s26, 256  ;;  %p5955_p6 = scmp.lt.s32.totalorder %s6458_s3, %s5953_s26 }
  0x93   : > { %p5950_p13 = pnand %p5948_p3, %p6469_p12  ;;  %p5956_p8 = scmp.lt.s32.totalorder %s5954_s11, %s5947_s9 }
  0x95   : > { %p5951_p2 = pneg %p5950_p13  ;;  %p5957_p4 = por %p5956_p8, %p5955_p6 }
  0x97   : > { %p5958_p7 = pnand %p5957_p4, %p5951_p2 }
  0x99   : > { %5961 = shalt.err (!%p5958_p7)
}
  0x9a   : > { %s8444_s13 = smov 4   ;;  %s8445_s17 = smov 64  }
  0x9b   : > { %5617 = dma.hbm_to_vmem [thread:$0]  (!%p6446_p11), %s6456_s24, 128, %s6458_s3, %s6463_s16, %s8445_s17, %s8445_s17, %s8444_s13  }
  0x9c   : > { %s6212_s12 = smov [#allocation11]   ;;  %s6213_s9 = smov [#allocation14]  }
  0x9d   : > { %s328_s25 = sshll.u32 %s6212_s12, 4  ;;  %s352_s26 = sshll.u32 %s6213_s9, 4  ;;  %s329_s25 = int_to_ptr.vmem [resolvable:$true] %s328_s25  ;;  %s353_s26 = int_to_ptr.vmem [resolvable:$true] %s352_s26 }
  0x9e   : > { %s5962_s14 = scalar_lea.hbm %s8345_s4, 16  ;;  %p8446_p8 = scmp.ne.s32.totalorder %s8431_s29, 0 }
  0x9f   : > { %p5963_p6 = scmp.ne.s32.totalorder %s8345_s4, %s5962_s14  ;;  %p5969_p1 = scmp.lt.u32.totalorder %s5962_s14, %s8345_s4 }
  0xa1   : > { %p5965_p2 = pnand %p5963_p6, %p8446_p8 }
  0xa3   : > { %p5966_p5 = pneg %p5965_p2 }
  0xa5   : > { %p5971_p0 = pnand %p5969_p1, %p5966_p5 }
  0xa7   : > { %5974 = shalt.err (!%p5971_p0)
}
  0xa8   : > { %s5975_s24 = scalar_lea.vmem %s329_s25, 16  ;;  %s5982_s1 = scalar_lea.vmem %s329_s25, 32 }
  0xa9   : > { %p5976_p9 = scmp.ne.s32.totalorder %s329_s25, %s5975_s24  ;;  %p5983_p13 = scmp.lt.s32.totalorder %s329_s25, %s329_s25 }
  0xaa   : > { %p5984_p4 = scmp.lt.s32.totalorder %s5982_s1, %s5975_s24 }
  0xab   : > { %p5978_p10 = pnand %p5976_p9, %p8446_p8 }
  0xac   : > { %p5985_p7 = por %p5984_p4, %p5983_p13 }
  0xad   : > { %p5979_p3 = pneg %p5978_p10 }
  0xaf   : > { %p5986_p11 = pnand %p5985_p7, %p5979_p3 }
  0xb1   : > { %5989 = shalt.err (!%p5986_p11)
}
  0xb2   : > { %p8447_p6 = scmp.ne.s32.totalorder %s8429_s19, 0  ;;  %s5990_s9 = scalar_lea.hbm %s8347_s6, 16 }
  0xb3   : > { %p5991_p2 = scmp.ne.s32.totalorder %s8347_s6, %s5990_s9  ;;  %p5997_p11 = scmp.lt.u32.totalorder %s5990_s9, %s8347_s6 }
  0xb4   : > { %5598 = dma.hbm_to_vmem [thread:$0]  (!%p8447_p6), %s8345_s4, 16, %s329_s25, [#allocation10]  }
  0xb5   : > { %p5993_p5 = pnand %p5991_p2, %p8446_p8 }
  0xb7   : > { %p5994_p1 = pneg %p5993_p5 }
  0xb9   : > { %p5999_p0 = pnand %p5997_p11, %p5994_p1 }
  0xbb   : > { %6002 = shalt.err (!%p5999_p0)
}
  0xbc   : > { %s6003_s1 = scalar_lea.vmem %s353_s26, 16  ;;  %s6010_s25 = scalar_lea.vmem %s353_s26, 32 }
  0xbd   : > { %p6004_p9 = scmp.ne.s32.totalorder %s353_s26, %s6003_s1  ;;  %p6011_p13 = scmp.lt.s32.totalorder %s353_s26, %s353_s26 }
  0xbe   : > { %p6012_p4 = scmp.lt.s32.totalorder %s6010_s25, %s6003_s1 }
  0xbf   : > { %p6006_p10 = pnand %p6004_p9, %p8446_p8 }
  0xc0   : > { %p6013_p7 = por %p6012_p4, %p6011_p13 }
  0xc1   : > { %p6007_p3 = pneg %p6006_p10 }
  0xc3   : > { %p6014_p12 = pnand %p6013_p7, %p6007_p3 }
  0xc5   : > { %6017 = shalt.err (!%p6014_p12)
}
  0xc6   : > { %5604 = dma.hbm_to_vmem [thread:$0]  (!%p8447_p6), %s8347_s6, 16, %s353_s26, [#allocation13]  }
  0xc7   : > { %s6214_s14 = smov [#allocation17]   ;;  %s4661_s9 = sshll.u32 %s6441_s22, 7 }
  0xc8   : > { %s376_s12 = sshll.u32 %s6214_s14, 4  ;;  %s6018_s5 = scalar_lea.hbm %s8349_s8, 16  ;;  %s377_s12 = int_to_ptr.vmem [resolvable:$true] %s376_s12 }
  0xc9   : > { %p6019_p12 = scmp.ne.s32.totalorder %s8349_s8, %s6018_s5  ;;  %p6025_p1 = scmp.lt.u32.totalorder %s6018_s5, %s8349_s8 }
  0xcb   : > { %p6021_p2 = pnand %p6019_p12, %p8446_p8 }
  0xcd   : > { %p6022_p5 = pneg %p6021_p2 }
  0xcf   : > { %p6027_p11 = pnand %p6025_p1, %p6022_p5 }
  0xd1   : > { %6030 = shalt.err (!%p6027_p11)
}
  0xd2   : > { %s6031_s26 = scalar_lea.vmem %s377_s12, 16  ;;  %s6038_s20 = scalar_lea.vmem %s377_s12, 32 }
  0xd3   : > { %p6032_p0 = scmp.ne.s32.totalorder %s377_s12, %s6031_s26  ;;  %p6039_p3 = scmp.lt.s32.totalorder %s377_s12, %s377_s12 }
  0xd4   : > { %p6040_p13 = scmp.lt.s32.totalorder %s6038_s20, %s6031_s26 }
  0xd5   : > { %p6034_p9 = pnand %p6032_p0, %p8446_p8 }
  0xd6   : > { %p6041_p4 = por %p6040_p13, %p6039_p3 }
  0xd7   : > { %p6035_p10 = pneg %p6034_p9 }
  0xd9   : > { %p6042_p7 = pnand %p6041_p4, %p6035_p10 }
  0xdb   : > { %6045 = shalt.err (!%p6042_p7)
}
  0xdc   : > { %5610 = dma.hbm_to_vmem [thread:$0]  (!%p8447_p6), %s8349_s8, 16, %s377_s12, [#allocation16]  }
  0xdd   : > { %s6559_s5 = scalar_lea.hbm %s8341_s0, %s6444_s18  ;;  %s391_s24 = scalar_lea.vmem [#allocation3], %s4661_s9 }
  0xde   : > { %s401_s1 = sshll.u32 %s391_s24, 4  ;;  %s4830_s19 = sadd.s32 1920, %s6444_s18  ;;  %s6562_s1 = int_to_ptr.vmem [resolvable:$true] %s401_s1 }
  0xdf   : > { %s6567_s26 = scalar_lea.hbm %s8343_s2, %s4830_s19  ;;  %s388_s12 = scalar_lea.sflag [#allocation4], %s6441_s22 }
  0xe0   : > { %s6046_s20 = scalar_lea.hbm %s6559_s5, 2048  ;;  %p8448_p6 = scmp.ne.s32.totalorder %s8443_s23, 0 }
  0xe1   : > { %p6047_p8 = scmp.ne.s32.totalorder %s6559_s5, %s6046_s20  ;;  %s6051_s3 = scalar_lea.hbm %s8341_s0, 4096 }
  0xe2   : > { %p6052_p5 = scmp.lt.u32.totalorder %s6559_s5, %s8341_s0  ;;  %p6053_p1 = scmp.lt.u32.totalorder %s6051_s3, %s6046_s20 }
  0xe3   : > { %p6049_p12 = pnand %p6047_p8, %p8448_p6  ;;  %p6055_p0 = scmp.lt.u32.totalorder %s6046_s20, %s6559_s5 }
  0xe4   : > { %p6054_p11 = por %p6053_p1, %p6052_p5 }
  0xe5   : > { %p6050_p2 = pneg %p6049_p12 }
  0xe6   : > { %p6056_p9 = por %p6055_p0, %p6054_p11 }
  0xe8   : > { %p6057_p10 = pnand %p6056_p9, %p6050_p2 }
  0xea   : > { %6060 = shalt.err (!%p6057_p10)
}
  0xeb   : > { %s6061_s18 = scalar_lea.vmem %s6562_s1, 2048  ;;  %s6215_s24 = smov [#allocation3]  }
  0xec   : > { %p6062_p3 = scmp.ne.s32.totalorder %s6562_s1, %s6061_s18  ;;  %s6066_s19 = sshll.u32 %s6215_s24, 4  ;;  %s6067_s19 = int_to_ptr.vmem [resolvable:$false] %s6066_s19 }
  0xed   : > { %s6068_s25 = scalar_lea.vmem %s6067_s19, 4096  ;;  %p6069_p7 = scmp.lt.s32.totalorder %s6562_s1, %s6067_s19 }
  0xee   : > { %p6064_p13 = pnand %p6062_p3, %p8448_p6  ;;  %p6070_p8 = scmp.lt.s32.totalorder %s6068_s25, %s6061_s18 }
  0xf0   : > { %p6065_p4 = pneg %p6064_p13  ;;  %p6071_p12 = por %p6070_p8, %p6069_p7 }
  0xf2   : > { %p6072_p5 = pnand %p6071_p12, %p6065_p4 }
  0xf4   : > { %6075 = shalt.err (!%p6072_p5)
}
  0xf5   : > { %p8449_p2 = scmp.ne.s32.totalorder %s8441_s21, 0  ;;  %s6076_s30 = scalar_lea.hbm %s6567_s26, 128 }
  0xf6   : > { %p6077_p1 = scmp.ne.s32.totalorder %s6567_s26, %s6076_s30  ;;  %s6081_s11 = scalar_lea.hbm %s8343_s2, 4096 }
  0xf7   : > { %5614 = dma.hbm_to_vmem [thread:$0]  (!%p8449_p2), %s6559_s5, 2048, %s6562_s1, %s388_s12, %s8445_s17, %s8445_s17, %s8444_s13  }
  0xf8   : > { %p6079_p11 = pnand %p6077_p1, %p8448_p6  ;;  %p6082_p9 = scmp.lt.u32.totalorder %s6567_s26, %s8343_s2 }
  0xf9   : > { %p6083_p10 = scmp.lt.u32.totalorder %s6081_s11, %s6076_s30  ;;  %p6085_p13 = scmp.lt.u32.totalorder %s6076_s30, %s6567_s26 }
  0xfa   : > { %p6080_p0 = pneg %p6079_p11 }
  0xfb   : > { %p6084_p3 = por %p6083_p10, %p6082_p9 }
  0xfd   : > { %p6086_p4 = por %p6085_p13, %p6084_p3 }
  0xff   : > { %p6087_p7 = pnand %p6086_p4, %p6080_p0 }
 0x101   : > { %6090 = shalt.err (!%p6087_p7)
}
 0x102   : > { %s6091_s22 = scalar_lea.vmem %s6498_s7, 128  ;;  %s6216_s5 = smov [#allocation8]  }
 0x103   : > { %p6092_p8 = scmp.ne.s32.totalorder %s6498_s7, %s6091_s22  ;;  %s6096_s1 = sshll.u32 %s6216_s5, 4  ;;  %s6097_s1 = int_to_ptr.vmem [resolvable:$false] %s6096_s1 }
 0x104   : > { %s6098_s12 = scalar_lea.vmem %s6097_s1, 256  ;;  %p6099_p1 = scmp.lt.s32.totalorder %s6498_s7, %s6097_s1 }
 0x105   : > { %p6094_p12 = pnand %p6092_p8, %p8448_p6  ;;  %p6100_p11 = scmp.lt.s32.totalorder %s6098_s12, %s6091_s22 }
 0x107   : > { %p6095_p5 = pneg %p6094_p12  ;;  %p6101_p9 = por %p6100_p11, %p6099_p1 }
 0x109   : > { %p6102_p10 = pnand %p6101_p9, %p6095_p5 }
 0x10b   : > { %6105 = shalt.err (!%p6102_p10)
}
 0x10c   : > { %5620 = dma.hbm_to_vmem [thread:$0]  (!%p8449_p2), %s6567_s26, 128, %s6498_s7, %s6463_s16, %s8445_s17, %s8445_s17, %s8444_s13  }
 0x10d   : > { %s8450_s23 = sld [smem:[#allocation30_spill]] }
 0x113   : > { %p8451_p6 = scmp.ne.s32.totalorder %s8450_s23, 0 }
 0x115   : > { %467 = sbr.rel (%p8451_p6) target bundleno = 1409 (0x581), region = 56 }
 0x11c   : > { %s6624_s29 = sand.u32 1, %s6188_s10   ;;  %p8452_p0 = scmp.ne.s32.totalorder %s8436_s27, 0 }
 0x11d   : > { %s4671_s18 = sshll.u32 %s6624_s29, 7  ;;  %s470_s24 = scalar_lea.sflag [#allocation4], %s6624_s29 }
 0x11e   : > { %s6628_s19 = scalar_lea.vmem [#allocation3], %s4671_s18 }
 0x11f   : > { %6159 = dma.done.wait (%p8452_p0), %s470_s24, 2048  }
 0x120   : > { %6161 = vsyncadd (%p8452_p0), %s470_s24, 4294965248  ;;  %s478_s7 = sand.u32 1, %s6305_s15   ;;  %s4672_s16 = sshll.u32 %s6624_s29, 3 }
 0x121   : > { %s479_s21 = scalar_lea.sflag [#allocation7], %s478_s7  ;;  %s482_s13 = scalar_lea.vmem [#allocation6], %s4672_s16 }
 0x122   : > { %6163 = dma.done.wait (%p8452_p0), %s479_s21, 256  }
 0x123   : > { %6165 = vsyncadd (%p8452_p0), %s479_s21, 4294967040  ;;  %s6640_s17 = scalar_lea.vmem [#allocation8], %s4672_s16  ;;  %p8453_p2 = scmp.eq.s32.totalorder %s6305_s15, 0 }
 0x125   : > { %6167 = dma.done.wait (%p8453_p2), [#allocation10], 1040   ;;  %p8454_p3 = pmov %p8453_p2 }
 0x126   : > { %p8455_p13 = pmov %p8453_p2 }
 0x127   : > { %6169 = vsyncadd (%p8454_p3), [#allocation10], 4294966256 }
 0x128   : > { %6171 = dma.done.wait (%p8455_p13), [#allocation13], 9232   ;;  %p8456_p4 = pmov %p8453_p2 }
 0x129   : > { %p8457_p7 = pmov %p8453_p2 }
 0x12a   : > { %6173 = vsyncadd (%p8456_p4), [#allocation13], 4294958064 }
 0x12b   : > { %6175 = dma.done.wait (%p8457_p7), [#allocation16], 1040   ;;  %p8458_p8 = pmov %p8453_p2 }
 0x12c   : > { %v8380_v0 = vmov 0.0   ;;  %vm6218_vm0 = vmmov 0   ;;  %v5701_v1 = vld [vmem:[#allocation9] sm:$0xff]   ;;  %v5702_v2 = vld [vmem:[#allocation9 + $0x8] sm:$0xff]   ;;  %v5703_v3 = vld [vmem:[#allocation9 + $0x10] sm:$0xff]   ;;  %vm860_vm2 = vcmask 1040384  }
 0x12d   : > { %6177 = vsyncadd (%p8458_p8), [#allocation16], 4294966256  ;;  %5356 = vmatprep.subr.bf16.mxu0 %v8380_v0  ;;  %5372 = vmatprep.mubr.msk.bf16.mxu0 %vm6218_vm0, %v8380_v0  ;;  %v5704_v4 = vld [vmem:[#allocation9 + $0x18] sm:$0xff]   ;;  %v5705_v5 = vld [vmem:[#allocation9 + $0x20] sm:$0xff]   ;;  %vm701_vm1 = vsmask.f32 256 }
 0x12e   : > { %5357 = vmatpush3.bf16.msra.mxu0 %v5701_v1  ;;  %v5709_v6 = vld [vmem:[%s482_s13] sm:$0xff]   ;;  %v5707_v10 = vld [vmem:[#allocation9 + $0x30] sm:$0xff]   ;;  %vm6667_vm3 = vmand %vm860_vm2, %vm701_vm1  ;;  %vm1850_vm15 = vsmask.f32 7424  ;;  %s4680_s15 = sshll.u32 %s6624_s29, 8  ;;  %s8712_s26 = sld [smem:[#allocation27_spill]] }
 0x12f   : > { %5358 = vmatprep.subr.bf16.mxu0 %v8380_v0  ;;  %v5706_v7 = vld [vmem:[#allocation9 + $0x28] sm:$0xff]   ;;  %v613_v8 = vshrl.u32 %v5709_v6, 16  ;;  %v571_v9 = vld [vmem:[%s6628_s19] sm:$0xff]   ;;  %v616_v12 = vshll.u32 %v5709_v6, 16  ;;  %v5708_v15 = vld [vmem:[#allocation9 + $0x38] sm:$0xff]   ;;  %s8209_s27 = scalar_lea.vmem [#allocation18], %s4680_s15 }
 0x130   : > { %v573_v13 = vld [vmem:[%s6628_s19 + $0x8] sm:$0xff]   ;;  %v575_v16 = vld [vmem:[%s6628_s19 + $0x10] sm:$0xff]   ;;  %v577_v17 = vld [vmem:[%s6628_s19 + $0x18] sm:$0xff]   ;;  %v703_v19 = vshrl.u32 %v571_v9, 16  ;;  %v706_v23 = vshll.u32 %v571_v9, 16  ;;  %s4458_s30 = sshll.u32 %s8209_s27, 4  ;;  %s8289_s30 = int_to_ptr.vmem [resolvable:$true] %s4458_s30 }
 0x131   : > { %v615_v11 = vrot.slane %v613_v8, 7  ;;  %v579_v20 = vld [vmem:[%s6628_s19 + $0x20] sm:$0xff]   ;;  %v581_v21 = vld [vmem:[%s6628_s19 + $0x28] sm:$0xff]   ;;  %v6677_v22 = vld [vmem:[%s6628_s19 + $0x30] sm:$0xff]   ;;  %v710_v24 = vshrl.u32 %v573_v13, 16  ;;  %v713_v27 = vshll.u32 %v573_v13, 16 }
 0x132   : > { %5359 = vmatpush3.bf16.msra.mxu0 %v5702_v2  ;;  %v705_v26 = vrot.slane %v703_v19, 7  ;;  %v718_v28 = vshrl.u32 %v575_v16, 16  ;;  %v721_v29 = vshll.u32 %v575_v16, 16  ;;  %v726_v30 = vshrl.u32 %v577_v17, 16  ;;  %v5727_v42 = vld [vmem:[#allocation12 + $0x40] sm:$0xff]   ;;  %v5729_v44 = vld [vmem:[#allocation12 + $0x48] sm:$0xff]  }
 0x133   : > { %5360 = vmatprep.subr.bf16.mxu0 %v8380_v0  ;;  %v618_v18 = vor.u32 %v616_v12, %v615_v11  ;;  %v712_v32 = vrot.slane %v710_v24, 7  ;;  %v729_v33 = vshll.u32 %v577_v17, 16  ;;  %v734_v34 = vshrl.u32 %v579_v20, 16  ;;  %v5728_v43 = vld [vmem:[#allocation12] sm:$0xff]   ;;  %v5730_v49 = vld [vmem:[#allocation12 + $0x8] sm:$0xff]   ;;  %4860 = vmatprep.subr.bf16.mxu1 %v5727_v42  ;;  %v5731_v51 = vld [vmem:[#allocation12 + $0x50] sm:$0xff]  }
 0x134   : > { %v708_v31 = vor.u32 %v706_v23, %v705_v26  ;;  %v742_v35 = vshrl.u32 %v581_v21, 16  ;;  %v750_v36 = vshrl.u32 %v6677_v22, 16  ;;  %v720_v39 = vrot.slane %v718_v28, 7  ;;  %v5733_v52 = vld [vmem:[#allocation12 + $0x140] sm:$0xff]   ;;  %4861 = vmatpush3.bf16.msra.mxu1 %v5728_v43  ;;  %v5732_v54 = vld [vmem:[#allocation12 + $0x10] sm:$0xff]   ;;  %v5734_v28 = vld [vmem:[#allocation12 + $0x58] sm:$0xff]  }
 0x135   : > { %v862_v25 = vsel %vm6667_vm3, 0, %v618_v18  ;;  %v715_v38 = vor.u32 %v713_v27, %v712_v32  ;;  %v728_v40 = vrot.slane %v726_v30, 7  ;;  %v737_v41 = vshll.u32 %v579_v20, 16  ;;  %4862 = vmatprep.subr.bf16.mxu1 %v5729_v44  ;;  %v585_v61 = vld [vmem:[%s6628_s19 + $0x38] sm:$0xff]   ;;  %v589_v9 = vld [vmem:[%s6628_s19 + $0x48] sm:$0xff]   ;;  %v591_v16 = vld [vmem:[%s6628_s19 + $0x50] sm:$0xff]  }
 0x136   : > { %5361 = vmatpush3.bf16.msra.mxu0 %v5703_v3  ;;  %v863_v37 = vsel %vm6667_vm3, %v615_v11, %v708_v31  ;;  %v736_v45 = vrot.slane %v734_v34, 7  ;;  %v744_v46 = vrot.slane %v742_v35, 7  ;;  %v745_v47 = vshll.u32 %v581_v21, 16  ;;  %v587_v3 = vld [vmem:[%s6628_s19 + $0x40] sm:$0xff]   ;;  %v5742_v42 = vld [vmem:[#allocation12 + $0x68] sm:$0xff]   ;;  %v5743_v43 = vld [vmem:[#allocation12 + $0x110] sm:$0xff]  }
 0x137   : > { %5362 = vmatprep.subr.bf16.mxu0 %v8380_v0  ;;  %v753_v48 = vshll.u32 %v6677_v22, 16  ;;  %v752_v50 = vrot.slane %v750_v36, 7  ;;  %v716_v53 = vsel %vm701_vm1, %v705_v26, %v715_v38  ;;  %v723_v55 = vor.u32 %v721_v29, %v720_v39  ;;  %v593_v22 = vld [vmem:[%s6628_s19 + $0x58] sm:$0xff]   ;;  %v5735_v29 = vld [vmem:[#allocation12 + $0x100] sm:$0xff]   ;;  %s4831_s25 = sshll.u32 %s8712_s26, 12  ;;  %s8713_s11 = sld [smem:[#allocation74_spill]] }
 0x138   : > { %4863 = vmatpush3.bf16.msra.mxu1 %v5730_v49  ;;  %v731_v57 = vor.u32 %v729_v33, %v728_v40  ;;  %v739_v59 = vor.u32 %v737_v41, %v736_v45  ;;  %v747_v62 = vor.u32 %v745_v47, %v744_v46  ;;  %v758_v2 = vshrl.u32 %v585_v61, 16  ;;  %v595_v30 = vld [vmem:[%s6628_s19 + $0x60] sm:$0xff]   ;;  %v597_v44 = vld [vmem:[%s6628_s19 + $0x68] sm:$0xff]   ;;  %s4442_s22 = scalar_lea.sflag [#allocation5], %s6624_s29  ;;  %s6106_s5 = scalar_lea.vmem %s8289_s30, 4096 }
 0x139   : > { %4864 = vmatprep.subr.bf16.mxu1 %v5731_v51  ;;  %v724_v56 = vsel %vm701_vm1, %v712_v32, %v723_v55  ;;  %v755_v1 = vor.u32 %v753_v48, %v752_v50  ;;  %v761_v6 = vshll.u32 %v585_v61, 16  ;;  %v766_v8 = vshrl.u32 %v587_v3, 16  ;;  %v5736_v31 = vld [vmem:[#allocation12 + $0x18] sm:$0xff]   ;;  %v5737_v32 = vld [vmem:[#allocation12 + $0x148] sm:$0xff]   ;;  %v5738_v36 = vld [vmem:[#allocation12 + $0x60] sm:$0xff]   ;;  %p6107_p12 = scmp.ne.s32.totalorder %s8289_s30, %s6106_s5  ;;  %p8715_p5 = scmp.ne.s32.totalorder %s8437_s28, 0 }
 0x13a   : > { %5363 = vmatpush3.bf16.msra.mxu0 %v5704_v4  ;;  %v732_v58 = vsel %vm701_vm1, %v720_v39, %v731_v57  ;;  %v740_v60 = vsel %vm701_vm1, %v728_v40, %v739_v59  ;;  %v748_v63 = vsel %vm701_vm1, %v736_v45, %v747_v62  ;;  %v769_v12 = vshll.u32 %v587_v3, 16  ;;  %v5740_v38 = vld [vmem:[#allocation12 + $0x20] sm:$0xff]   ;;  %v5741_v39 = vld [vmem:[#allocation12 + $0x150] sm:$0xff]   ;;  %v5744_v45 = vld [vmem:[#allocation12 + $0x28] sm:$0xff]   ;;  %s6221_s1 = smov [#allocation18]  }
 0x13b   : > { %5364 = vmatprep.subr.bf16.mxu0 %v8380_v0  ;;  %v756_v4 = vsel %vm701_vm1, %v744_v46, %v755_v1  ;;  %v768_v11 = vrot.slane %v766_v8, 7  ;;  %v777_v19 = vshll.u32 %v589_v9, 16  ;;  %v782_v21 = vshrl.u32 %v591_v16, 16  ;;  %v5745_v46 = vld [vmem:[#allocation12 + $0x158] sm:$0xff]   ;;  %v5754_v1 = vld [vmem:[#allocation12 + $0x128] sm:$0xff]   ;;  %v5757_v3 = vld [vmem:[#allocation12 + $0x170] sm:$0xff]   ;;  %p6108_p1 = pnand %p6107_p12, %p8715_p5 }
 0x13c   : > { %4865 = vmatpush3.bf16.msra.mxu1 %v5732_v54  ;;  %v790_v27 = vshrl.u32 %v593_v22, 16  ;;  %v793_v35 = vshll.u32 %v593_v22, 16  ;;  %v798_v41 = vshrl.u32 %v595_v30, 16  ;;  %v801_v49 = vshll.u32 %v595_v30, 16  ;;  %v5747_v51 = vld [vmem:[#allocation12 + $0x118] sm:$0xff]   ;;  %v5755_v8 = vld [vmem:[#allocation12 + $0xc0] sm:$0xff]  }
 0x13d   : > { %v771_v13 = vor.u32 %v769_v12, %v768_v11  ;;  %v784_v24 = vrot.slane %v782_v21, 7  ;;  %4866 = vmatprep.subr.bf16.mxu1 %v5734_v28  ;;  %v806_v55 = vshrl.u32 %v597_v44, 16  ;;  %v5750_v57 = vld [vmem:[#allocation12 + $0x78] sm:$0xff]   ;;  %s8714_s3 = smov %s8713_s11  ;;  %s8287_s9 = scalar_lea.hbm %s8713_s11, %s4831_s25 }
 0x13e   : > { %5365 = vmatpush3.bf16.msra.mxu0 %v5705_v5  ;;  %v760_v5 = vrot.slane %v758_v2, 7  ;;  %v792_v34 = vrot.slane %v790_v27, 7  ;;  %v800_v48 = vrot.slane %v798_v41, 7  ;;  %v5752_v59 = vld [vmem:[#allocation12 + $0x38] sm:$0xff]   ;;  %v8376_v2 = vmov 0   ;;  %p6109_p11 = pneg %p6108_p1  ;;  %s6110_s12 = sshll.u32 %s6221_s1, 4  ;;  %s6111_s12 = int_to_ptr.vmem [resolvable:$false] %s6110_s12 }
 0x13f   : > { %5366 = vmatprep.subr.bf16.mxu0 %v8380_v0  ;;  %v808_v62 = vrot.slane %v806_v55, 7  ;;  %3260 = vmatprep.mubr.bf16.mxu1 %v8376_v2  ;;  %v5726_v21 = vld [vmem:[%s6640_s17] sm:$0xff]   ;;  %s6112_s23 = scalar_lea.vmem %s6111_s12, 8192  ;;  %p6113_p9 = scmp.lt.s32.totalorder %s8289_s30, %s6111_s12 }
 0x140   : > { %v772_v17 = vsel %vm701_vm1, %v760_v5, %v771_v13  ;;  %4867 = vmatpush3.bf16.msra.mxu1 %v5736_v31  ;;  %v795_v40 = vor.u32 %v793_v35, %v792_v34  ;;  %v803_v54 = vor.u32 %v801_v49, %v800_v48  ;;  %v855_v28 = vshll.u32 %v5726_v21, 16  ;;  %v5763_v31 = vld [vmem:[#allocation12 + $0xd0] sm:$0xff]   ;;  %v5766_v35 = vld [vmem:[#allocation12 + $0x98] sm:$0xff]   ;;  %p6114_p10 = scmp.lt.s32.totalorder %s6112_s23, %s6106_s5 }
 0x141   : > { %4868 = vmatprep.subr.bf16.mxu1 %v5738_v36  ;;  %v5767_v36 = vld [vmem:[#allocation12 + $0xe0] sm:$0xff]  }
 0x142   : > { %5367 = vmatpush3.bf16.msra.mxu0 %v5706_v7  ;;  %v763_v7 = vor.u32 %v761_v6, %v760_v5  ;;  %v796_v47 = vsel %vm701_vm1, %v784_v24, %v795_v40  ;;  %v804_v61 = vsel %vm701_vm1, %v792_v34, %v803_v54  ;;  %v5758_v6 = vld [vmem:[#allocation12 + $0x130] sm:$0xff]   ;;  %v5765_v34 = vld [vmem:[#allocation12 + $0xd8] sm:$0xff]   ;;  %v1177_v40 = vlaneseq  ;;  %p6115_p6 = por %p6114_p10, %p6113_p9 }
 0x143   : > { %5368 = vmatprep.subr.bf16.mxu0 %v8380_v0 }
 0x144   : > { %4869 = vmatpush3.bf16.msra.mxu1 %v5740_v38  ;;  %v5769_v38 = vld [vmem:[#allocation12 + $0xe8] sm:$0xff]   ;;  %v6752_v41 = vshrl.u32 %v1177_v40, 7  ;;  %p6116_p0 = pnand %p6115_p6, %p6109_p11 }
 0x145   : > { %4870 = vmatprep.subr.bf16.mxu1 %v5742_v42  ;;  %v5771_v42 = vld [vmem:[#allocation12 + $0xf0] sm:$0xff]  }
 0x146   : > { %5369 = vmatpush3.bf16.msra.mxu0 %v5707_v10  ;;  %v764_v10 = vsel %vm701_vm1, %v752_v50, %v763_v7  ;;  %v5746_v50 = vld [vmem:[#allocation12 + $0x70] sm:$0xff]   ;;  %v1179_v14 = vadd.s32 8, %v6752_v41  ;;  %v1180_v54 = vadd.s32 16, %v6752_v41 }
 0x147   : > { %5370 = vmatprep.subr.bf16.mxu0 %v8380_v0  ;;  %v601_v7 = vld [vmem:[%s6628_s19 + $0x78] sm:$0xff]  }
 0x148   : > { %4871 = vmatpush3.bf16.msra.mxu1 %v5744_v45  ;;  %v1221_v45 = vand.u32 15, %v1179_v14 }
 0x149   : > { %4872 = vmatprep.subr.bf16.mxu1 %v5746_v50 }
 0x14a   : > { %5371 = vmatpush3.bf16.msra.mxu0 %v5708_v15  ;;  %v774_v15 = vshrl.u32 %v589_v9, 16  ;;  %v5756_v9 = vld [vmem:[#allocation12 + $0x80] sm:$0xff]   ;;  %vm1707_vm4 = vcmp.lt.s32.totalorder %v1221_v45, 15  ;;  %v1191_v45 = vadd.s32 104, %v6752_v41 }
 0x14b   : > { %5084 = vmatprep.subr.bf16.mxu0 %v5733_v52  ;;  %v5748_v52 = vld [vmem:[#allocation12 + $0x30] sm:$0xff]  }
 0x14c   : > { %v776_v18 = vrot.slane %v774_v15, 7  ;;  %4873 = vmatpush3.bf16.msra.mxu1 %v5748_v52  ;;  %v5760_v15 = vld [vmem:[#allocation12 + $0x138] sm:$0xff]   ;;  %v1187_v52 = vadd.s32 72, %v6752_v41 }
 0x14d   : > { %5373 = vmatmul.mubr.bf16.vlgmr.msra.gmra.mrb[0].mxu0 %v862_v25  ;;  %v785_v25 = vshll.u32 %v591_v16, 16  ;;  %4874 = vmatprep.subr.bf16.mxu1 %v5750_v57  ;;  %v1182_v57 = vadd.s32 32, %v6752_v41 }
 0x14e   : > { %5376 = vmatprep.mubr.msk.bf16.mxu0 %vm6218_vm0, %v8380_v0  ;;  %v779_v20 = vor.u32 %v777_v19, %v776_v18  ;;  %5085 = vmatpush3.bf16.msra.mxu0 %v5735_v29 }
 0x14f   : > { %v787_v26 = vor.u32 %v785_v25, %v784_v24  ;;  %5086 = vmatprep.subr.bf16.mxu0 %v5737_v32  ;;  %v5761_v24 = vld [vmem:[#allocation12 + $0xc8] sm:$0xff]   ;;  %v5764_v32 = vld [vmem:[#allocation12 + $0x90] sm:$0xff]  }
 0x150   : > { %v780_v23 = vsel %vm701_vm1, %v768_v11, %v779_v20  ;;  %4875 = vmatpush3.bf16.msra.mxu1 %v5752_v59  ;;  %v825_v20 = vshll.u32 %v601_v7, 16  ;;  %v5762_v25 = vld [vmem:[#allocation12 + $0x88] sm:$0xff]  }
 0x151   : > { %v788_v33 = vsel %vm701_vm1, %v776_v18, %v787_v26  ;;  %4972 = vmatprep.subr.bf16.mxu1 %v5755_v8  ;;  %v1184_v8 = vadd.s32 48, %v6752_v41 }
 0x153   : > { %3261 = vmatmul.mubr.bf16.vlgmr.msra.gmra.mrb[0].mxu1 %v8376_v2 }
 0x154   : > { %4973 = vmatpush3.bf16.msra.mxu1 %v5756_v9  ;;  %v5775_v9 = vld [vmem:[#allocation12 + $0xf8] sm:$0xff]  }
 0x155   : > { %5377 = vmatmul.mubr.bf16.gmra.mrb[4].mxu0 %v863_v37  ;;  %v5739_v37 = vld [vmem:[#allocation12 + $0x108] sm:$0xff]   ;;  %4974 = vmatprep.subr.bf16.mxu1 %v5761_v24 }
 0x156   : > { %5380 = vmatprep.mubr.msk.bf16.mxu0 %vm6218_vm0, %v8380_v0  ;;  %5087 = vmatpush3.bf16.msra.mxu0 %v5739_v37  ;;  %v5768_v37 = vld [vmem:[#allocation12 + $0xa0] sm:$0xff]  }
 0x157   : > { %5088 = vmatprep.subr.bf16.mxu0 %v5741_v39  ;;  %v5770_v39 = vld [vmem:[#allocation12 + $0xa8] sm:$0xff]  }
 0x158   : > { %4975 = vmatpush3.bf16.msra.mxu1 %v5762_v25 }
 0x159   : > { %4976 = vmatprep.subr.bf16.mxu1 %v5763_v31 }
 0x15a   : > { %5089 = vmatpush3.bf16.msra.mxu0 %v5743_v43  ;;  %v5772_v43 = vld [vmem:[#allocation12 + $0xb0] sm:$0xff]  }
 0x15b   : > { %5090 = vmatprep.subr.bf16.mxu0 %v5745_v46  ;;  %v1183_v46 = vadd.s32 40, %v6752_v41 }
 0x15c   : > { %4977 = vmatpush3.bf16.msra.mxu1 %v5764_v32 }
 0x15d   : > { %5381 = vmatmul.mubr.bf16.gmra.mrb[8].mxu0 %v716_v53  ;;  %v5749_v53 = vld [vmem:[#allocation12 + $0x160] sm:$0xff]   ;;  %4978 = vmatprep.subr.bf16.mxu1 %v5765_v34  ;;  %v1249_v49 = vand.u32 15, %v1183_v46 }
 0x15e   : > { %5384 = vmatprep.mubr.msk.bf16.mxu0 %vm6218_vm0, %v8380_v0  ;;  %5091 = vmatpush3.bf16.msra.mxu0 %v5747_v51  ;;  %v1185_v51 = vadd.s32 56, %v6752_v41 }
 0x15f   : > { %5092 = vmatprep.subr.bf16.mxu0 %v5749_v53  ;;  %vm1711_vm6 = vcmp.lt.s32.totalorder %v1249_v49, 15 }
 0x160   : > { %4979 = vmatpush3.bf16.msra.mxu1 %v5766_v35 }
 0x161   : > { %4980 = vmatprep.subr.bf16.mxu1 %v5767_v36 }
 0x164   : > { %4981 = vmatpush3.bf16.msra.mxu1 %v5768_v37 }
 0x165   : > { %5385 = vmatmul.mubr.bf16.gmra.mrb[12].mxu0 %v724_v56  ;;  %v599_v56 = vld [vmem:[%s6628_s19 + $0x70] sm:$0xff]   ;;  %4982 = vmatprep.subr.bf16.mxu1 %v5769_v38 }
 0x166   : > { %5388 = vmatprep.mubr.msk.bf16.mxu0 %vm6218_vm0, %v8380_v0  ;;  %v814_v5 = vshrl.u32 %v599_v56, 16  ;;  %v817_v13 = vshll.u32 %v599_v56, 16  ;;  %v4724_v56 = vsel %vm1707_vm4, 1.0, %v8380_v0 }
 0x168   : > { %v816_v12 = vrot.slane %v814_v5, 7  ;;  %4983 = vmatpush3.bf16.msra.mxu1 %v5770_v39  ;;  %v4726_v5 = vsel %vm1711_vm6, 1.0, %v8380_v0 }
 0x169   : > { %4984 = vmatprep.subr.bf16.mxu1 %v5771_v42 }
 0x16a   : > { %v819_v16 = vor.u32 %v817_v13, %v816_v12 }
 0x16c   : > { %v820_v18 = vsel %vm701_vm1, %v808_v62, %v819_v16  ;;  %4985 = vmatpush3.bf16.msra.mxu1 %v5772_v43  ;;  %v1189_v16 = vadd.s32 88, %v6752_v41 }
 0x16d   : > { %5389 = vmatmul.mubr.bf16.gmra.mrb[16].mxu0 %v732_v58  ;;  %v5751_v58 = vld [vmem:[#allocation12 + $0x120] sm:$0xff]   ;;  %4986 = vmatprep.subr.bf16.mxu1 %v5775_v9 }
 0x16e   : > { %5392 = vmatprep.mubr.msk.bf16.mxu0 %vm6218_vm0, %v8380_v0  ;;  %5093 = vmatpush3.bf16.msra.mxu0 %v5751_v58 }
 0x175   : > { %5393 = vmatmul.mubr.bf16.gmra.mrb[20].mxu0 %v740_v60  ;;  %v5753_v60 = vld [vmem:[#allocation12 + $0x168] sm:$0xff]  }
 0x176   : > { %5396 = vmatprep.mubr.msk.bf16.mxu0 %vm6218_vm0, %v8380_v0  ;;  %5094 = vmatprep.subr.bf16.mxu0 %v5753_v60  ;;  %v1263_v60 = vand.u32 15, %v1185_v51 }
 0x177   : > { %5095 = vmatpush3.bf16.msra.mxu0 %v5754_v1  ;;  %v1228_v1 = vand.u32 15, %v1180_v54 }
 0x178   : > { %5096 = vmatprep.subr.bf16.mxu0 %v5757_v3  ;;  %v6767_v3 = vld [vmem:[#allocation11] ss:$0 sm:$0xff]  ;;  %vm6773_vm7 = vcmp.lt.s32.totalorder %v1263_v60, 15 }
 0x179   : > { %vm1596_vm9 = vcmp.gt.s32.totalorder %v1228_v1, 0  ;;  %v4727_v25 = vsel %vm6773_vm7, 1.0, %v8380_v0  ;;  %v1305_v1 = vand.u32 15, %v1191_v45  ;;  %v6890_v45 = vadd.s32 136, %v6752_v41 }
 0x17b   : > { %5097 = vmatpush3.bf16.msra.mxu0 %v5758_v6  ;;  %v1242_v6 = vand.u32 15, %v1182_v57 }
 0x17d   : > { %5397 = vmatmul.mubr.bf16.gmra.mrb[24].mxu0 %v748_v63  ;;  %v809_v63 = vshll.u32 %v597_v44, 16  ;;  %v1181_v44 = vadd.s32 24, %v6752_v41  ;;  %vm1598_vm10 = vcmp.gt.s32.totalorder %v1242_v6, 0 }
 0x17e   : > { %5400 = vmatprep.mubr.msk.bf16.mxu0 %vm6218_vm0, %v8380_v0  ;;  %v4710_v34 = vsel %vm1598_vm10, 1.0, %v8380_v0 }
 0x185   : > { %5401 = vmatmul.mubr.bf16.gmra.mrb[28].mxu0 %v756_v4  ;;  %v811_v4 = vor.u32 %v809_v63, %v808_v62  ;;  %v8378_v62 = vmov 1.0  }
 0x186   : > { %5404 = vmatprep.mubr.msk.bf16.mxu0 %vm6218_vm0, %v8380_v0  ;;  %v1802_v63 = vpack.c.bf16 %v4724_v56, %v8378_v62  ;;  %v1805_v35 = vpack.c.bf16 %v4727_v25, %v8378_v62 }
 0x187   : > { %v812_v11 = vsel %vm701_vm1, %v800_v48, %v811_v4  ;;  %v6757_v48 = vld [vmem:[#allocation12 + $0x200] sm:$0xff]  }
 0x18d   : > { %5405 = vmatmul.mubr.bf16.gmra.mrb[32].mxu0 %v764_v10  ;;  %v5759_v10 = vld [vmem:[#allocation12 + $0x178] sm:$0xff]  }
 0x18e   : > { %5408 = vmatprep.mubr.msk.bf16.mxu0 %vm6218_vm0, %v8380_v0  ;;  %5098 = vmatprep.subr.bf16.mxu0 %v5759_v10  ;;  %v5776_v10 = vld [vmem:[#allocation12 + $0xb8] sm:$0xff]  }
 0x18f   : > { %5099 = vmatpush3.bf16.msra.mxu0 %v5760_v15  ;;  %v1186_v15 = vadd.s32 64, %v6752_v41  ;;  %4987 = vmatpush3.bf16.msra.mxu1 %v5776_v10 }
 0x190   : > { %5448 = vmatprep.subr.bf16.mxu0 %v6757_v48 }
 0x195   : > { %5409 = vmatmul.mubr.bf16.gmra.mrb[36].mxu0 %v772_v17  ;;  %v822_v17 = vshrl.u32 %v601_v7, 16  ;;  %v1214_v7 = vand.u32 15, %v6752_v41 }
 0x196   : > { %5412 = vmatprep.mubr.msk.bf16.mxu0 %vm6218_vm0, %v8380_v0 }
 0x197   : > { %v824_v19 = vrot.slane %v822_v17, 7  ;;  %vm1594_vm11 = vcmp.gt.s32.totalorder %v1214_v7, 0 }
 0x198   : > { %v4708_v37 = vsel %vm1594_vm11, 1.0, %v8380_v0 }
 0x199   : > { %v827_v22 = vor.u32 %v825_v20, %v824_v19  ;;  %v6828_v51 = vpack.c.bf16 %v8378_v62, %v4708_v37 }
 0x19b   : > { %v828_v26 = vsel %vm701_vm1, %v816_v12, %v827_v22  ;;  %v5781_v12 = vld [vmem:[#allocation12 + $0x1c0] sm:$0xff]  }
 0x19c   : > { %5196 = vmatprep.subr.bf16.mxu1 %v5781_v12 }
 0x19d   : > { %5413 = vmatmul.mubr.bf16.gmra.mrb[40].mxu0 %v780_v23  ;;  %v852_v23 = vshrl.u32 %v5726_v21, 16  ;;  %v6785_v21 = vrot.slane %v1802_v63, 7 }
 0x19e   : > { %5416 = vmatprep.mubr.msk.bf16.mxu0 %vm6218_vm0, %v8380_v0 }
 0x19f   : > { %v854_v27 = vrot.slane %v852_v23, 7 }
 0x1a1   : > { %v857_v29 = vor.u32 %v855_v28, %v854_v27  ;;  %v4709_v28 = vsel %vm1596_vm9, 1.0, %v8380_v0 }
 0x1a2   : > { %v6808_v40 = vpack.c.bf16 %v8378_v62, %v4709_v28 }
 0x1a3   : > { %v864_v30 = vsel %vm6667_vm3, %v824_v19, %v857_v29  ;;  %v1804_v19 = vpack.c.bf16 %v4726_v5, %v8378_v62  ;;  %v1270_v29 = vand.u32 15, %v1186_v15  ;;  %v1193_v5 = vadd.s32 120, %v6752_v41 }
 0x1a5   : > { %5417 = vmatmul.mubr.bf16.gmra.mrb[44].mxu0 %v788_v33  ;;  %v865_v33 = vsel %vm6667_vm3, %v854_v27, 0  ;;  %vm6810_vm13 = vcmp.gt.s32.totalorder %v1270_v29, 0  ;;  %vm6869_vm3 = vcmp.lt.s32.totalorder %v1305_v1, 15 }
 0x1a6   : > { %5420 = vmatprep.mubr.msk.bf16.mxu0 %vm6218_vm0, %v8380_v0  ;;  %v4712_v60 = vsel %vm6810_vm13, 1.0, %v8380_v0 }
 0x1ad   : > { %5421 = vmatmul.mubr.bf16.gmra.mrb[48].mxu0 %v796_v47  ;;  %v1235_v47 = vand.u32 15, %v1181_v44  ;;  %v1188_v44 = vadd.s32 80, %v6752_v41 }
 0x1ae   : > { %5424 = vmatprep.mubr.msk.bf16.mxu0 %vm6218_vm0, %v8380_v0 }
 0x1af   : > { %vm1709_vm5 = vcmp.lt.s32.totalorder %v1235_v47, 15  ;;  %v1284_v63 = vand.u32 15, %v1188_v44 }
 0x1b0   : > { %v4725_v59 = vsel %vm1709_vm5, 1.0, %v8380_v0 }
 0x1b1   : > { %v1803_v4 = vpack.c.bf16 %v4725_v59, %v8378_v62  ;;  %vm6865_vm1 = vcmp.gt.s32.totalorder %v1284_v63, 0 }
 0x1b3   : > { %v2032_v22 = vrot.slane %v1803_v4, 7  ;;  %v1190_v4 = vadd.s32 96, %v6752_v41 }
 0x1b5   : > { %5425 = vmatmul.mubr.bf16.gmra.mrb[52].mxu0 %v804_v61  ;;  %v1277_v61 = vand.u32 15, %v1187_v52  ;;  %v6805_v39 = vsel %vm860_vm2, %v6785_v21, %v2032_v22 }
 0x1b6   : > { %5428 = vmatprep.mubr.msk.bf16.mxu0 %vm6218_vm0, %v8380_v0 }
 0x1b7   : > { %vm6777_vm8 = vcmp.lt.s32.totalorder %v1277_v61, 15 }
 0x1b8   : > { %v4728_v27 = vsel %vm6777_vm8, 1.0, %v8380_v0 }
 0x1b9   : > { %v6798_v36 = vpack.c.bf16 %v4728_v27, %v8378_v62 }
 0x1bd   : > { %5429 = vmatmul.mubr.bf16.gmra.mrb[56].mxu0 %v812_v11 }
 0x1be   : > { %5432 = vmatprep.mubr.msk.bf16.mxu0 %vm6218_vm0, %v8380_v0 }
 0x1c5   : > { %5433 = vmatmul.mubr.bf16.gmra.mrb[60].mxu0 %v820_v18 }
 0x1c6   : > { %5436 = vmatprep.mubr.msk.bf16.mxu0 %vm6218_vm0, %v8380_v0 }
 0x1cd   : > { %5437 = vmatmul.mubr.bf16.gmra.mrb[64].mxu0 %v828_v26  ;;  %v1256_v26 = vand.u32 15, %v1184_v8 }
 0x1ce   : > { %5440 = vmatprep.mubr.msk.bf16.mxu0 %vm6218_vm0, %v8380_v0 }
 0x1cf   : > { %vm1600_vm12 = vcmp.gt.s32.totalorder %v1256_v26, 0 }
 0x1d0   : > { %v4711_v54 = vsel %vm1600_vm12, 1.0, %v8380_v0 }
 0x1d1   : > { %v6850_v10 = vpack.c.bf16 %v8378_v62, %v4711_v54 }
 0x1d5   : > { %5441 = vmatmul.mubr.bf16.gmra.mrb[68].mxu0 %v864_v30  ;;  %v1291_v30 = vand.u32 15, %v1189_v16 }
 0x1d6   : > { %5444 = vmatprep.mubr.msk.bf16.mxu0 %vm6218_vm0, %v8380_v0  ;;  %vm2113_vm0 = vcmask 1046528  }
 0x1d7   : > { %vm6814_vm14 = vcmp.lt.s32.totalorder %v1291_v30, 15 }
 0x1d8   : > { %v4729_v61 = vsel %vm6814_vm14, 1.0, %v8380_v0 }
 0x1dd   : > { %5445 = vmatmul.mubr.bf16.gmra.mrb[72].mxu0 %v865_v33  ;;  %v2034_v33 = vrot.slane %v1804_v19, 7 }
 0x1df   : > { %v6822_v49 = vsel %vm860_vm2, %v2032_v22, %v2034_v33  ;;  %v1298_v22 = vand.u32 15, %v1190_v4 }
 0x1e1   : > { %vm6904_vm4 = vcmp.gt.s32.totalorder %v1298_v22, 0 }
 0x220   : > { %v971_v50 = vpop.f32.mrb[0].mxu0 }
 0x221   : > { %v5374_v53 = vpop.f32.mrb[1].mxu0  ;;  %v6825_v50 = vpack.c.bf16 %v8378_v62, %v4710_v34 }
 0x222   : > { %v974_v55 = vpop.f32.mrb[2].mxu0  ;;  %v2036_v53 = vrot.slane %v1805_v35, 7 }
 0x223   : > { %v5375_v58 = vpop.f32.mrb[3].mxu0  ;;  %v2038_v55 = vrot.slane %v6798_v36, 7 }
 0x224   : > { %v6847_v9 = vsel %vm860_vm2, %v2034_v33, %v2036_v53 }
 0x225   : > { %v6860_v16 = vsel %vm860_vm2, %v2036_v53, %v2038_v55 }
 0x228   : > { %v979_v11 = vpop.f32.mrb[4].mxu0 }
 0x229   : > { %v980_v17 = vadd.f32 %v6767_v3, %v979_v11  ;;  %v5378_v18 = vpop.f32.mrb[5].mxu0  ;;  %v6853_v11 = vpack.c.bf16 %v8378_v62, %v4712_v60 }
 0x22a   : > { %v982_v20 = vpop.f32.mrb[6].mxu0 }
 0x22b   : > { %v983_v23 = vadd.f32 %v6767_v3, %v982_v20  ;;  %v5379_v24 = vpop.f32.mrb[7].mxu0  ;;  %v1123_v31 = vmax.f32 %v980_v17, 0.0  ;;  %v6863_v17 = vpack.c.bf16 %v4729_v61, %v8378_v62 }
 0x22d   : > { %v1124_v32 = vmax.f32 %v983_v23, 0.0  ;;  %v1319_v23 = vand.u32 15, %v1193_v5  ;;  %v2040_v44 = vrot.slane %v6863_v17, 7 }
 0x22f   : > { %v6801_v38 = vpack.c.bf16 %v1124_v32, %v1123_v31  ;;  %v6879_v31 = vadd.s32 112, %v6752_v41  ;;  %vm6908_vm5 = vcmp.lt.s32.totalorder %v1319_v23, 15  ;;  %v5777_v23 = vld [vmem:[#allocation12 + $0x210] sm:$0xff]  }
 0x230   : > { %v987_v14 = vpop.f32.mrb[8].mxu0 }
 0x231   : > { %v988_v46 = vadd.f32 %v6767_v3, %v987_v14  ;;  %v5382_v47 = vpop.f32.mrb[9].mxu0  ;;  %v2080_v56 = vmul.bf16 %v6805_v39, %v6801_v38  ;;  %v1859_v59 = vshll.u32 %v6801_v38, 16  ;;  %v2236_v8 = vmul.bf16 %v6785_v21, %v6801_v38 }
 0x232   : > { %v990_v52 = vpop.f32.mrb[10].mxu0  ;;  %v1863_v26 = vshrl.u32 %v6801_v38, 16  ;;  %v1819_v43 = vmul.bf16 %v6808_v40, %v6801_v38  ;;  %v1312_v5 = vand.u32 15, %v6879_v31 }
 0x233   : > { %v991_v57 = vadd.f32 %v6767_v3, %v990_v52  ;;  %v5383_v58 = vpop.f32.mrb[11].mxu0  ;;  %v1125_v6 = vmax.f32 %v988_v46, 0.0  ;;  %v1861_v15 = vrot.slane %v1859_v59, 1  ;;  %v2270_v30 = vrot.slane %v2236_v8, 1 }
 0x234   : > { %v4713_v58 = vsel %vm6865_vm1, 1.0, %v8380_v0  ;;  %v4730_v59 = vsel %vm6869_vm3, 1.0, %v8380_v0  ;;  %v2115_v60 = vrot.slane %v2080_v56, 1  ;;  %v6915_v56 = vadd.s32 128, %v6752_v41 }
 0x235   : > { %v1126_v7 = vmax.f32 %v991_v57, 0.0  ;;  %v1865_v37 = vor.u32 %v1863_v26, %v1861_v15  ;;  %v5774_v57 = vld [vmem:[#allocation12 + $0x208] sm:$0xff]   ;;  %vm6973_vm6 = vcmp.gt.s32.totalorder %v1312_v5, 0  ;;  %v5779_v5 = vld [vmem:[#allocation12 + $0x220] sm:$0xff]  }
 0x237   : > { %v6855_v13 = vpack.c.bf16 %v1126_v7, %v1125_v6  ;;  %v1333_v7 = vand.u32 15, %v6890_v45 }
 0x238   : > { %v995_v18 = vpop.f32.mrb[12].mxu0 }
 0x239   : > { %v996_v24 = vadd.f32 %v6767_v3, %v995_v18  ;;  %v5386_v25 = vpop.f32.mrb[13].mxu0  ;;  %v1867_v27 = vshll.u32 %v6855_v13, 16  ;;  %v2237_v28 = vmul.bf16 %v6805_v39, %v6855_v13  ;;  %v2081_v46 = vmul.bf16 %v6822_v49, %v6855_v13 }
 0x23a   : > { %v998_v29 = vpop.f32.mrb[14].mxu0  ;;  %v2392_v8 = vmul.bf16 %v6785_v21, %v6855_v13  ;;  %v1871_v19 = vshrl.u32 %v6855_v13, 16  ;;  %vm6977_vm7 = vcmp.lt.s32.totalorder %v1333_v7, 15 }
 0x23b   : > { %v999_v34 = vadd.f32 %v6767_v3, %v998_v29  ;;  %v5387_v35 = vpop.f32.mrb[15].mxu0  ;;  %v1869_v14 = vrot.slane %v1867_v27, 1  ;;  %v2271_v42 = vrot.slane %v2237_v28, 1  ;;  %v1127_v47 = vmax.f32 %v996_v24, 0.0 }
 0x23c   : > { %v2117_v61 = vrot.slane %v2081_v46, 1 }
 0x23d   : > { %v1128_v52 = vmax.f32 %v999_v34, 0.0  ;;  %v1870_v53 = vsel %vm1850_vm15, %v1865_v37, %v1869_v14  ;;  %v2272_v54 = vsel %vm2113_vm0, %v2270_v30, %v2271_v42  ;;  %v1873_v29 = vor.u32 %v1871_v19, %v1869_v14 }
 0x23e   : > { %3268 = vmatprep.mubr.bf16.mxu1 %v1870_v53  ;;  %3582 = vmatprep.mubr.bf16.mxu0 %v2272_v54  ;;  %v6921_v12 = vsel %vm2113_vm0, %v2115_v60, %v2117_v61  ;;  %v2426_v34 = vrot.slane %v2392_v8, 1  ;;  %v6945_v14 = vpack.c.bf16 %v8378_v62, %v4713_v58  ;;  %v6965_v58 = vpack.c.bf16 %v4730_v59, %v8378_v62 }
 0x23f   : > { %v6902_v63 = vpack.c.bf16 %v1128_v52, %v1127_v47  ;;  %3269 = vmatmul.mubr.bf16.gmra.mrb[4].mxu1 %v1819_v43  ;;  %3583 = vmatmul.mubr.bf16.vlgmr.msra.gmra.mrb[76].mxu0 %v1870_v53  ;;  %v5778_v52 = vld [vmem:[#allocation12 + $0x218] sm:$0xff]   ;;  %v1197_v53 = vadd.s32 152, %v6752_v41  ;;  %v4731_v8 = vsel %vm6908_vm5, 1.0, %v8380_v0 }
 0x240   : > { %v1003_v6 = vpop.f32.mrb[16].mxu0  ;;  %5449 = vmatpush3.bf16.msra.mxu0 %v6757_v48  ;;  %v1820_v48 = vmul.bf16 %v6825_v50, %v6855_v13  ;;  %8478 = vst [vmem:[#allocation35_spill] sm:$0xff] %v6945_v14 }
 0x241   : > { %v1004_v15 = vadd.f32 %v6767_v3, %v1003_v6  ;;  %v5390_v18 = vpop.f32.mrb[17].mxu0  ;;  %v1875_v20 = vshll.u32 %v6902_v63, 16  ;;  %v2238_v22 = vmul.bf16 %v6822_v49, %v6902_v63  ;;  %5450 = vmatprep.subr.bf16.mxu0 %v5774_v57  ;;  %v2393_v21 = vmul.bf16 %v6805_v39, %v6902_v63 }
 0x242   : > { %v1006_v24 = vpop.f32.mrb[18].mxu0  ;;  %v2082_v26 = vmul.bf16 %v6847_v9, %v6902_v63  ;;  %v1879_v18 = vshrl.u32 %v6902_v63, 16  ;;  %v1347_v7 = vand.u32 15, %v1197_v53 }
 0x243   : > { %v1007_v27 = vadd.f32 %v6767_v3, %v1006_v24  ;;  %v5391_v28 = vpop.f32.mrb[19].mxu0  ;;  %v1877_v30 = vrot.slane %v1875_v20, 1  ;;  %v2273_v31 = vrot.slane %v2238_v22, 1  ;;  %v2427_v35 = vrot.slane %v2393_v21, 1 }
 0x244   : > { %5451 = vmatpush3.bf16.msra.mxu0 %v5774_v57  ;;  %v2119_v37 = vrot.slane %v2082_v26, 1  ;;  %v1129_v39 = vmax.f32 %v1004_v15, 0.0  ;;  %v1821_v28 = vmul.bf16 %v6850_v10, %v6902_v63  ;;  %vm7030_vm9 = vcmp.lt.s32.totalorder %v1347_v7, 15 }
 0x245   : > { %v1130_v45 = vmax.f32 %v1007_v27, 0.0  ;;  %v6940_v46 = vsel %vm1850_vm15, %v1873_v29, %v1877_v30  ;;  %v2274_v47 = vsel %vm2113_vm0, %v2271_v42, %v2273_v31  ;;  %5452 = vmatprep.subr.bf16.mxu0 %v5777_v23  ;;  %v6949_v54 = vsel %vm2113_vm0, %v2426_v34, %v2427_v35 }
 0x246   : > { %8477 = vst [vmem:[#allocation34_spill] sm:$0xff] %v6940_v46  ;;  %3276 = vmatprep.mubr.bf16.mxu1 %v6940_v46  ;;  %3590 = vmatprep.mubr.bf16.mxu0 %v2274_v47  ;;  %v6952_v57 = vsel %vm2113_vm0, %v2117_v61, %v2119_v37  ;;  %v6962_v42 = vsel %vm860_vm2, %v2038_v55, %v2040_v44  ;;  %v4714_v61 = vsel %vm6904_vm4, 1.0, %v8380_v0  ;;  %v1326_v55 = vand.u32 15, %v6915_v56 }
 0x247   : > { %v6954_v60 = vpack.c.bf16 %v1130_v45, %v1129_v39  ;;  %3277 = vmatmul.mubr.bf16.gmra.mrb[8].mxu1 %v1820_v48  ;;  %3591 = vmatmul.mubr.bf16.gmra.mrb[80].mxu0 %v6940_v46  ;;  %v1881_v21 = vor.u32 %v1879_v18, %v1877_v30  ;;  %v5780_v30 = vld [vmem:[#allocation12 + $0x228] sm:$0xff]  }
 0x248   : > { %v1011_v6 = vpop.f32.mrb[20].mxu0  ;;  %5453 = vmatpush3.bf16.msra.mxu0 %v5777_v23  ;;  %vm7026_vm8 = vcmp.gt.s32.totalorder %v1326_v55, 0 }
 0x249   : > { %v1012_v59 = vadd.f32 %v6767_v3, %v1011_v6  ;;  %v5394_v1 = vpop.f32.mrb[21].mxu0  ;;  %v1883_v19 = vshll.u32 %v6954_v60, 16  ;;  %v2239_v4 = vmul.bf16 %v6847_v9, %v6954_v60  ;;  %5454 = vmatprep.subr.bf16.mxu0 %v5778_v52  ;;  %v2394_v22 = vmul.bf16 %v6822_v49, %v6954_v60 }
 0x24a   : > { %v1014_v20 = vpop.f32.mrb[22].mxu0  ;;  %v2083_v23 = vmul.bf16 %v6860_v16, %v6954_v60  ;;  %v2042_v6 = vrot.slane %v6965_v58, 7  ;;  %v1822_v49 = vmul.bf16 %v6853_v11, %v6954_v60 }
 0x24b   : > { %v1015_v24 = vadd.f32 %v6767_v3, %v1014_v20  ;;  %v5395_v48 = vpop.f32.mrb[23].mxu0  ;;  %v1885_v26 = vrot.slane %v1883_v19, 1  ;;  %v2275_v27 = vrot.slane %v2239_v4, 1  ;;  %v2429_v29 = vrot.slane %v2394_v22, 1 }
 0x24c   : > { %5455 = vmatpush3.bf16.msra.mxu0 %v5778_v52  ;;  %v2121_v34 = vrot.slane %v2083_v23, 1  ;;  %v1131_v39 = vmax.f32 %v1012_v59, 0.0  ;;  %v1199_v52 = vadd.s32 168, %v6752_v41  ;;  %v7018_v19 = vpack.c.bf16 %v4731_v8, %v8378_v62 }
 0x24d   : > { %v1132_v45 = vmax.f32 %v1015_v24, 0.0  ;;  %v6999_v47 = vsel %vm1850_vm15, %v1881_v21, %v1885_v26  ;;  %v2276_v53 = vsel %vm2113_vm0, %v2273_v31, %v2275_v27  ;;  %5456 = vmatprep.subr.bf16.mxu0 %v5779_v5  ;;  %v7006_v1 = vsel %vm2113_vm0, %v2427_v35, %v2429_v29  ;;  %v5783_v24 = vld [vmem:[#allocation12 + $0x230] sm:$0xff]  }
 0x24e   : > { %8483 = vst [vmem:[#allocation36_spill] sm:$0xff] %v6999_v47  ;;  %3284 = vmatprep.mubr.bf16.mxu1 %v6999_v47  ;;  %3598 = vmatprep.mubr.bf16.mxu0 %v2276_v53  ;;  %v7009_v59 = vsel %vm2113_vm0, %v2119_v37, %v2121_v34  ;;  %v7015_v31 = vpack.c.bf16 %v8378_v62, %v4714_v61  ;;  %v4715_v4 = vsel %vm6973_vm6, 1.0, %v8380_v0  ;;  %v4732_v37 = vsel %vm6977_vm7, 1.0, %v8380_v0 }
 0x24f   : > { %v7011_v18 = vpack.c.bf16 %v1132_v45, %v1131_v39  ;;  %3285 = vmatmul.mubr.bf16.gmra.mrb[12].mxu1 %v1821_v28  ;;  %3599 = vmatmul.mubr.bf16.gmra.mrb[84].mxu0 %v6999_v47  ;;  %v7035_v61 = vadd.s32 144, %v6752_v41  ;;  %v1887_v23 = vshrl.u32 %v6954_v60, 16  ;;  %v1361_v48 = vand.u32 15, %v1199_v52 }
 0x250   : > { %8484 = vst [vmem:[#allocation37_spill] sm:$0xff] %v7015_v31  ;;  %v1019_v35 = vpop.f32.mrb[24].mxu0  ;;  %5457 = vmatpush3.bf16.msra.mxu0 %v5779_v5  ;;  %v7077_v17 = vpack.c.bf16 %v8378_v62, %v4715_v4 }
 0x251   : > { %v1020_v8 = vadd.f32 %v6767_v3, %v1019_v35  ;;  %v5398_v15 = vpop.f32.mrb[25].mxu0  ;;  %v1891_v36 = vshll.u32 %v7011_v18, 16  ;;  %v2240_v55 = vmul.bf16 %v6860_v16, %v7011_v18  ;;  %5458 = vmatprep.subr.bf16.mxu0 %v5780_v30  ;;  %v2395_v21 = vmul.bf16 %v6847_v9, %v7011_v18 }
 0x252   : > { %v1022_v7 = vpop.f32.mrb[26].mxu0  ;;  %v2084_v28 = vmul.bf16 %v6962_v42, %v7011_v18  ;;  %v1889_v53 = vor.u32 %v1887_v23, %v1885_v26  ;;  %v5784_v26 = vld [vmem:[#allocation12 + $0x238] sm:$0xff]   ;;  %8491 = vst [vmem:[#allocation40_spill] sm:$0xff] %v7077_v17  ;;  %vm7089_vm10 = vcmp.lt.s32.totalorder %v1361_v48, 15  ;;  %v1823_v9 = vmul.bf16 %v6945_v14, %v7011_v18 }
 0x253   : > { %v1023_v39 = vadd.f32 %v6767_v3, %v1022_v7  ;;  %v5399_v45 = vpop.f32.mrb[27].mxu0  ;;  %v1893_v35 = vrot.slane %v1891_v36, 1  ;;  %v2277_v15 = vrot.slane %v2240_v55, 1  ;;  %v2431_v52 = vrot.slane %v2395_v21, 1 }
 0x254   : > { %5459 = vmatpush3.bf16.msra.mxu0 %v5780_v30  ;;  %v2123_v43 = vrot.slane %v2084_v28, 1  ;;  %v1133_v32 = vmax.f32 %v1020_v8, 0.0  ;;  %v7063_v30 = vsel %vm860_vm2, %v2040_v44, %v2042_v6  ;;  %v1201_v8 = vadd.s32 184, %v6752_v41 }
 0x255   : > { %v1134_v5 = vmax.f32 %v1023_v39, 0.0  ;;  %v7054_v56 = vsel %vm1850_vm15, %v1889_v53, %v1893_v35  ;;  %v2278_v7 = vsel %vm2113_vm0, %v2275_v27, %v2277_v15  ;;  %5460 = vmatprep.subr.bf16.mxu0 %v5783_v24  ;;  %v7067_v23 = vsel %vm2113_vm0, %v2429_v29, %v2431_v52 }
 0x256   : > { %8489 = vst [vmem:[#allocation38_spill] sm:$0xff] %v7054_v56  ;;  %3292 = vmatprep.mubr.bf16.mxu1 %v7054_v56  ;;  %3606 = vmatprep.mubr.bf16.mxu0 %v2278_v7  ;;  %v7070_v36 = vsel %vm2113_vm0, %v2121_v34, %v2123_v43  ;;  %v8382_v55 = vrot.slane %v7018_v19, 7  ;;  %v7080_v44 = vpack.c.bf16 %v4732_v37, %v8378_v62  ;;  %v4716_v29 = vsel %vm7026_vm8, 1.0, %v8380_v0 }
 0x257   : > { %v7072_v27 = vpack.c.bf16 %v1134_v5, %v1133_v32  ;;  %3293 = vmatmul.mubr.bf16.gmra.mrb[16].mxu1 %v1822_v49  ;;  %3607 = vmatmul.mubr.bf16.gmra.mrb[88].mxu0 %v7054_v56  ;;  %v4733_v32 = vsel %vm7030_vm9, 1.0, %v8380_v0  ;;  %v1340_v34 = vand.u32 15, %v7035_v61  ;;  %v1895_v5 = vshrl.u32 %v7011_v18, 16 }
 0x258   : > { %v1027_v21 = vpop.f32.mrb[28].mxu0  ;;  %5461 = vmatpush3.bf16.msra.mxu0 %v5783_v24  ;;  %v1375_v39 = vand.u32 15, %v1201_v8  ;;  %v7133_v58 = vpack.c.bf16 %v8378_v62, %v4716_v29 }
 0x259   : > { %8490 = vst [vmem:[#allocation39_spill] sm:$0xff] %v7072_v27  ;;  %v1028_v4 = vadd.f32 %v6767_v3, %v1027_v21  ;;  %v5402_v37 = vpop.f32.mrb[29].mxu0  ;;  %v1899_v28 = vshll.u32 %v7072_v27, 16  ;;  %v2241_v20 = vmul.bf16 %v6962_v42, %v7072_v27  ;;  %5462 = vmatprep.subr.bf16.mxu0 %v5784_v26  ;;  %v2396_v61 = vmul.bf16 %v6860_v16, %v7072_v27 }
 0x25a   : > { %v1030_v22 = vpop.f32.mrb[30].mxu0  ;;  %v2085_v24 = vmul.bf16 %v7063_v30, %v7072_v27  ;;  %v1897_v7 = vor.u32 %v1895_v5, %v1893_v35  ;;  %v7119_v35 = vsel %vm860_vm2, %v2042_v6, %v8382_v55  ;;  %8497 = vst [vmem:[#allocation44_spill] sm:$0xff] %v7133_v58  ;;  %v7136_v6 = vpack.c.bf16 %v4733_v32, %v8378_v62 }
 0x25b   : > { %v1031_v45 = vadd.f32 %v6767_v3, %v1030_v22  ;;  %v5403_v53 = vpop.f32.mrb[31].mxu0  ;;  %v1901_v21 = vrot.slane %v1899_v28, 1  ;;  %v2279_v37 = vrot.slane %v2241_v20, 1  ;;  %v2433_v8 = vrot.slane %v2396_v61, 1 }
 0x25c   : > { %5463 = vmatpush3.bf16.msra.mxu0 %v5784_v26  ;;  %v2125_v25 = vrot.slane %v2085_v24, 1  ;;  %v1135_v33 = vmax.f32 %v1028_v4, 0.0  ;;  %v1203_v26 = vadd.s32 200, %v6752_v41  ;;  %vm7138_vm11 = vcmp.gt.s32.totalorder %v1340_v34, 0 }
 0x25d   : > { %v1136_v48 = vmax.f32 %v1031_v45, 0.0  ;;  %v7110_v2 = vsel %vm1850_vm15, %v1897_v7, %v1901_v21  ;;  %v2280_v22 = vsel %vm2113_vm0, %v2277_v15, %v2279_v37  ;;  %v7123_v4 = vsel %vm2113_vm0, %v2431_v52, %v2433_v8 }
 0x25e   : > { %8494 = vst [vmem:[#allocation41_spill] sm:$0xff] %v7110_v2  ;;  %3300 = vmatprep.mubr.bf16.mxu1 %v7110_v2  ;;  %3614 = vmatprep.mubr.bf16.mxu0 %v2280_v22  ;;  %v7126_v5 = vsel %vm2113_vm0, %v2123_v43, %v2125_v25  ;;  %v7146_v43 = vadd.s32 160, %v6752_v41  ;;  %vm7148_vm12 = vcmp.lt.s32.totalorder %v1375_v39, 15  ;;  %v1903_v61 = vshrl.u32 %v7072_v27, 16 }
 0x25f   : > { %8495 = vst [vmem:[#allocation42_spill] sm:$0xff] %v7126_v5  ;;  %v7128_v28 = vpack.c.bf16 %v1136_v48, %v1135_v33  ;;  %3301 = vmatmul.mubr.bf16.gmra.mrb[20].mxu1 %v1823_v9  ;;  %3615 = vmatmul.mubr.bf16.gmra.mrb[92].mxu0 %v7110_v2  ;;  %v4734_v33 = vsel %vm7089_vm10, 1.0, %v8380_v0  ;;  %v1389_v49 = vand.u32 15, %v1203_v26  ;;  %v1824_v62 = vmul.bf16 %v7015_v31, %v7072_v27 }
 0x260   : > { %v1035_v20 = vpop.f32.mrb[32].mxu0  ;;  %v1205_v9 = vadd.s32 216, %v6752_v41 }
 0x261   : > { %8496 = vst [vmem:[#allocation43_spill] sm:$0xff] %v7128_v28  ;;  %v1036_v29 = vadd.f32 %v6767_v3, %v1035_v20  ;;  %v5406_v32 = vpop.f32.mrb[33].mxu0  ;;  %v1907_v34 = vshll.u32 %v7128_v28, 16  ;;  %v2242_v48 = vmul.bf16 %v7063_v30, %v7128_v28  ;;  %v2397_v45 = vmul.bf16 %v6962_v42, %v7128_v28 }
 0x262   : > { %v1038_v24 = vpop.f32.mrb[34].mxu0  ;;  %v2086_v53 = vmul.bf16 %v7119_v35, %v7128_v28  ;;  %v1905_v20 = vor.u32 %v1903_v61, %v1901_v21  ;;  %v8503_v21 = vrot.slane %v7080_v44, 7  ;;  %v8504_v61 = vrot.slane %v7018_v19, 7 }
 0x263   : > { %v1039_v7 = vadd.f32 %v6767_v3, %v1038_v24  ;;  %v5407_v22 = vpop.f32.mrb[35].mxu0  ;;  %v1909_v32 = vrot.slane %v1907_v34, 1  ;;  %v2281_v16 = vrot.slane %v2242_v48, 1  ;;  %v2435_v0 = vrot.slane %v2397_v45, 1 }
 0x264   : > { %v2127_v26 = vrot.slane %v2086_v53, 1  ;;  %v1137_v55 = vmax.f32 %v1036_v29, 0.0  ;;  %v7178_v34 = vsel %vm860_vm2, %v8504_v61, %v8503_v21  ;;  %v1354_v45 = vand.u32 15, %v7146_v43 }
 0x265   : > { %v1138_v15 = vmax.f32 %v1039_v7, 0.0  ;;  %v7169_v39 = vsel %vm1850_vm15, %v1905_v20, %v1909_v32  ;;  %v2282_v2 = vsel %vm2113_vm0, %v2279_v37, %v2281_v16  ;;  %v7181_v48 = vsel %vm2113_vm0, %v2433_v8, %v2435_v0 }
 0x266   : > { %8502 = vst [vmem:[#allocation45_spill] sm:$0xff] %v7169_v39  ;;  %3308 = vmatprep.mubr.bf16.mxu1 %v7169_v39  ;;  %3622 = vmatprep.mubr.bf16.mxu0 %v2282_v2  ;;  %v7184_v29 = vsel %vm2113_vm0, %v2125_v25, %v2127_v26  ;;  %v8507_v37 = vmov 0.0   ;;  %v8508_v7 = vmov 1.0   ;;  %vm7203_vm13 = vcmp.lt.s32.totalorder %v1389_v49, 15 }
 0x267   : > { %8505 = vst [vmem:[#allocation46_spill] sm:$0xff] %v7184_v29  ;;  %v7186_v24 = vpack.c.bf16 %v1138_v15, %v1137_v55  ;;  %3309 = vmatmul.mubr.bf16.gmra.mrb[24].mxu1 %v1824_v62  ;;  %3623 = vmatmul.mubr.bf16.gmra.mrb[96].mxu0 %v7169_v39  ;;  %v4717_v19 = vsel %vm7138_vm11, 1.0, %v8507_v37  ;;  %v7195_v8 = vpack.c.bf16 %v4734_v33, %v8508_v7  ;;  %v4735_v25 = vsel %vm7148_vm12, 1.0, %v8507_v37 }
 0x268   : > { %v1043_v53 = vpop.f32.mrb[36].mxu0  ;;  %v7201_v62 = vadd.s32 176, %v6752_v41  ;;  %v1911_v43 = vshrl.u32 %v7128_v28, 16  ;;  %v1825_v56 = vmul.bf16 %v7077_v17, %v7128_v28  ;;  %vm7249_vm14 = vcmp.gt.s32.totalorder %v1354_v45, 0 }
 0x269   : > { %8506 = vst [vmem:[#allocation47_spill] sm:$0xff] %v7186_v24  ;;  %v1044_v15 = vadd.f32 %v6767_v3, %v1043_v53  ;;  %v5410_v52 = vpop.f32.mrb[37].mxu0  ;;  %v1915_v22 = vshll.u32 %v7186_v24, 16  ;;  %v2243_v33 = vmul.bf16 %v7119_v35, %v7186_v24  ;;  %v2398_v21 = vmul.bf16 %v7063_v30, %v7186_v24 }
 0x26a   : > { %v1046_v20 = vpop.f32.mrb[38].mxu0  ;;  %v2087_v61 = vmul.bf16 %v7178_v34, %v7186_v24  ;;  %v1913_v42 = vor.u32 %v1911_v43, %v1909_v32  ;;  %v7230_v32 = vpack.c.bf16 %v8508_v7, %v4717_v19  ;;  %v1403_v43 = vand.u32 15, %v1205_v9 }
 0x26b   : > { %v1047_v53 = vadd.f32 %v6767_v3, %v1046_v20  ;;  %v5411_v52 = vpop.f32.mrb[39].mxu0  ;;  %v1917_v2 = vrot.slane %v1915_v22, 1  ;;  %v2283_v39 = vrot.slane %v2243_v33, 1  ;;  %v2437_v47 = vrot.slane %v2398_v21, 1 }
 0x26c   : > { %v2129_v46 = vrot.slane %v2087_v61, 1  ;;  %v1139_v29 = vmax.f32 %v1044_v15, 0.0  ;;  %8512 = vst [vmem:[#allocation49_spill] sm:$0xff] %v7230_v32  ;;  %v1919_v45 = vshrl.u32 %v7186_v24, 16  ;;  %vm7268_vm1 = vcmp.lt.s32.totalorder %v1403_v43, 15 }
 0x26d   : > { %v1140_v5 = vmax.f32 %v1047_v53, 0.0  ;;  %v7225_v49 = vsel %vm1850_vm15, %v1913_v42, %v1917_v2  ;;  %v2284_v27 = vsel %vm2113_vm0, %v2281_v16, %v2283_v39  ;;  %v7233_v22 = vsel %vm2113_vm0, %v2435_v0, %v2437_v47 }
 0x26e   : > { %8511 = vst [vmem:[#allocation48_spill] sm:$0xff] %v7225_v49  ;;  %3316 = vmatprep.mubr.bf16.mxu1 %v7225_v49  ;;  %3630 = vmatprep.mubr.bf16.mxu0 %v2284_v27  ;;  %v7236_v33 = vsel %vm2113_vm0, %v2127_v26, %v2129_v46  ;;  %v8515_v16 = vrot.slane %v7136_v6, 7  ;;  %v8516_v42 = vrot.slane %v7080_v44, 7  ;;  %v7261_v44 = vadd.s32 192, %v6752_v41 }
 0x26f   : > { %8513 = vst [vmem:[#allocation50_spill] sm:$0xff] %v7236_v33  ;;  %v7238_v15 = vpack.c.bf16 %v1140_v5, %v1139_v29  ;;  %3317 = vmatmul.mubr.bf16.gmra.mrb[28].mxu1 %v1825_v56  ;;  %3631 = vmatmul.mubr.bf16.gmra.mrb[100].mxu0 %v7225_v49  ;;  %v7254_v5 = vpack.c.bf16 %v4735_v25, %v8508_v7  ;;  %v1368_v56 = vand.u32 15, %v7201_v62  ;;  %v4736_v29 = vsel %vm7203_vm13, 1.0, %v8507_v37 }
 0x270   : > { %v7246_v27 = vsel %vm860_vm2, %v8516_v42, %v8515_v16  ;;  %v1051_v26 = vpop.f32.mrb[40].mxu0  ;;  %v1826_v43 = vmul.bf16 %v7133_v58, %v7186_v24 }
 0x271   : > { %8514 = vst [vmem:[#allocation51_spill] sm:$0xff] %v7238_v15  ;;  %v1052_v20 = vadd.f32 %v6767_v3, %v1051_v26  ;;  %v5414_v9 = vpop.f32.mrb[41].mxu0  ;;  %v1923_v21 = vshll.u32 %v7238_v15, 16  ;;  %v2244_v25 = vmul.bf16 %v7178_v34, %v7238_v15  ;;  %v2399_v55 = vmul.bf16 %v7119_v35, %v7238_v15 }
 0x272   : > { %v1054_v61 = vpop.f32.mrb[42].mxu0  ;;  %v2088_v52 = vmul.bf16 %v7246_v27, %v7238_v15  ;;  %v1921_v26 = vor.u32 %v1919_v45, %v1917_v2  ;;  %v4718_v2 = vsel %vm7249_vm14, 1.0, %v8507_v37  ;;  %v1207_v45 = vadd.s32 232, %v6752_v41 }
 0x273   : > { %v1055_v16 = vadd.f32 %v6767_v3, %v1054_v61  ;;  %v5415_v42 = vpop.f32.mrb[43].mxu0  ;;  %v1925_v9 = vrot.slane %v1923_v21, 1  ;;  %v2285_v30 = vrot.slane %v2244_v25, 1  ;;  %v2439_v19 = vrot.slane %v2399_v55, 1 }
 0x274   : > { %v2131_v49 = vrot.slane %v2088_v52, 1  ;;  %v1141_v33 = vmax.f32 %v1052_v20, 0.0  ;;  %vm7309_vm3 = vcmp.gt.s32.totalorder %v1368_v56, 0  ;;  %v4737_v55 = vsel %vm7268_vm1, 1.0, %v8507_v37 }
 0x275   : > { %v1142_v28 = vmax.f32 %v1055_v16, 0.0  ;;  %v7284_v53 = vsel %vm1850_vm15, %v1921_v26, %v1925_v9  ;;  %v2286_v31 = vsel %vm2113_vm0, %v2283_v39, %v2285_v30  ;;  %v7293_v21 = vsel %vm2113_vm0, %v2437_v47, %v2439_v19 }
 0x276   : > { %8521 = vst [vmem:[#allocation52_spill] sm:$0xff] %v7284_v53  ;;  %3324 = vmatprep.mubr.bf16.mxu1 %v7284_v53  ;;  %3638 = vmatprep.mubr.bf16.mxu0 %v2286_v31  ;;  %v7296_v20 = vsel %vm2113_vm0, %v2129_v46, %v2131_v49  ;;  %v8524_v39 = vrot.slane %v7195_v8, 7  ;;  %v8525_v31 = vrot.slane %v7136_v6, 7  ;;  %v7321_v6 = vadd.s32 208, %v6752_v41 }
 0x277   : > { %8522 = vst [vmem:[#allocation53_spill] sm:$0xff] %v7296_v20  ;;  %v7298_v25 = vpack.c.bf16 %v1142_v28, %v1141_v33  ;;  %3325 = vmatmul.mubr.bf16.gmra.mrb[32].mxu1 %v1826_v43  ;;  %3639 = vmatmul.mubr.bf16.gmra.mrb[104].mxu0 %v7284_v53  ;;  %v7314_v28 = vpack.c.bf16 %v4736_v29, %v8508_v7  ;;  %v1382_v33 = vand.u32 15, %v7261_v44  ;;  %v1927_v56 = vshrl.u32 %v7238_v15, 16 }
 0x278   : > { %v7306_v0 = vsel %vm860_vm2, %v8525_v31, %v8524_v39  ;;  %v1059_v46 = vpop.f32.mrb[44].mxu0  ;;  %v1417_v43 = vand.u32 15, %v1207_v45  ;;  %v1827_v53 = vmul.bf16 %v7230_v32, %v7238_v15 }
 0x279   : > { %8523 = vst [vmem:[#allocation54_spill] sm:$0xff] %v7298_v25  ;;  %v1060_v52 = vadd.f32 %v6767_v3, %v1059_v46  ;;  %v5418_v16 = vpop.f32.mrb[45].mxu0  ;;  %v1931_v42 = vshll.u32 %v7298_v25, 16  ;;  %v2245_v29 = vmul.bf16 %v7246_v27, %v7298_v25  ;;  %v2400_v44 = vmul.bf16 %v7178_v34, %v7298_v25 }
 0x27a   : > { %v1062_v26 = vpop.f32.mrb[46].mxu0  ;;  %v2089_v39 = vmul.bf16 %v7306_v0, %v7298_v25  ;;  %v1929_v16 = vor.u32 %v1927_v56, %v1925_v9  ;;  %v7345_v9 = vpack.c.bf16 %v8508_v7, %v4718_v2  ;;  %v4719_v56 = vsel %vm7309_vm3, 1.0, %v8507_v37 }
 0x27b   : > { %v1063_v31 = vadd.f32 %v6767_v3, %v1062_v26  ;;  %v5419_v46 = vpop.f32.mrb[47].mxu0  ;;  %v1933_v35 = vrot.slane %v1931_v42, 1  ;;  %v2287_v61 = vrot.slane %v2245_v29, 1  ;;  %v2441_v20 = vrot.slane %v2400_v44, 1 }
 0x27c   : > { %v2133_v45 = vrot.slane %v2089_v39, 1  ;;  %v1143_v24 = vmax.f32 %v1060_v52, 0.0  ;;  %vm7366_vm4 = vcmp.gt.s32.totalorder %v1382_v33, 0  ;;  %vm1735_vm5 = vcmp.lt.s32.totalorder %v1417_v43, 15 }
 0x27d   : > { %v1144_v17 = vmax.f32 %v1063_v31, 0.0  ;;  %v7340_v62 = vsel %vm1850_vm15, %v1929_v16, %v1933_v35  ;;  %v2288_v14 = vsel %vm2113_vm0, %v2285_v30, %v2287_v61  ;;  %v7351_v42 = vsel %vm2113_vm0, %v2439_v19, %v2441_v20 }
 0x27e   : > { %8528 = vst [vmem:[#allocation55_spill] sm:$0xff] %v7340_v62  ;;  %3332 = vmatprep.mubr.bf16.mxu1 %v7340_v62  ;;  %3646 = vmatprep.mubr.bf16.mxu0 %v2288_v14  ;;  %v7354_v52 = vsel %vm2113_vm0, %v2131_v49, %v2133_v45  ;;  %v8530_v14 = vrot.slane %v7254_v5, 7  ;;  %v8531_v30 = vrot.slane %v7195_v8, 7  ;;  %v1935_v33 = vshrl.u32 %v7298_v25, 16 }
 0x27f   : > { %8529 = vst [vmem:[#allocation56_spill] sm:$0xff] %v7354_v52  ;;  %v7356_v29 = vpack.c.bf16 %v1144_v17, %v1143_v24  ;;  %3333 = vmatmul.mubr.bf16.gmra.mrb[36].mxu1 %v1827_v53  ;;  %3647 = vmatmul.mubr.bf16.gmra.mrb[108].mxu0 %v7340_v62  ;;  %v7372_v17 = vpack.c.bf16 %v4737_v55, %v8508_v7  ;;  %v1396_v24 = vand.u32 15, %v7321_v6  ;;  %v7376_v53 = vadd.s32 224, %v6752_v41 }
 0x280   : > { %v7364_v2 = vsel %vm860_vm2, %v8531_v30, %v8530_v14  ;;  %v1067_v19 = vpop.f32.mrb[48].mxu0  ;;  %v4738_v31 = vsel %vm1735_vm5, 1.0, %v8507_v37  ;;  %v1937_v30 = vor.u32 %v1935_v33, %v1933_v35  ;;  %v1828_v34 = vmul.bf16 %v7345_v9, %v7298_v25 }
 0x281   : > { %v1068_v8 = vadd.f32 %v6767_v3, %v1067_v19  ;;  %v5422_v26 = vpop.f32.mrb[49].mxu0  ;;  %v1939_v44 = vshll.u32 %v7356_v29, 16  ;;  %v2246_v43 = vmul.bf16 %v7306_v0, %v7356_v29  ;;  %v2401_v55 = vmul.bf16 %v7246_v27, %v7356_v29 }
 0x282   : > { %v1070_v39 = vpop.f32.mrb[50].mxu0  ;;  %v2090_v46 = vmul.bf16 %v7364_v2, %v7356_v29  ;;  %v1209_v35 = vadd.s32 248, %v6752_v41  ;;  %vm7427_vm6 = vcmp.gt.s32.totalorder %v1396_v24, 0  ;;  %v1943_v47 = vshrl.u32 %v7356_v29, 16 }
 0x283   : > { %v1071_v16 = vadd.f32 %v6767_v3, %v1070_v39  ;;  %v5423_v14 = vpop.f32.mrb[51].mxu0  ;;  %v1941_v19 = vrot.slane %v1939_v44, 1  ;;  %v2289_v26 = vrot.slane %v2246_v43, 1  ;;  %v2443_v49 = vrot.slane %v2401_v55, 1 }
 0x284   : > { %v7393_v62 = vrot.slane %v2090_v46, 1  ;;  %v1145_v52 = vmax.f32 %v1068_v8, 0.0  ;;  %v7414_v8 = vpack.c.bf16 %v8508_v7, %v4719_v56  ;;  %v8539_v55 = vrot.slane %v7254_v5, 7 }
 0x285   : > { %v1146_v6 = vmax.f32 %v1071_v16, 0.0  ;;  %v7398_v15 = vsel %vm1850_vm15, %v1937_v30, %v1941_v19  ;;  %v2290_v39 = vsel %vm2113_vm0, %v2287_v61, %v2289_v26  ;;  %v7404_v33 = vsel %vm2113_vm0, %v2441_v20, %v2443_v49 }
 0x286   : > { %8534 = vst [vmem:[#allocation57_spill] sm:$0xff] %v7398_v15  ;;  %3340 = vmatprep.mubr.bf16.mxu1 %v7398_v15  ;;  %3654 = vmatprep.mubr.bf16.mxu0 %v2290_v39  ;;  %8535 = vst [vmem:[#allocation58_spill] sm:$0xff] %v7404_v33  ;;  %v7408_v44 = vsel %vm2113_vm0, %v2133_v45, %v7393_v62  ;;  %v8538_v61 = vrot.slane %v7314_v28, 7  ;;  %v4720_v20 = vsel %vm7366_vm4, 1.0, %v8507_v37  ;;  %v4876_v45 = vpop.f32.mrb[0].mxu1  ;;  %v1410_v5 = vand.u32 15, %v7376_v53 }
 0x287   : > { %8536 = vst [vmem:[#allocation59_spill] sm:$0xff] %v7408_v44  ;;  %v7410_v43 = vpack.c.bf16 %v1146_v6, %v1145_v52  ;;  %3341 = vmatmul.mubr.bf16.gmra.mrb[40].mxu1 %v1828_v34  ;;  %3655 = vmatmul.mubr.bf16.gmra.mrb[112].mxu0 %v7398_v15  ;;  %v7432_v56 = vpack.c.bf16 %v4738_v31, %v8508_v7  ;;  %v4877_v16 = vpop.f32.mrb[1].mxu1  ;;  %v1431_v27 = vand.u32 15, %v1209_v35 }
 0x288   : > { %v7421_v46 = vsel %vm860_vm2, %v8539_v55, %v8538_v61  ;;  %v1075_v52 = vpop.f32.mrb[52].mxu0  ;;  %v4879_v24 = vpop.f32.mrb[2].mxu1  ;;  %v7442_v34 = vadd.f32 %v4877_v16, %v4876_v45  ;;  %v1945_v44 = vor.u32 %v1943_v47, %v1941_v19  ;;  %v1829_v35 = vmul.bf16 %v7414_v8, %v7356_v29 }
 0x289   : > { %8537 = vst [vmem:[#allocation60_spill] sm:$0xff] %v7410_v43  ;;  %v1076_v14 = vadd.f32 %v6767_v3, %v1075_v52  ;;  %v5426_v30 = vpop.f32.mrb[53].mxu0  ;;  %v1947_v39 = vshll.u32 %v7410_v43, 16  ;;  %v2247_v61 = vmul.bf16 %v7364_v2, %v7410_v43  ;;  %v2402_v31 = vmul.bf16 %v7306_v0, %v7410_v43  ;;  %v4880_v3 = vpop.f32.mrb[3].mxu1  ;;  %v7446_v52 = vld [vmem:[#allocation11] ss:$0 sm:$0xff] }
 0x28a   : > { %v1078_v55 = vpop.f32.mrb[54].mxu0  ;;  %8542 = vst [vmem:[#allocation61_spill] sm:$0xff] %v7442_v34  ;;  %v7451_v33 = vadd.f32 %v4880_v3, %v4879_v24  ;;  %v2091_v0 = vmul.bf16 %v7421_v46, %v7410_v43  ;;  %vm1737_vm7 = vcmp.lt.s32.totalorder %v1431_v27, 15  ;;  %vm7482_vm8 = vcmp.gt.s32.totalorder %v1410_v5, 0 }
 0x28b   : > { %v1079_v30 = vadd.f32 %v7446_v52, %v1078_v55  ;;  %v5427_v15 = vpop.f32.mrb[55].mxu0  ;;  %v1949_v25 = vrot.slane %v1947_v39, 1  ;;  %v2291_v32 = vrot.slane %v2247_v61, 1  ;;  %v2445_v58 = vrot.slane %v2402_v31, 1 }
 0x28c   : > { %8543 = vst [vmem:[#allocation62_spill] sm:$0xff] %v7451_v33  ;;  %v1147_v45 = vmax.f32 %v1076_v14, 0.0  ;;  %v7461_v15 = vpack.c.bf16 %v8508_v7, %v4720_v20  ;;  %v2137_v47 = vrot.slane %v2091_v0, 1  ;;  %v7487_v3 = vadd.s32 240, %v6752_v41 }
 0x28d   : > { %v1148_v16 = vmax.f32 %v1079_v30, 0.0  ;;  %v7456_v53 = vsel %vm1850_vm15, %v1945_v44, %v1949_v25  ;;  %v2292_v55 = vsel %vm2113_vm0, %v2289_v26, %v2291_v32  ;;  %v7464_v19 = vsel %vm2113_vm0, %v2443_v49, %v2445_v58 }
 0x28e   : > { %8544 = vst [vmem:[#allocation63_spill] sm:$0xff] %v7456_v53  ;;  %3348 = vmatprep.mubr.bf16.mxu1 %v7456_v53  ;;  %3662 = vmatprep.mubr.bf16.mxu0 %v2292_v55  ;;  %v8545_v26 = vrot.slane %v7372_v17, 7  ;;  %v8546_v44 = vrot.slane %v7314_v28, 7  ;;  %v4721_v49 = vsel %vm7427_vm6, 1.0, %v8507_v37  ;;  %v7491_v28 = vsel %vm2113_vm0, %v7393_v62, %v2137_v47 }
 0x28f   : > { %v7468_v14 = vpack.c.bf16 %v1148_v16, %v1147_v45  ;;  %3349 = vmatmul.mubr.bf16.gmra.mrb[44].mxu1 %v1829_v35  ;;  %3663 = vmatmul.mubr.bf16.gmra.mrb[116].mxu0 %v7456_v53  ;;  %8549 = vst [vmem:[#allocation64_spill] sm:$0xff] %v7491_v28  ;;  %v1951_v6 = vshrl.u32 %v7410_v43, 16  ;;  %v4739_v45 = vsel %vm1737_vm7, 1.0, %v8507_v37  ;;  %v1830_v39 = vmul.bf16 %v7461_v15, %v7410_v43 }
 0x290   : > { %v7476_v61 = vsel %vm860_vm2, %v8546_v44, %v8545_v26  ;;  %v1083_v20 = vpop.f32.mrb[56].mxu0 }
 0x291   : > { %v1084_v30 = vadd.f32 %v7446_v52, %v1083_v20  ;;  %v5430_v35 = vpop.f32.mrb[57].mxu0  ;;  %v1955_v27 = vshll.u32 %v7468_v14, 16  ;;  %v2248_v5 = vmul.bf16 %v7421_v46, %v7468_v14  ;;  %v2403_v41 = vmul.bf16 %v7364_v2, %v7468_v14 }
 0x292   : > { %v1086_v0 = vpop.f32.mrb[58].mxu0  ;;  %v2092_v16 = vmul.bf16 %v7476_v61, %v7468_v14  ;;  %v1953_v44 = vor.u32 %v1951_v6, %v1949_v25  ;;  %v1817_v25 = vpack.c.bf16 %v4739_v45, %v8508_v7  ;;  %v7533_v45 = vpack.c.bf16 %v8508_v7, %v4721_v49 }
 0x293   : > { %v1087_v55 = vadd.f32 %v7446_v52, %v1086_v0  ;;  %v5431_v26 = vpop.f32.mrb[59].mxu0  ;;  %v1957_v20 = vrot.slane %v1955_v27, 1  ;;  %v2293_v35 = vrot.slane %v2248_v5, 1  ;;  %v2447_v24 = vrot.slane %v2403_v41, 1 }
 0x294   : > { %v2139_v33 = vrot.slane %v2092_v16, 1  ;;  %v1149_v34 = vmax.f32 %v1084_v30, 0.0  ;;  %v8552_v30 = vrot.slane %v7432_v56, 7 }
 0x295   : > { %v1150_v53 = vmax.f32 %v1087_v55, 0.0  ;;  %v7511_v62 = vsel %vm1850_vm15, %v1953_v44, %v1957_v20  ;;  %v2294_v28 = vsel %vm2113_vm0, %v2291_v32, %v2293_v35  ;;  %v7517_v6 = vsel %vm2113_vm0, %v2445_v58, %v2447_v24 }
 0x296   : > { %8550 = vst [vmem:[#allocation65_spill] sm:$0xff] %v7511_v62  ;;  %3356 = vmatprep.mubr.bf16.mxu1 %v7511_v62  ;;  %3670 = vmatprep.mubr.bf16.mxu0 %v2294_v28  ;;  %v7520_v27 = vsel %vm2113_vm0, %v2137_v47, %v2139_v33  ;;  %v8553_v32 = vrot.slane %v7372_v17, 7  ;;  %v4722_v58 = vsel %vm7482_vm8, 1.0, %v8507_v37  ;;  %v7544_v55 = vrot.slane %v1817_v25, 7 }
 0x297   : > { %8551 = vst [vmem:[#allocation66_spill] sm:$0xff] %v7520_v27  ;;  %v7522_v5 = vpack.c.bf16 %v1150_v53, %v1149_v34  ;;  %3357 = vmatmul.mubr.bf16.gmra.mrb[48].mxu1 %v1830_v39  ;;  %3671 = vmatmul.mubr.bf16.gmra.mrb[120].mxu0 %v7511_v62  ;;  %v1424_v34 = vand.u32 15, %v7487_v3  ;;  %v1959_v39 = vshrl.u32 %v7468_v14, 16 }
 0x298   : > { %v7530_v0 = vsel %vm860_vm2, %v8553_v32, %v8552_v30  ;;  %v1091_v28 = vpop.f32.mrb[60].mxu0 }
 0x299   : > { %v1092_v53 = vadd.f32 %v7446_v52, %v1091_v28  ;;  %v5434_v47 = vpop.f32.mrb[61].mxu0  ;;  %v1963_v17 = vshll.u32 %v7522_v5, 16  ;;  %v2249_v41 = vmul.bf16 %v7476_v61, %v7522_v5  ;;  %v2404_v49 = vmul.bf16 %v7421_v46, %v7522_v5 }
 0x29a   : > { %v1094_v16 = vpop.f32.mrb[62].mxu0  ;;  %v2093_v3 = vmul.bf16 %v7530_v0, %v7522_v5  ;;  %v1961_v30 = vor.u32 %v1959_v39, %v1957_v20  ;;  %v1831_v47 = vmul.bf16 %v7533_v45, %v7468_v14  ;;  %vm1624_vm9 = vcmp.gt.s32.totalorder %v1424_v34, 0 }
 0x29b   : > { %v1095_v26 = vadd.f32 %v7446_v52, %v1094_v16  ;;  %v5435_v44 = vpop.f32.mrb[63].mxu0  ;;  %v1965_v32 = vrot.slane %v1963_v17, 1  ;;  %v2295_v28 = vrot.slane %v2249_v41, 1  ;;  %v2449_v25 = vrot.slane %v2404_v49, 1 }
 0x29c   : > { %v2141_v2 = vrot.slane %v2093_v3, 1  ;;  %v1151_v62 = vmax.f32 %v1092_v53, 0.0  ;;  %v8556_v53 = vrot.slane %v7432_v56, 7  ;;  %v4723_v56 = vsel %vm1624_vm9, 1.0, %v8507_v37 }
 0x29d   : > { %v1152_v27 = vmax.f32 %v1095_v26, 0.0  ;;  %v7558_v31 = vsel %vm1850_vm15, %v1961_v30, %v1965_v32  ;;  %v2296_v43 = vsel %vm2113_vm0, %v2293_v35, %v2295_v28  ;;  %v7563_v20 = vsel %vm2113_vm0, %v2447_v24, %v2449_v25 }
 0x29e   : > { %8554 = vst [vmem:[#allocation67_spill] sm:$0xff] %v7558_v31  ;;  %3364 = vmatprep.mubr.bf16.mxu1 %v7558_v31  ;;  %3678 = vmatprep.mubr.bf16.mxu0 %v2296_v43  ;;  %v7566_v39 = vsel %vm2113_vm0, %v2139_v33, %v2141_v2  ;;  %v7575_v41 = vsel %vm860_vm2, %v8556_v53, %v7544_v55 }
 0x29f   : > { %8555 = vst [vmem:[#allocation68_spill] sm:$0xff] %v7566_v39  ;;  %v7568_v17 = vpack.c.bf16 %v1152_v27, %v1151_v62  ;;  %3365 = vmatmul.mubr.bf16.gmra.mrb[52].mxu1 %v1831_v47  ;;  %3679 = vmatmul.mubr.bf16.gmra.mrb[124].mxu0 %v7558_v31  ;;  %v7578_v43 = vpack.c.bf16 %v8508_v7, %v4722_v58  ;;  %v1967_v62 = vshrl.u32 %v7522_v5, 16 }
 0x2a0   : > { %v1099_v35 = vpop.f32.mrb[64].mxu0 }
 0x2a1   : > { %v1100_v24 = vadd.f32 %v7446_v52, %v1099_v35  ;;  %v5438_v33 = vpop.f32.mrb[65].mxu0  ;;  %v1971_v27 = vshll.u32 %v7568_v17, 16  ;;  %v2250_v16 = vmul.bf16 %v7530_v0, %v7568_v17  ;;  %v2405_v34 = vmul.bf16 %v7476_v61, %v7568_v17 }
 0x2a2   : > { %v1102_v49 = vpop.f32.mrb[66].mxu0  ;;  %v2094_v3 = vmul.bf16 %v7575_v41, %v7568_v17  ;;  %v1969_v30 = vor.u32 %v1967_v62, %v1965_v32  ;;  %v1832_v35 = vmul.bf16 %v7578_v43, %v7522_v5 }
 0x2a3   : > { %v1103_v26 = vadd.f32 %v7446_v52, %v1102_v49  ;;  %v5439_v44 = vpop.f32.mrb[67].mxu0  ;;  %v1973_v47 = vrot.slane %v1971_v27, 1  ;;  %v2297_v53 = vrot.slane %v2250_v16, 1  ;;  %v2451_v33 = vrot.slane %v2405_v34, 1 }
 0x2a4   : > { %v2143_v37 = vrot.slane %v2094_v3, 1  ;;  %v1153_v46 = vmax.f32 %v1100_v24, 0.0  ;;  %v1975_v24 = vshrl.u32 %v7568_v17, 16  ;;  %v7613_v49 = vpack.c.bf16 %v8508_v7, %v4723_v56 }
 0x2a5   : > { %v1154_v31 = vmax.f32 %v1103_v26, 0.0  ;;  %v7598_v58 = vsel %vm1850_vm15, %v1969_v30, %v1973_v47  ;;  %v2298_v39 = vsel %vm2113_vm0, %v2295_v28, %v2297_v53  ;;  %v7603_v32 = vsel %vm2113_vm0, %v2449_v25, %v2451_v33 }
 0x2a6   : > { %3372 = vmatprep.mubr.bf16.mxu1 %v7598_v58  ;;  %3686 = vmatprep.mubr.bf16.mxu0 %v2298_v39  ;;  %v7606_v62 = vsel %vm2113_vm0, %v2141_v2, %v2143_v37  ;;  %v1977_v34 = vor.u32 %v1975_v24, %v1973_v47  ;;  %v1833_v3 = vmul.bf16 %v7613_v49, %v7568_v17 }
 0x2a7   : > { %v7608_v27 = vpack.c.bf16 %v1154_v31, %v1153_v46  ;;  %3373 = vmatmul.mubr.bf16.gmra.mrb[56].mxu1 %v1832_v35  ;;  %3687 = vmatmul.mubr.bf16.gmra.mrb[128].mxu0 %v7598_v58 }
 0x2a8   : > { %v1107_v16 = vpop.f32.mrb[68].mxu0 }
 0x2a9   : > { %v1108_v28 = vadd.f32 %v7446_v52, %v1107_v16  ;;  %v5442_v39 = vpop.f32.mrb[69].mxu0  ;;  %v1979_v25 = vshll.u32 %v7608_v27, 16  ;;  %v2251_v2 = vmul.bf16 %v7575_v41, %v7608_v27  ;;  %v2406_v46 = vmul.bf16 %v7530_v0, %v7608_v27 }
 0x2aa   : > { %v1110_v31 = vpop.f32.mrb[70].mxu0  ;;  %v2095_v7 = vmul.bf16 %v7544_v55, %v7608_v27 }
 0x2ab   : > { %v1155_v26 = vmax.f32 %v1108_v28, 0.0  ;;  %v1111_v44 = vadd.f32 %v7446_v52, %v1110_v31  ;;  %v1981_v30 = vrot.slane %v1979_v25, 1  ;;  %v2299_v47 = vrot.slane %v2251_v2, 1  ;;  %v5443_v35 = vpop.f32.mrb[71].mxu0 }
 0x2ac   : > { %v2453_v24 = vrot.slane %v2406_v46, 1  ;;  %v2145_v16 = vrot.slane %v2095_v7, 1  ;;  %v2179_v52 = vmul.bf16 %v6828_v51, %v6801_v38  ;;  %v2211_v31 = vshrl.u32 %v7608_v27, 16 }
 0x2ad   : > { %v1156_v39 = vmax.f32 %v1111_v44, 0.0  ;;  %v7629_v0 = vsel %vm1850_vm15, %v1977_v34, %v1981_v30  ;;  %v2300_v61 = vsel %vm2113_vm0, %v2297_v53, %v2299_v47 }
 0x2ae   : > { %3380 = vmatprep.mubr.bf16.mxu1 %v7629_v0  ;;  %3694 = vmatprep.mubr.bf16.mxu0 %v2300_v61  ;;  %v7638_v28 = vsel %vm2113_vm0, %v2451_v33, %v2453_v24  ;;  %v7641_v25 = vsel %vm2113_vm0, %v2143_v37, %v2145_v16  ;;  %v2213_v44 = vor.u32 %v2211_v31, %v1981_v30  ;;  %v5786_v30 = vld [vmem:[#allocation12 + $0x188] sm:$0xff]   ;;  %v5790_v31 = vld [vmem:[#allocation12 + $0x198] sm:$0xff]  }
 0x2af   : > { %v1175_v2 = vpack.c.bf16 %v1156_v39, %v1155_v26  ;;  %3381 = vmatmul.mubr.bf16.gmra.mrb[60].mxu1 %v1833_v3  ;;  %3695 = vmatmul.mubr.bf16.gmra.mrb[132].mxu0 %v7629_v0  ;;  %v5782_v26 = vld [vmem:[#allocation12 + $0x180] sm:$0xff]  }
 0x2b0   : > { %3421 = vmatprep.mubr.bf16.mxu1 %v2179_v52  ;;  %v1115_v53 = vpop.f32.mrb[72].mxu0  ;;  %v5785_v52 = vld [vmem:[#allocation12 + $0x1c8] sm:$0xff]  }
 0x2b1   : > { %v2252_v34 = vmul.bf16 %v7544_v55, %v1175_v2  ;;  %v2215_v61 = vshll.u32 %v1175_v2, 16  ;;  %v5446_v46 = vpop.f32.mrb[73].mxu0  ;;  %v2407_v38 = vmul.bf16 %v7575_v41, %v1175_v2  ;;  %v8558_v53 = vmov 0   ;;  %v5788_v2 = vld [vmem:[#allocation12 + $0x190] sm:$0xff]  }
 0x2b2   : > { %v1118_v7 = vpop.f32.mrb[74].mxu0  ;;  %v8559_v41 = vmul.bf16 %v6808_v40, %v6855_v13  ;;  %v5793_v46 = vld [vmem:[#allocation12 + $0x1e8] sm:$0xff]  }
 0x2b3   : > { %v2301_v33 = vrot.slane %v2252_v34, 1  ;;  %v2217_v35 = vrot.slane %v2215_v61, 1  ;;  %v5447_v37 = vpop.f32.mrb[75].mxu0  ;;  %v2455_v16 = vrot.slane %v2407_v38, 1  ;;  %v8560_v34 = vmul.bf16 %v6825_v50, %v6902_v63  ;;  %v5792_v61 = vld [vmem:[#allocation12 + $0x1a0] sm:$0xff]   ;;  %v5796_v38 = vld [vmem:[#allocation12 + $0x1b0] sm:$0xff]  }
 0x2b4   : > { %v5797_v7 = vld [vmem:[#allocation12 + $0x1f8] sm:$0xff]   ;;  %v8569_v37 = vld [vmem:[#allocation43_spill] sm:$0xff] }
 0x2b5   : > { %v2302_v3 = vsel %vm2113_vm0, %v2299_v47, %v2301_v33  ;;  %v7649_v39 = vsel %vm1850_vm15, %v2213_v44, %v2217_v35  ;;  %v7652_v55 = vsel %vm2113_vm0, %v2453_v24, %v2455_v16  ;;  %v5787_v47 = vld [vmem:[#allocation12 + $0x1d0] sm:$0xff]   ;;  %v5789_v24 = vld [vmem:[#allocation12 + $0x1d8] sm:$0xff]   ;;  %v8566_v44 = vld [vmem:[#allocation58_spill] sm:$0xff] }
 0x2b6   : > { %8557 = vst [vmem:[#allocation69_spill] sm:$0xff] %v7652_v55  ;;  %3702 = vmatprep.mubr.bf16.mxu0 %v2302_v3  ;;  %v8567_v35 = vld [vmem:[#allocation42_spill] sm:$0xff] }
 0x2b7   : > { %3422 = vmatmul.mubr.bf16.vlgmr.msra.gmra.mrb[64].mxu1 %v8558_v53  ;;  %3703 = vmatmul.mubr.bf16.gmra.mrb[136].mxu0 %v7649_v39 }
 0x2b8   : > { %5197 = vmatpush3.bf16.msra.mxu1 %v5782_v26  ;;  %3429 = vmatprep.mubr.bf16.mxu1 %v8559_v41  ;;  %v8571_v26 = vld [vmem:[#allocation46_spill] sm:$0xff]  ;;  %v8577_v41 = vld [vmem:[#allocation51_spill] sm:$0xff] }
 0x2b9   : > { %5464 = vmatprep.mubr.bf16.mxu0 %v6949_v54  ;;  %5198 = vmatprep.subr.bf16.mxu1 %v5785_v52  ;;  %v5791_v54 = vld [vmem:[#allocation12 + $0x1e0] sm:$0xff]  }
 0x2ba   : > { %v8575_v52 = vld [vmem:[#allocation50_spill] sm:$0xff] }
 0x2bc   : > { %5199 = vmatpush3.bf16.msra.mxu1 %v5786_v30 }
 0x2bd   : > { %5200 = vmatprep.subr.bf16.mxu1 %v5787_v47  ;;  %v8579_v47 = vld [vmem:[#allocation53_spill] sm:$0xff] }
 0x2bf   : > { %3430 = vmatmul.mubr.bf16.gmra.mrb[68].mxu1 %v6921_v12  ;;  %5465 = vmatmul.mubr.bf16.vlgmr.msra.gmra.mrb[140].mxu0 %v7006_v1  ;;  %v8561_v12 = vmul.bf16 %v6850_v10, %v6954_v60  ;;  %v5794_v1 = vld [vmem:[#allocation12 + $0x1a8] sm:$0xff]  }
 0x2c0   : > { %3437 = vmatprep.mubr.bf16.mxu1 %v8560_v34  ;;  %5468 = vmatprep.mubr.bf16.mxu0 %v7067_v23  ;;  %v5795_v23 = vld [vmem:[#allocation12 + $0x1f0] sm:$0xff]   ;;  %v8584_v34 = vmul.bf16 %v7345_v9, %v7356_v29 }
 0x2c1   : > { %5201 = vmatpush3.bf16.msra.mxu1 %v5788_v2  ;;  %v8581_v2 = vld [vmem:[#allocation54_spill] sm:$0xff] }
 0x2c2   : > { %5202 = vmatprep.subr.bf16.mxu1 %v5789_v24 }
 0x2c5   : > { %5203 = vmatpush3.bf16.msra.mxu1 %v5790_v31 }
 0x2c6   : > { %5204 = vmatprep.subr.bf16.mxu1 %v5791_v54  ;;  %v8588_v54 = vld [vmem:[#allocation64_spill] sm:$0xff] }
 0x2c7   : > { %3438 = vmatmul.mubr.bf16.gmra.mrb[72].mxu1 %v6952_v57  ;;  %5469 = vmatmul.mubr.bf16.gmra.mrb[144].mxu0 %v7123_v4  ;;  %v8562_v57 = vmul.bf16 %v6853_v11, %v7011_v18  ;;  %v5798_v4 = vld [vmem:[#allocation12 + $0x1b8] sm:$0xff]  }
 0x2c8   : > { %3445 = vmatprep.mubr.bf16.mxu1 %v8561_v12  ;;  %5472 = vmatprep.mubr.bf16.mxu0 %v7181_v48  ;;  %v7678_v48 = vld [vmem:[#allocation12 + $0x200] sm:$0xff]  }
 0x2c9   : > { %5205 = vmatpush3.bf16.msra.mxu1 %v5792_v61  ;;  %v8589_v61 = vmul.bf16 %v7461_v15, %v7468_v14 }
 0x2ca   : > { %5206 = vmatprep.subr.bf16.mxu1 %v5793_v46 }
 0x2cd   : > { %5207 = vmatpush3.bf16.msra.mxu1 %v5794_v1 }
 0x2ce   : > { %5208 = vmatprep.subr.bf16.mxu1 %v5795_v23 }
 0x2cf   : > { %3446 = vmatmul.mubr.bf16.gmra.mrb[76].mxu1 %v7009_v59  ;;  %5473 = vmatmul.mubr.bf16.gmra.mrb[148].mxu0 %v7233_v22  ;;  %v8563_v59 = vld [vmem:[#allocation35_spill] sm:$0xff] }
 0x2d0   : > { %3453 = vmatprep.mubr.bf16.mxu1 %v8562_v57  ;;  %5476 = vmatprep.mubr.bf16.mxu0 %v7293_v21  ;;  %v8564_v22 = vld [vmem:[#allocation39_spill] sm:$0xff]  ;;  %v8568_v21 = vld [vmem:[#allocation37_spill] sm:$0xff] }
 0x2d1   : > { %5209 = vmatpush3.bf16.msra.mxu1 %v5796_v38  ;;  %v8565_v33 = vmul.bf16 %v8563_v59, %v8564_v22  ;;  %v8570_v16 = vmul.bf16 %v8568_v21, %v8569_v37 }
 0x2d2   : > { %5210 = vmatprep.subr.bf16.mxu1 %v5797_v7 }
 0x2d5   : > { %5211 = vmatpush3.bf16.msra.mxu1 %v5798_v4 }
 0x2d6   : > { %5544 = vmatprep.subr.bf16.mxu1 %v7678_v48 }
 0x2d7   : > { %3454 = vmatmul.mubr.bf16.gmra.mrb[80].mxu1 %v7070_v36  ;;  %5477 = vmatmul.mubr.bf16.gmra.mrb[152].mxu0 %v7351_v42  ;;  %v8572_v36 = vld [vmem:[#allocation40_spill] sm:$0xff]  ;;  %v8573_v42 = vld [vmem:[#allocation47_spill] sm:$0xff] }
 0x2d8   : > { %3461 = vmatprep.mubr.bf16.mxu1 %v8565_v33  ;;  %5480 = vmatprep.mubr.bf16.mxu0 %v8566_v44  ;;  %v8574_v3 = vmul.bf16 %v8572_v36, %v8573_v42 }
 0x2df   : > { %3462 = vmatmul.mubr.bf16.gmra.mrb[84].mxu1 %v8567_v35  ;;  %5481 = vmatmul.mubr.bf16.gmra.mrb[156].mxu0 %v7464_v19  ;;  %v8576_v19 = vld [vmem:[#allocation44_spill] sm:$0xff] }
 0x2e0   : > { %3469 = vmatprep.mubr.bf16.mxu1 %v8570_v16  ;;  %5484 = vmatprep.mubr.bf16.mxu0 %v7517_v6  ;;  %v8578_v30 = vmul.bf16 %v8576_v19, %v8577_v41  ;;  %v8580_v6 = vld [vmem:[#allocation49_spill] sm:$0xff] }
 0x2e1   : > { %v8582_v24 = vmul.bf16 %v8580_v6, %v8581_v2 }
 0x2e7   : > { %3470 = vmatmul.mubr.bf16.gmra.mrb[88].mxu1 %v8571_v26  ;;  %5485 = vmatmul.mubr.bf16.gmra.mrb[160].mxu0 %v7563_v20  ;;  %v8583_v20 = vld [vmem:[#allocation56_spill] sm:$0xff]  ;;  %v8590_v26 = vld [vmem:[#allocation66_spill] sm:$0xff] }
 0x2e8   : > { %3477 = vmatprep.mubr.bf16.mxu1 %v8574_v3  ;;  %5488 = vmatprep.mubr.bf16.mxu0 %v7603_v32  ;;  %v8585_v32 = vld [vmem:[#allocation59_spill] sm:$0xff]  ;;  %v8591_v3 = vmul.bf16 %v7533_v45, %v7522_v5 }
 0x2ef   : > { %3478 = vmatmul.mubr.bf16.gmra.mrb[92].mxu1 %v8575_v52  ;;  %5489 = vmatmul.mubr.bf16.gmra.mrb[164].mxu0 %v7638_v28  ;;  %v8586_v28 = vld [vmem:[#allocation60_spill] sm:$0xff] }
 0x2f0   : > { %3485 = vmatprep.mubr.bf16.mxu1 %v8578_v30  ;;  %v8587_v31 = vmul.bf16 %v7414_v8, %v8586_v28 }
 0x2f7   : > { %3486 = vmatmul.mubr.bf16.gmra.mrb[96].mxu1 %v8579_v47 }
 0x2f8   : > { %3493 = vmatprep.mubr.bf16.mxu1 %v8582_v24 }
 0x2ff   : > { %3494 = vmatmul.mubr.bf16.gmra.mrb[100].mxu1 %v8583_v20 }
 0x300   : > { %3501 = vmatprep.mubr.bf16.mxu1 %v8584_v34 }
 0x307   : > { %3502 = vmatmul.mubr.bf16.gmra.mrb[104].mxu1 %v8585_v32 }
 0x308   : > { %3509 = vmatprep.mubr.bf16.mxu1 %v8587_v31 }
 0x30f   : > { %3510 = vmatmul.mubr.bf16.gmra.mrb[108].mxu1 %v8588_v54 }
 0x310   : > { %3517 = vmatprep.mubr.bf16.mxu1 %v8589_v61 }
 0x312   : > { %v4882_v46 = vpop.f32.mrb[4].mxu1  ;;  %v5100_v12 = vpop.f32.mrb[76].mxu0 }
 0x313   : > { %v4883_v1 = vpop.f32.mrb[5].mxu1  ;;  %v5101_v23 = vpop.f32.mrb[77].mxu0 }
 0x314   : > { %v7720_v38 = vadd.f32 %v4883_v1, %v4882_v46  ;;  %v7722_v7 = vadd.f32 %v5101_v23, %v5100_v12  ;;  %v4885_v57 = vpop.f32.mrb[6].mxu1  ;;  %v5103_v4 = vpop.f32.mrb[78].mxu0  ;;  %v8592_v1 = vld [vmem:[#allocation68_spill] sm:$0xff]  ;;  %v8593_v23 = vmul.bf16 %v7578_v43, %v7568_v17 }
 0x315   : > { %v4886_v33 = vpop.f32.mrb[7].mxu1  ;;  %v5104_v44 = vpop.f32.mrb[79].mxu0 }
 0x316   : > { %v7724_v35 = vadd.f32 %v4886_v33, %v4885_v57  ;;  %v7726_v16 = vadd.f32 %v5104_v44, %v5103_v4 }
 0x317   : > { %3518 = vmatmul.mubr.bf16.gmra.mrb[112].mxu1 %v8590_v26 }
 0x318   : > { %3525 = vmatprep.mubr.bf16.mxu1 %v8591_v3 }
 0x31a   : > { %v4888_v52 = vpop.f32.mrb[8].mxu1  ;;  %v5106_v30 = vpop.f32.mrb[80].mxu0 }
 0x31b   : > { %v4889_v47 = vpop.f32.mrb[9].mxu1  ;;  %v5107_v24 = vpop.f32.mrb[81].mxu0 }
 0x31c   : > { %v7732_v20 = vadd.f32 %v4889_v47, %v4888_v52  ;;  %v7734_v34 = vadd.f32 %v5107_v24, %v5106_v30  ;;  %v4891_v32 = vpop.f32.mrb[10].mxu1  ;;  %v5109_v31 = vpop.f32.mrb[82].mxu0 }
 0x31d   : > { %v4892_v54 = vpop.f32.mrb[11].mxu1  ;;  %v5110_v61 = vpop.f32.mrb[83].mxu0 }
 0x31e   : > { %v7736_v46 = vadd.f32 %v4892_v54, %v4891_v32  ;;  %v7738_v12 = vadd.f32 %v5110_v61, %v5109_v31  ;;  %v8594_v54 = vmul.bf16 %v7613_v49, %v7608_v27 }
 0x31f   : > { %3526 = vmatmul.mubr.bf16.gmra.mrb[116].mxu1 %v8592_v1 }
 0x320   : > { %3533 = vmatprep.mubr.bf16.mxu1 %v8593_v23 }
 0x322   : > { %v4894_v57 = vpop.f32.mrb[12].mxu1  ;;  %v5112_v4 = vpop.f32.mrb[84].mxu0 }
 0x323   : > { %v4895_v33 = vpop.f32.mrb[13].mxu1  ;;  %v5113_v44 = vpop.f32.mrb[85].mxu0 }
 0x324   : > { %v7744_v26 = vadd.f32 %v4895_v33, %v4894_v57  ;;  %v7746_v3 = vadd.f32 %v5113_v44, %v5112_v4  ;;  %v4897_v52 = vpop.f32.mrb[14].mxu1  ;;  %v5115_v30 = vpop.f32.mrb[86].mxu0 }
 0x325   : > { %v4898_v47 = vpop.f32.mrb[15].mxu1  ;;  %v5116_v24 = vpop.f32.mrb[87].mxu0 }
 0x326   : > { %v7748_v32 = vadd.f32 %v4898_v47, %v4897_v52  ;;  %v7750_v31 = vadd.f32 %v5116_v24, %v5115_v30 }
 0x327   : > { %3534 = vmatmul.mubr.bf16.gmra.mrb[120].mxu1 %v7606_v62  ;;  %v8597_v62 = vld [vmem:[#allocation34_spill] sm:$0xff] }
 0x328   : > { %3541 = vmatprep.mubr.bf16.mxu1 %v8594_v54 }
 0x32a   : > { %v4900_v61 = vpop.f32.mrb[16].mxu1  ;;  %v5118_v1 = vpop.f32.mrb[88].mxu0 }
 0x32b   : > { %v4901_v23 = vpop.f32.mrb[17].mxu1  ;;  %v5119_v57 = vpop.f32.mrb[89].mxu0 }
 0x32c   : > { %v7756_v4 = vadd.f32 %v4901_v23, %v4900_v61  ;;  %v7758_v33 = vadd.f32 %v5119_v57, %v5118_v1  ;;  %v4903_v44 = vpop.f32.mrb[18].mxu1  ;;  %v5121_v56 = vpop.f32.mrb[90].mxu0 }
 0x32d   : > { %v4904_v52 = vpop.f32.mrb[19].mxu1  ;;  %v5122_v47 = vpop.f32.mrb[91].mxu0 }
 0x32e   : > { %8595 = vst [vmem:[#allocation35_spill] sm:$0xff] %v7756_v4  ;;  %8596 = vst [vmem:[#allocation39_spill] sm:$0xff] %v7758_v33  ;;  %v7760_v30 = vadd.f32 %v4904_v52, %v4903_v44  ;;  %v7762_v24 = vadd.f32 %v5122_v47, %v5121_v56  ;;  %v8600_v52 = vld [vmem:[#allocation36_spill] sm:$0xff] }
 0x32f   : > { %3542 = vmatmul.mubr.bf16.gmra.mrb[124].mxu1 %v7641_v25  ;;  %v8599_v25 = vmul.bf16 %v6828_v51, %v6855_v13  ;;  %v5826_v13 = vld [vmem:[#allocation12 + $0x210] sm:$0xff]  }
 0x330   : > { %3743 = vmatprep.mubr.bf16.mxu1 %v8597_v62 }
 0x332   : > { %v4906_v49 = vpop.f32.mrb[20].mxu1  ;;  %v5124_v54 = vpop.f32.mrb[92].mxu0 }
 0x333   : > { %v4907_v55 = vpop.f32.mrb[21].mxu1  ;;  %v5125_v53 = vpop.f32.mrb[93].mxu0 }
 0x334   : > { %v7766_v61 = vadd.f32 %v4907_v55, %v4906_v49  ;;  %v7768_v1 = vadd.f32 %v5125_v53, %v5124_v54  ;;  %v4909_v23 = vpop.f32.mrb[22].mxu1  ;;  %v5127_v57 = vpop.f32.mrb[94].mxu0  ;;  %v5825_v55 = vld [vmem:[#allocation12 + $0x208] sm:$0xff]  }
 0x335   : > { %v4910_v4 = vpop.f32.mrb[23].mxu1  ;;  %v5128_v33 = vpop.f32.mrb[95].mxu0 }
 0x336   : > { %v7770_v44 = vadd.f32 %v4910_v4, %v4909_v23  ;;  %v7772_v56 = vadd.f32 %v5128_v33, %v5127_v57 }
 0x337   : > { %3744 = vmatmul.mubr.bf16.vlgmr.msra.gmra.mrb[128].mxu1 %v8599_v25 }
 0x338   : > { %8598 = vst [vmem:[#allocation58_spill] sm:$0xff] %v7770_v44  ;;  %5552 = vmatpush3.bf16.msra.mxu1 %v7678_v48  ;;  %3751 = vmatprep.mubr.bf16.mxu1 %v8600_v52  ;;  %v8603_v52 = vmul.bf16 %v6808_v40, %v6902_v63  ;;  %v8604_v44 = vld [vmem:[#allocation38_spill] sm:$0xff] }
 0x339   : > { %5545 = vmatprep.subr.bf16.mxu1 %v5825_v55  ;;  %v5828_v40 = vld [vmem:[#allocation12 + $0x220] sm:$0xff]  }
 0x33a   : > { %v4912_v53 = vpop.f32.mrb[24].mxu1  ;;  %v5130_v47 = vpop.f32.mrb[96].mxu0 }
 0x33b   : > { %v4913_v62 = vpop.f32.mrb[25].mxu1  ;;  %v5131_v49 = vpop.f32.mrb[97].mxu0 }
 0x33c   : > { %v7779_v54 = vadd.f32 %v4913_v62, %v4912_v53  ;;  %v7781_v4 = vadd.f32 %v5131_v49, %v5130_v47  ;;  %v4915_v33 = vpop.f32.mrb[26].mxu1  ;;  %v5133_v23 = vpop.f32.mrb[98].mxu0  ;;  %5553 = vmatpush3.bf16.msra.mxu1 %v5825_v55  ;;  %v5827_v53 = vld [vmem:[#allocation12 + $0x218] sm:$0xff]  }
 0x33d   : > { %v4916_v57 = vpop.f32.mrb[27].mxu1  ;;  %v5134_v51 = vpop.f32.mrb[99].mxu0  ;;  %5546 = vmatprep.subr.bf16.mxu1 %v5826_v13 }
 0x33e   : > { %8601 = vst [vmem:[#allocation42_spill] sm:$0xff] %v7779_v54  ;;  %8602 = vst [vmem:[#allocation37_spill] sm:$0xff] %v7781_v4  ;;  %v7783_v48 = vadd.f32 %v4916_v57, %v4915_v33  ;;  %v7785_v25 = vadd.f32 %v5134_v51, %v5133_v23 }
 0x33f   : > { %3752 = vmatmul.mubr.bf16.gmra.mrb[132].mxu1 %v8603_v52  ;;  %v8608_v52 = vld [vmem:[#allocation41_spill] sm:$0xff] }
 0x340   : > { %3759 = vmatprep.mubr.bf16.mxu1 %v8604_v44  ;;  %5554 = vmatpush3.bf16.msra.mxu1 %v5826_v13  ;;  %v8607_v13 = vmul.bf16 %v6825_v50, %v6954_v60  ;;  %v5830_v50 = vld [vmem:[#allocation12 + $0x230] sm:$0xff]  }
 0x341   : > { %5547 = vmatprep.subr.bf16.mxu1 %v5827_v53 }
 0x342   : > { %v4918_v47 = vpop.f32.mrb[28].mxu1  ;;  %v5136_v62 = vpop.f32.mrb[100].mxu0 }
 0x343   : > { %v4919_v55 = vpop.f32.mrb[29].mxu1  ;;  %v5137_v49 = vpop.f32.mrb[101].mxu0 }
 0x344   : > { %v7791_v54 = vadd.f32 %v4919_v55, %v4918_v47  ;;  %v7793_v4 = vadd.f32 %v5137_v49, %v5136_v62  ;;  %v4921_v33 = vpop.f32.mrb[30].mxu1  ;;  %v5139_v23 = vpop.f32.mrb[102].mxu0  ;;  %5555 = vmatpush3.bf16.msra.mxu1 %v5827_v53  ;;  %v5829_v47 = vld [vmem:[#allocation12 + $0x228] sm:$0xff]  }
 0x345   : > { %v4922_v57 = vpop.f32.mrb[31].mxu1  ;;  %v5140_v51 = vpop.f32.mrb[103].mxu0  ;;  %5548 = vmatprep.subr.bf16.mxu1 %v5828_v40 }
 0x346   : > { %8605 = vst [vmem:[#allocation43_spill] sm:$0xff] %v7791_v54  ;;  %8606 = vst [vmem:[#allocation46_spill] sm:$0xff] %v7793_v4  ;;  %v7795_v63 = vadd.f32 %v4922_v57, %v4921_v33  ;;  %v7797_v44 = vadd.f32 %v5140_v51, %v5139_v23 }
 0x347   : > { %3760 = vmatmul.mubr.bf16.gmra.mrb[136].mxu1 %v8607_v13  ;;  %v8611_v13 = vmul.bf16 %v6850_v10, %v7011_v18 }
 0x348   : > { %3767 = vmatprep.mubr.bf16.mxu1 %v8608_v52  ;;  %5556 = vmatpush3.bf16.msra.mxu1 %v5828_v40  ;;  %v8612_v52 = vld [vmem:[#allocation45_spill] sm:$0xff] }
 0x349   : > { %5549 = vmatprep.subr.bf16.mxu1 %v5829_v47 }
 0x34a   : > { %v4924_v62 = vpop.f32.mrb[32].mxu1  ;;  %v5142_v55 = vpop.f32.mrb[104].mxu0 }
 0x34b   : > { %v4925_v53 = vpop.f32.mrb[33].mxu1  ;;  %v5143_v49 = vpop.f32.mrb[105].mxu0 }
 0x34c   : > { %v7803_v54 = vadd.f32 %v4925_v53, %v4924_v62  ;;  %v7805_v4 = vadd.f32 %v5143_v49, %v5142_v55  ;;  %v4927_v33 = vpop.f32.mrb[34].mxu1  ;;  %v5145_v23 = vpop.f32.mrb[106].mxu0  ;;  %5557 = vmatpush3.bf16.msra.mxu1 %v5829_v47  ;;  %v5831_v62 = vld [vmem:[#allocation12 + $0x238] sm:$0xff]  }
 0x34d   : > { %v4928_v57 = vpop.f32.mrb[35].mxu1  ;;  %v5146_v51 = vpop.f32.mrb[107].mxu0  ;;  %5550 = vmatprep.subr.bf16.mxu1 %v5830_v50 }
 0x34e   : > { %8609 = vst [vmem:[#allocation40_spill] sm:$0xff] %v7803_v54  ;;  %8610 = vst [vmem:[#allocation47_spill] sm:$0xff] %v7805_v4  ;;  %v7807_v60 = vadd.f32 %v4928_v57, %v4927_v33  ;;  %v7809_v40 = vadd.f32 %v5146_v51, %v5145_v23 }
 0x34f   : > { %3768 = vmatmul.mubr.bf16.gmra.mrb[140].mxu1 %v8611_v13  ;;  %v8616_v13 = vld [vmem:[#allocation48_spill] sm:$0xff] }
 0x350   : > { %3775 = vmatprep.mubr.bf16.mxu1 %v8612_v52  ;;  %5558 = vmatpush3.bf16.msra.mxu1 %v5830_v50  ;;  %v8615_v50 = vmul.bf16 %v6853_v11, %v8564_v22  ;;  %v8619_v11 = vmul.bf16 %v8563_v59, %v8569_v37  ;;  %v8620_v22 = vld [vmem:[#allocation52_spill] sm:$0xff]  ;;  %v8623_v59 = vmul.bf16 %v8568_v21, %v8573_v42  ;;  %v8624_v37 = vld [vmem:[#allocation55_spill] sm:$0xff]  ;;  %v8628_v42 = vld [vmem:[#allocation57_spill] sm:$0xff] }
 0x351   : > { %5551 = vmatprep.subr.bf16.mxu1 %v5831_v62  ;;  %v8627_v21 = vmul.bf16 %v8572_v36, %v8577_v41  ;;  %v8631_v36 = vmul.bf16 %v8576_v19, %v8581_v2  ;;  %v8632_v41 = vld [vmem:[#allocation63_spill] sm:$0xff]  ;;  %v8637_v19 = vmul.bf16 %v8580_v6, %v7356_v29  ;;  %v8638_v2 = vld [vmem:[#allocation65_spill] sm:$0xff] }
 0x352   : > { %v4930_v55 = vpop.f32.mrb[36].mxu1  ;;  %v5148_v53 = vpop.f32.mrb[108].mxu0  ;;  %v5800_v6 = vld [vmem:[#allocation15 + $0x8] sm:$0xff]  }
 0x353   : > { %v4931_v47 = vpop.f32.mrb[37].mxu1  ;;  %v5149_v49 = vpop.f32.mrb[109].mxu0 }
 0x354   : > { %v7815_v54 = vadd.f32 %v4931_v47, %v4930_v55  ;;  %v7817_v4 = vadd.f32 %v5149_v49, %v5148_v53  ;;  %v4933_v33 = vpop.f32.mrb[38].mxu1  ;;  %v5151_v23 = vpop.f32.mrb[110].mxu0  ;;  %5559 = vmatpush3.bf16.msra.mxu1 %v5831_v62 }
 0x355   : > { %v4934_v57 = vpop.f32.mrb[39].mxu1  ;;  %v5152_v51 = vpop.f32.mrb[111].mxu0 }
 0x356   : > { %8613 = vst [vmem:[#allocation50_spill] sm:$0xff] %v7815_v54  ;;  %8614 = vst [vmem:[#allocation44_spill] sm:$0xff] %v7817_v4  ;;  %v7819_v10 = vadd.f32 %v4934_v57, %v4933_v33  ;;  %v7821_v18 = vadd.f32 %v5152_v51, %v5151_v23 }
 0x357   : > { %3776 = vmatmul.mubr.bf16.gmra.mrb[144].mxu1 %v8615_v50 }
 0x358   : > { %3783 = vmatprep.mubr.bf16.mxu1 %v8616_v13 }
 0x35a   : > { %v4936_v52 = vpop.f32.mrb[40].mxu1  ;;  %v5154_v55 = vpop.f32.mrb[112].mxu0 }
 0x35b   : > { %v4937_v47 = vpop.f32.mrb[41].mxu1  ;;  %v5155_v53 = vpop.f32.mrb[113].mxu0 }
 0x35c   : > { %v7827_v49 = vadd.f32 %v4937_v47, %v4936_v52  ;;  %v7829_v54 = vadd.f32 %v5155_v53, %v5154_v55  ;;  %v4939_v62 = vpop.f32.mrb[42].mxu1  ;;  %v5157_v4 = vpop.f32.mrb[114].mxu0 }
 0x35d   : > { %v4940_v33 = vpop.f32.mrb[43].mxu1  ;;  %v5158_v57 = vpop.f32.mrb[115].mxu0 }
 0x35e   : > { %8617 = vst [vmem:[#allocation51_spill] sm:$0xff] %v7827_v49  ;;  %8618 = vst [vmem:[#allocation53_spill] sm:$0xff] %v7829_v54  ;;  %v7831_v23 = vadd.f32 %v4940_v33, %v4939_v62  ;;  %v7833_v51 = vadd.f32 %v5158_v57, %v5157_v4 }
 0x35f   : > { %3784 = vmatmul.mubr.bf16.gmra.mrb[148].mxu1 %v8619_v11 }
 0x360   : > { %3791 = vmatprep.mubr.bf16.mxu1 %v8620_v22 }
 0x362   : > { %v4942_v50 = vpop.f32.mrb[44].mxu1  ;;  %v5160_v13 = vpop.f32.mrb[116].mxu0 }
 0x363   : > { %v4943_v52 = vpop.f32.mrb[45].mxu1  ;;  %v5161_v47 = vpop.f32.mrb[117].mxu0 }
 0x364   : > { %v7839_v55 = vadd.f32 %v4943_v52, %v4942_v50  ;;  %v7841_v53 = vadd.f32 %v5161_v47, %v5160_v13  ;;  %v4945_v49 = vpop.f32.mrb[46].mxu1  ;;  %v5163_v54 = vpop.f32.mrb[118].mxu0 }
 0x365   : > { %v4946_v62 = vpop.f32.mrb[47].mxu1  ;;  %v5164_v33 = vpop.f32.mrb[119].mxu0 }
 0x366   : > { %8621 = vst [vmem:[#allocation49_spill] sm:$0xff] %v7839_v55  ;;  %8622 = vst [vmem:[#allocation54_spill] sm:$0xff] %v7841_v53  ;;  %v7843_v4 = vadd.f32 %v4946_v62, %v4945_v49  ;;  %v7845_v57 = vadd.f32 %v5164_v33, %v5163_v54 }
 0x367   : > { %3792 = vmatmul.mubr.bf16.gmra.mrb[152].mxu1 %v8623_v59 }
 0x368   : > { %3799 = vmatprep.mubr.bf16.mxu1 %v8624_v37 }
 0x36a   : > { %v4948_v11 = vpop.f32.mrb[48].mxu1  ;;  %v5166_v22 = vpop.f32.mrb[120].mxu0 }
 0x36b   : > { %v4949_v50 = vpop.f32.mrb[49].mxu1  ;;  %v5167_v52 = vpop.f32.mrb[121].mxu0 }
 0x36c   : > { %v7851_v13 = vadd.f32 %v4949_v50, %v4948_v11  ;;  %v7853_v47 = vadd.f32 %v5167_v52, %v5166_v22  ;;  %v4951_v55 = vpop.f32.mrb[50].mxu1  ;;  %v5169_v53 = vpop.f32.mrb[122].mxu0 }
 0x36d   : > { %v4952_v49 = vpop.f32.mrb[51].mxu1  ;;  %v5170_v62 = vpop.f32.mrb[123].mxu0 }
 0x36e   : > { %8625 = vst [vmem:[#allocation56_spill] sm:$0xff] %v7851_v13  ;;  %8626 = vst [vmem:[#allocation59_spill] sm:$0xff] %v7853_v47  ;;  %v7855_v54 = vadd.f32 %v4952_v49, %v4951_v55  ;;  %v7857_v33 = vadd.f32 %v5170_v62, %v5169_v53 }
 0x36f   : > { %3800 = vmatmul.mubr.bf16.gmra.mrb[156].mxu1 %v8627_v21 }
 0x370   : > { %3807 = vmatprep.mubr.bf16.mxu1 %v8628_v42 }
 0x372   : > { %v4954_v59 = vpop.f32.mrb[52].mxu1  ;;  %v5172_v37 = vpop.f32.mrb[124].mxu0 }
 0x373   : > { %v4955_v11 = vpop.f32.mrb[53].mxu1  ;;  %v5173_v50 = vpop.f32.mrb[125].mxu0 }
 0x374   : > { %v7863_v22 = vadd.f32 %v4955_v11, %v4954_v59  ;;  %v7865_v52 = vadd.f32 %v5173_v50, %v5172_v37  ;;  %v4957_v13 = vpop.f32.mrb[54].mxu1  ;;  %v5175_v47 = vpop.f32.mrb[126].mxu0 }
 0x375   : > { %v4958_v55 = vpop.f32.mrb[55].mxu1  ;;  %v5176_v49 = vpop.f32.mrb[127].mxu0 }
 0x376   : > { %8629 = vst [vmem:[#allocation60_spill] sm:$0xff] %v7863_v22  ;;  %8630 = vst [vmem:[#allocation64_spill] sm:$0xff] %v7865_v52  ;;  %v7867_v53 = vadd.f32 %v4958_v55, %v4957_v13  ;;  %v7869_v62 = vadd.f32 %v5176_v49, %v5175_v47 }
 0x377   : > { %3808 = vmatmul.mubr.bf16.gmra.mrb[160].mxu1 %v8631_v36  ;;  %v5799_v36 = vld [vmem:[#allocation15] sm:$0xff]  }
 0x378   : > { %3815 = vmatprep.mubr.bf16.mxu1 %v8632_v41  ;;  %5496 = vmatprep.subr.bf16.mxu0 %v5799_v36 }
 0x379   : > { %5497 = vmatpush3.bf16.msra.mxu0 %v5799_v36  ;;  %v5801_v36 = vld [vmem:[#allocation15 + $0x10] sm:$0xff]  }
 0x37a   : > { %v4960_v21 = vpop.f32.mrb[56].mxu1  ;;  %v5178_v42 = vpop.f32.mrb[128].mxu0  ;;  %5498 = vmatprep.subr.bf16.mxu0 %v5800_v6 }
 0x37b   : > { %v4961_v59 = vpop.f32.mrb[57].mxu1  ;;  %v5179_v11 = vpop.f32.mrb[129].mxu0 }
 0x37c   : > { %v7875_v37 = vadd.f32 %v4961_v59, %v4960_v21  ;;  %v7877_v50 = vadd.f32 %v5179_v11, %v5178_v42  ;;  %v4963_v22 = vpop.f32.mrb[58].mxu1  ;;  %v5181_v52 = vpop.f32.mrb[130].mxu0 }
 0x37d   : > { %v4964_v13 = vpop.f32.mrb[59].mxu1  ;;  %v5182_v55 = vpop.f32.mrb[131].mxu0  ;;  %5499 = vmatpush3.bf16.msra.mxu0 %v5800_v6 }
 0x37e   : > { %8633 = vst [vmem:[#allocation66_spill] sm:$0xff] %v7875_v37  ;;  %8634 = vst [vmem:[#allocation68_spill] sm:$0xff] %v7877_v50  ;;  %v7879_v47 = vadd.f32 %v4964_v13, %v4963_v22  ;;  %v7881_v49 = vadd.f32 %v5182_v55, %v5181_v52  ;;  %5500 = vmatprep.subr.bf16.mxu0 %v5801_v36  ;;  %v8647_v50 = vmul.bf16 %v7414_v8, %v7468_v14  ;;  %v5803_v8 = vld [vmem:[#allocation15 + $0x20] sm:$0xff]  }
 0x37f   : > { %3816 = vmatmul.mubr.bf16.gmra.mrb[164].mxu1 %v8637_v19  ;;  %v8643_v19 = vmul.bf16 %v7345_v9, %v8586_v28 }
 0x380   : > { %8635 = vst [vmem:[#allocation34_spill] sm:$0xff] %v7879_v47  ;;  %8636 = vst [vmem:[#allocation36_spill] sm:$0xff] %v7881_v49  ;;  %3823 = vmatprep.mubr.bf16.mxu1 %v8638_v2  ;;  %v8644_v2 = vld [vmem:[#allocation67_spill] sm:$0xff] }
 0x381   : > { %5501 = vmatpush3.bf16.msra.mxu0 %v5801_v36 }
 0x382   : > { %v4966_v41 = vpop.f32.mrb[60].mxu1  ;;  %v5184_v21 = vpop.f32.mrb[132].mxu0 }
 0x383   : > { %v4967_v42 = vpop.f32.mrb[61].mxu1  ;;  %v5185_v59 = vpop.f32.mrb[133].mxu0 }
 0x384   : > { %v7887_v11 = vadd.f32 %v4967_v42, %v4966_v41  ;;  %v7889_v37 = vadd.f32 %v5185_v59, %v5184_v21  ;;  %v4969_v22 = vpop.f32.mrb[62].mxu1  ;;  %v5187_v52 = vpop.f32.mrb[134].mxu0  ;;  %v7899_v41 = vld [vmem:[#allocation14] ss:$0 sm:$0xff] }
 0x385   : > { %v4970_v13 = vpop.f32.mrb[63].mxu1  ;;  %v5188_v55 = vpop.f32.mrb[135].mxu0  ;;  %v3271_v14 = vadd.f32 %v7720_v38, %v7899_v41 }
 0x386   : > { %8639 = vst [vmem:[#allocation38_spill] sm:$0xff] %v7887_v11  ;;  %8640 = vst [vmem:[#allocation41_spill] sm:$0xff] %v7889_v37  ;;  %v7891_v47 = vadd.f32 %v4970_v13, %v4969_v22  ;;  %v7893_v29 = vadd.f32 %v5188_v55, %v5187_v52  ;;  %v8645_v52 = vld [vmem:[#allocation61_spill] sm:$0xff]  ;;  %v8646_v11 = vld [vmem:[#allocation62_spill] sm:$0xff] }
 0x387   : > { %3824 = vmatmul.mubr.bf16.gmra.mrb[168].mxu1 %v8643_v19  ;;  %v3263_v13 = vadd.f32 %v8645_v52, %v7899_v41  ;;  %v5802_v52 = vld [vmem:[#allocation15 + $0x18] sm:$0xff]  }
 0x388   : > { %8641 = vst [vmem:[#allocation45_spill] sm:$0xff] %v7891_v47  ;;  %8642 = vst [vmem:[#allocation48_spill] sm:$0xff] %v7893_v29  ;;  %3831 = vmatprep.mubr.bf16.mxu1 %v8644_v2  ;;  %v3266_v29 = vadd.f32 %v8646_v11, %v7899_v41  ;;  %5502 = vmatprep.subr.bf16.mxu0 %v5802_v52 }
 0x389   : > { %5503 = vmatpush3.bf16.msra.mxu0 %v5802_v52 }
 0x38a   : > { %v4988_v21 = vpop.f32.mrb[64].mxu1  ;;  %v5190_v42 = vpop.f32.mrb[136].mxu0  ;;  %5504 = vmatprep.subr.bf16.mxu0 %v5803_v8 }
 0x38b   : > { %v4989_v59 = vpop.f32.mrb[65].mxu1  ;;  %v5191_v22 = vpop.f32.mrb[137].mxu0 }
 0x38c   : > { %v4990_v55 = vadd.f32 %v4989_v59, %v4988_v21  ;;  %v7903_v47 = vadd.f32 %v5191_v22, %v5190_v42  ;;  %v4991_v9 = vpop.f32.mrb[66].mxu1  ;;  %v5193_v28 = vpop.f32.mrb[138].mxu0 }
 0x38d   : > { %v4992_v19 = vpop.f32.mrb[67].mxu1  ;;  %v5194_v2 = vpop.f32.mrb[139].mxu0  ;;  %5505 = vmatpush3.bf16.msra.mxu0 %v5803_v8 }
 0x38e   : > { %v3424_v6 = vadd.f32 %v4990_v55, %v3263_v13  ;;  %v4993_v37 = vadd.f32 %v4992_v19, %v4991_v9  ;;  %v7907_v49 = vadd.f32 %v5194_v2, %v5193_v28  ;;  %v8648_v28 = vmul.bf16 %v7461_v15, %v7522_v5  ;;  %v5804_v19 = vld [vmem:[#allocation15 + $0x28] sm:$0xff]   ;;  %v5805_v15 = vld [vmem:[#allocation15 + $0x30] sm:$0xff]  }
 0x38f   : > { %3832 = vmatmul.mubr.bf16.gmra.mrb[172].mxu1 %v8647_v50  ;;  %5506 = vmatprep.subr.bf16.mxu0 %v5804_v19  ;;  %v3279_v5 = vadd.f32 %v7732_v20, %v7899_v41 }
 0x390   : > { %v3427_v21 = vadd.f32 %v4993_v37, %v3266_v29  ;;  %3839 = vmatprep.mubr.bf16.mxu1 %v7598_v58  ;;  %v7914_v42 = vadd.f32 %v7722_v7, %v3424_v6 }
 0x391   : > { %5507 = vmatpush3.bf16.msra.mxu0 %v5804_v19 }
 0x392   : > { %v4994_v36 = vpop.f32.mrb[68].mxu1  ;;  %v7916_v59 = vpop.f32.mrb[140].mxu0  ;;  %v7919_v11 = vadd.f32 %v7726_v16, %v3427_v21  ;;  %v3274_v16 = vadd.f32 %v7724_v35, %v7899_v41  ;;  %5508 = vmatprep.subr.bf16.mxu0 %v5805_v15 }
 0x393   : > { %v4995_v22 = vpop.f32.mrb[69].mxu1  ;;  %v7921_v13 = vpop.f32.mrb[141].mxu0 }
 0x394   : > { %v4996_v37 = vadd.f32 %v4995_v22, %v4994_v36  ;;  %v4997_v58 = vpop.f32.mrb[70].mxu1  ;;  %v7925_v50 = vpop.f32.mrb[142].mxu0 }
 0x395   : > { %v4998_v7 = vpop.f32.mrb[71].mxu1  ;;  %v7927_v29 = vpop.f32.mrb[143].mxu0  ;;  %5509 = vmatpush3.bf16.msra.mxu0 %v5805_v15  ;;  %v3290_v15 = vadd.f32 %v7748_v32, %v7899_v41 }
 0x396   : > { %v3432_v55 = vadd.f32 %v4996_v37, %v3271_v14  ;;  %v4999_v9 = vadd.f32 %v4998_v7, %v4997_v58  ;;  %v8649_v7 = vmul.bf16 %v7533_v45, %v7568_v17  ;;  %v3287_v45 = vadd.f32 %v7744_v26, %v7899_v41  ;;  %v8652_v26 = vld [vmem:[#allocation39_spill] sm:$0xff] }
 0x397   : > { %3840 = vmatmul.mubr.bf16.gmra.mrb[176].mxu1 %v8648_v28 }
 0x398   : > { %v3435_v38 = vadd.f32 %v4999_v9, %v3274_v16  ;;  %3847 = vmatprep.mubr.bf16.mxu1 %v7629_v0  ;;  %v7936_v2 = vadd.f32 %v7734_v34, %v3432_v55  ;;  %v5806_v16 = vld [vmem:[#allocation15 + $0x38] sm:$0xff]  }
 0x399   : > { %5510 = vmatprep.subr.bf16.mxu0 %v5806_v16 }
 0x39a   : > { %v5000_v6 = vpop.f32.mrb[72].mxu1  ;;  %v7938_v52 = vpop.f32.mrb[144].mxu0  ;;  %v7941_v35 = vadd.f32 %v7738_v12, %v3435_v38  ;;  %v3282_v12 = vadd.f32 %v7736_v46, %v7899_v41  ;;  %5511 = vmatpush3.bf16.msra.mxu0 %v5806_v16 }
 0x39b   : > { %v5001_v21 = vpop.f32.mrb[73].mxu1  ;;  %v7943_v36 = vpop.f32.mrb[145].mxu0 }
 0x39c   : > { %v5002_v22 = vadd.f32 %v5001_v21, %v5000_v6  ;;  %v5003_v0 = vpop.f32.mrb[74].mxu1  ;;  %v7947_v8 = vpop.f32.mrb[146].mxu0 }
 0x39d   : > { %v5004_v34 = vpop.f32.mrb[75].mxu1  ;;  %v7949_v14 = vpop.f32.mrb[147].mxu0 }
 0x39e   : > { %v3440_v37 = vadd.f32 %v5002_v22, %v3279_v5  ;;  %v5005_v58 = vadd.f32 %v5004_v34, %v5003_v0  ;;  %v8650_v22 = vmul.bf16 %v7578_v43, %v7608_v27  ;;  %v8651_v34 = vmov 0  }
 0x39f   : > { %3848 = vmatmul.mubr.bf16.gmra.mrb[180].mxu1 %v8649_v7 }
 0x3a0   : > { %v3443_v20 = vadd.f32 %v5005_v58, %v3282_v12  ;;  %3855 = vmatprep.mubr.bf16.mxu1 %v7649_v39  ;;  %v7958_v55 = vadd.f32 %v7746_v3, %v3440_v37 }
 0x3a2   : > { %v5006_v9 = vpop.f32.mrb[76].mxu1  ;;  %v7960_v28 = vpop.f32.mrb[148].mxu0  ;;  %v7963_v46 = vadd.f32 %v7750_v31, %v3443_v20  ;;  %v8653_v20 = vld [vmem:[#allocation35_spill] sm:$0xff] }
 0x3a3   : > { %v5007_v19 = vpop.f32.mrb[77].mxu1  ;;  %v7965_v38 = vpop.f32.mrb[149].mxu0 }
 0x3a4   : > { %v5008_v17 = vadd.f32 %v5007_v19, %v5006_v9  ;;  %v5009_v6 = vpop.f32.mrb[78].mxu1  ;;  %v7969_v39 = vpop.f32.mrb[150].mxu0  ;;  %v3295_v9 = vadd.f32 %v8653_v20, %v7899_v41 }
 0x3a5   : > { %v5010_v3 = vpop.f32.mrb[79].mxu1  ;;  %v7971_v21 = vpop.f32.mrb[151].mxu0 }
 0x3a6   : > { %v3448_v5 = vadd.f32 %v5008_v17, %v3287_v45  ;;  %v5011_v31 = vadd.f32 %v5010_v3, %v5009_v6  ;;  %v3298_v6 = vadd.f32 %v7760_v30, %v7899_v41  ;;  %v3303_v30 = vadd.f32 %v7766_v61, %v7899_v41 }
 0x3a7   : > { %3856 = vmatmul.mubr.bf16.gmra.mrb[184].mxu1 %v8650_v22 }
 0x3a8   : > { %v3451_v0 = vadd.f32 %v5011_v31, %v3290_v15  ;;  %3863 = vmatprep.mubr.bf16.mxu1 %v8651_v34  ;;  %v7980_v12 = vadd.f32 %v8652_v26, %v3448_v5  ;;  %v8654_v5 = vld [vmem:[#allocation69_spill] sm:$0xff] }
 0x3aa   : > { %v5012_v37 = vpop.f32.mrb[80].mxu1  ;;  %v7982_v58 = vpop.f32.mrb[152].mxu0  ;;  %v7985_v7 = vadd.f32 %v7762_v24, %v3451_v0 }
 0x3ab   : > { %v5013_v16 = vpop.f32.mrb[81].mxu1  ;;  %v7987_v32 = vpop.f32.mrb[153].mxu0 }
 0x3ac   : > { %v5014_v43 = vadd.f32 %v5013_v16, %v5012_v37  ;;  %v5015_v27 = vpop.f32.mrb[82].mxu1  ;;  %v7991_v19 = vpop.f32.mrb[154].mxu0 }
 0x3ad   : > { %v5016_v45 = vpop.f32.mrb[83].mxu1  ;;  %v7993_v17 = vpop.f32.mrb[155].mxu0 }
 0x3ae   : > { %v3456_v3 = vadd.f32 %v5014_v43, %v3295_v9  ;;  %v5017_v15 = vadd.f32 %v5016_v45, %v5015_v27 }
 0x3af   : > { %3864 = vmatmul.mubr.bf16.gmra.mrb[188].mxu1 %v8651_v34 }
 0x3b0   : > { %v3459_v24 = vadd.f32 %v5017_v15, %v3298_v6  ;;  %5492 = vmatprep.mubr.bf16.mxu1 %v8654_v5  ;;  %v8000_v31 = vadd.f32 %v7768_v1, %v3456_v3  ;;  %v8659_v1 = vld [vmem:[#allocation58_spill] sm:$0xff] }
 0x3b1   : > { %v3306_v6 = vadd.f32 %v8659_v1, %v7899_v41 }
 0x3b2   : > { %v5018_v22 = vpop.f32.mrb[84].mxu1  ;;  %v8002_v0 = vpop.f32.mrb[156].mxu0  ;;  %v8005_v26 = vadd.f32 %v7772_v56, %v3459_v24  ;;  %v8660_v24 = vld [vmem:[#allocation37_spill] sm:$0xff] }
 0x3b3   : > { %8655 = vst [vmem:[#allocation52_spill] sm:$0xff] %v8002_v0  ;;  %v5019_v37 = vpop.f32.mrb[85].mxu1  ;;  %v8007_v16 = vpop.f32.mrb[157].mxu0 }
 0x3b4   : > { %8656 = vst [vmem:[#allocation55_spill] sm:$0xff] %v8007_v16  ;;  %v5020_v20 = vadd.f32 %v5019_v37, %v5018_v22  ;;  %v5021_v9 = vpop.f32.mrb[86].mxu1  ;;  %v8011_v43 = vpop.f32.mrb[158].mxu0 }
 0x3b5   : > { %8657 = vst [vmem:[#allocation57_spill] sm:$0xff] %v8011_v43  ;;  %v5022_v27 = vpop.f32.mrb[87].mxu1  ;;  %v8013_v45 = vpop.f32.mrb[159].mxu0 }
 0x3b6   : > { %8658 = vst [vmem:[#allocation63_spill] sm:$0xff] %v8013_v45  ;;  %v3464_v3 = vadd.f32 %v5020_v20, %v3303_v30  ;;  %v5023_v15 = vadd.f32 %v5022_v27, %v5021_v9  ;;  %v8663_v45 = vld [vmem:[#allocation42_spill] sm:$0xff] }
 0x3b7   : > { %5493 = vmatmul.mubr.bf16.vlgmr.msra.gmra.mrb[192].mxu1 %v8651_v34  ;;  %v3311_v1 = vadd.f32 %v8663_v45, %v7899_v41 }
 0x3b8   : > { %v3467_v56 = vadd.f32 %v5023_v15, %v3306_v6  ;;  %v8019_v5 = vadd.f32 %v8660_v24, %v3464_v3  ;;  %v3314_v6 = vadd.f32 %v7783_v48, %v7899_v41 }
 0x3ba   : > { %v5024_v0 = vpop.f32.mrb[88].mxu1  ;;  %v8021_v61 = vpop.f32.mrb[160].mxu0  ;;  %v8024_v22 = vadd.f32 %v7785_v25, %v3467_v56  ;;  %v8666_v56 = vld [vmem:[#allocation46_spill] sm:$0xff] }
 0x3bb   : > { %8661 = vst [vmem:[#allocation65_spill] sm:$0xff] %v8021_v61  ;;  %v5025_v37 = vpop.f32.mrb[89].mxu1  ;;  %v8026_v43 = vpop.f32.mrb[161].mxu0 }
 0x3bc   : > { %8662 = vst [vmem:[#allocation67_spill] sm:$0xff] %v8026_v43  ;;  %v5026_v30 = vadd.f32 %v5025_v37, %v5024_v0  ;;  %v5027_v20 = vpop.f32.mrb[90].mxu1  ;;  %v8030_v9 = vpop.f32.mrb[162].mxu0 }
 0x3bd   : > { %8664 = vst [vmem:[#allocation61_spill] sm:$0xff] %v8030_v9  ;;  %v5028_v34 = vpop.f32.mrb[91].mxu1  ;;  %v8032_v27 = vpop.f32.mrb[163].mxu0  ;;  %v8669_v9 = vld [vmem:[#allocation43_spill] sm:$0xff] }
 0x3be   : > { %8665 = vst [vmem:[#allocation62_spill] sm:$0xff] %v8032_v27  ;;  %v3472_v3 = vadd.f32 %v5026_v30, %v3311_v1  ;;  %v5029_v15 = vadd.f32 %v5028_v34, %v5027_v20  ;;  %v3319_v27 = vadd.f32 %v8669_v9, %v7899_v41  ;;  %v3322_v34 = vadd.f32 %v7795_v63, %v7899_v41  ;;  %v8673_v9 = vld [vmem:[#allocation40_spill] sm:$0xff] }
 0x3bf   : > { %v3330_v63 = vadd.f32 %v7807_v60, %v7899_v41  ;;  %v3338_v60 = vadd.f32 %v7819_v10, %v7899_v41  ;;  %v3346_v10 = vadd.f32 %v7831_v23, %v7899_v41  ;;  %v3354_v23 = vadd.f32 %v7843_v4, %v7899_v41 }
 0x3c0   : > { %v3475_v25 = vadd.f32 %v5029_v15, %v3314_v6  ;;  %v8037_v24 = vadd.f32 %v8666_v56, %v3472_v3  ;;  %v8672_v15 = vld [vmem:[#allocation47_spill] sm:$0xff]  ;;  %v3362_v4 = vadd.f32 %v7855_v54, %v7899_v41  ;;  %v3370_v54 = vadd.f32 %v7867_v53, %v7899_v41 }
 0x3c2   : > { %v5030_v61 = vpop.f32.mrb[92].mxu1  ;;  %v8039_v43 = vpop.f32.mrb[164].mxu0  ;;  %v8042_v0 = vadd.f32 %v7797_v44, %v3475_v25 }
 0x3c3   : > { %8667 = vst [vmem:[#allocation39_spill] sm:$0xff] %v8039_v43  ;;  %v5031_v45 = vpop.f32.mrb[93].mxu1  ;;  %v8044_v37 = vpop.f32.mrb[165].mxu0 }
 0x3c4   : > { %8668 = vst [vmem:[#allocation35_spill] sm:$0xff] %v8044_v37  ;;  %v5032_v16 = vadd.f32 %v5031_v45, %v5030_v61  ;;  %v5033_v48 = vpop.f32.mrb[94].mxu1  ;;  %v8048_v1 = vpop.f32.mrb[166].mxu0  ;;  %v3327_v45 = vadd.f32 %v8673_v9, %v7899_v41 }
 0x3c5   : > { %8670 = vst [vmem:[#allocation69_spill] sm:$0xff] %v8048_v1  ;;  %v5034_v30 = vpop.f32.mrb[95].mxu1  ;;  %v8050_v20 = vpop.f32.mrb[167].mxu0 }
 0x3c6   : > { %8671 = vst [vmem:[#allocation58_spill] sm:$0xff] %v8050_v20  ;;  %v3480_v6 = vadd.f32 %v5032_v16, %v3319_v27  ;;  %v5035_v3 = vadd.f32 %v5034_v30, %v5033_v48  ;;  %v8674_v30 = vld [vmem:[#allocation44_spill] sm:$0xff] }
 0x3c8   : > { %v3483_v44 = vadd.f32 %v5035_v3, %v3322_v34  ;;  %v8055_v25 = vadd.f32 %v8672_v15, %v3480_v6 }
 0x3ca   : > { %v5036_v56 = vpop.f32.mrb[96].mxu1  ;;  %v8058_v43 = vadd.f32 %v7809_v40, %v3483_v44  ;;  %v8675_v44 = vld [vmem:[#allocation50_spill] sm:$0xff] }
 0x3cb   : > { %v5037_v61 = vpop.f32.mrb[97].mxu1  ;;  %v3335_v15 = vadd.f32 %v8675_v44, %v7899_v41 }
 0x3cc   : > { %v5038_v1 = vadd.f32 %v5037_v61, %v5036_v56  ;;  %v5039_v37 = vpop.f32.mrb[98].mxu1 }
 0x3cd   : > { %v5040_v20 = vpop.f32.mrb[99].mxu1 }
 0x3ce   : > { %v3488_v16 = vadd.f32 %v5038_v1, %v3327_v45  ;;  %v5041_v27 = vadd.f32 %v5040_v20, %v5039_v37  ;;  %v8676_v45 = vld [vmem:[#allocation53_spill] sm:$0xff] }
 0x3d0   : > { %v3491_v48 = vadd.f32 %v5041_v27, %v3330_v63  ;;  %v8065_v34 = vadd.f32 %v8674_v30, %v3488_v16 }
 0x3d2   : > { %v5042_v6 = vpop.f32.mrb[100].mxu1  ;;  %v8068_v40 = vadd.f32 %v7821_v18, %v3491_v48  ;;  %v8677_v48 = vld [vmem:[#allocation51_spill] sm:$0xff] }
 0x3d3   : > { %v5043_v3 = vpop.f32.mrb[101].mxu1  ;;  %v3343_v30 = vadd.f32 %v8677_v48, %v7899_v41 }
 0x3d4   : > { %v5044_v56 = vadd.f32 %v5043_v3, %v5042_v6  ;;  %v5045_v61 = vpop.f32.mrb[102].mxu1 }
 0x3d5   : > { %v5046_v9 = vpop.f32.mrb[103].mxu1 }
 0x3d6   : > { %v3496_v1 = vadd.f32 %v5044_v56, %v3335_v15  ;;  %v5047_v37 = vadd.f32 %v5046_v9, %v5045_v61  ;;  %v8678_v9 = vld [vmem:[#allocation54_spill] sm:$0xff] }
 0x3d8   : > { %v3499_v20 = vadd.f32 %v5047_v37, %v3338_v60  ;;  %v8075_v63 = vadd.f32 %v8676_v45, %v3496_v1 }
 0x3da   : > { %v5048_v16 = vpop.f32.mrb[104].mxu1  ;;  %v8078_v18 = vadd.f32 %v7833_v51, %v3499_v20  ;;  %v8679_v20 = vld [vmem:[#allocation49_spill] sm:$0xff] }
 0x3db   : > { %v5049_v27 = vpop.f32.mrb[105].mxu1  ;;  %v3351_v45 = vadd.f32 %v8679_v20, %v7899_v41 }
 0x3dc   : > { %v5050_v6 = vadd.f32 %v5049_v27, %v5048_v16  ;;  %v5051_v3 = vpop.f32.mrb[106].mxu1 }
 0x3dd   : > { %v5052_v44 = vpop.f32.mrb[107].mxu1 }
 0x3de   : > { %v3504_v15 = vadd.f32 %v5050_v6, %v3343_v30  ;;  %v5053_v56 = vadd.f32 %v5052_v44, %v5051_v3  ;;  %v8680_v44 = vld [vmem:[#allocation59_spill] sm:$0xff] }
 0x3e0   : > { %v3507_v61 = vadd.f32 %v5053_v56, %v3346_v10  ;;  %v8085_v60 = vadd.f32 %v8678_v9, %v3504_v15 }
 0x3e2   : > { %v5054_v1 = vpop.f32.mrb[108].mxu1  ;;  %v8088_v51 = vadd.f32 %v7845_v57, %v3507_v61  ;;  %v8681_v61 = vld [vmem:[#allocation56_spill] sm:$0xff] }
 0x3e3   : > { %v5055_v37 = vpop.f32.mrb[109].mxu1  ;;  %v3359_v9 = vadd.f32 %v8681_v61, %v7899_v41 }
 0x3e4   : > { %v5056_v16 = vadd.f32 %v5055_v37, %v5054_v1  ;;  %v5057_v27 = vpop.f32.mrb[110].mxu1 }
 0x3e5   : > { %v5058_v48 = vpop.f32.mrb[111].mxu1 }
 0x3e6   : > { %v3512_v30 = vadd.f32 %v5056_v16, %v3351_v45  ;;  %v5059_v6 = vadd.f32 %v5058_v48, %v5057_v27  ;;  %v8682_v48 = vld [vmem:[#allocation64_spill] sm:$0xff] }
 0x3e8   : > { %v3515_v3 = vadd.f32 %v5059_v6, %v3354_v23  ;;  %v8095_v10 = vadd.f32 %v8680_v44, %v3512_v30 }
 0x3ea   : > { %v5060_v15 = vpop.f32.mrb[112].mxu1  ;;  %v8098_v57 = vadd.f32 %v7857_v33, %v3515_v3  ;;  %v8685_v3 = vld [vmem:[#allocation60_spill] sm:$0xff] }
 0x3eb   : > { %v5061_v56 = vpop.f32.mrb[113].mxu1  ;;  %v3367_v44 = vadd.f32 %v8685_v3, %v7899_v41 }
 0x3ec   : > { %v5062_v1 = vadd.f32 %v5061_v56, %v5060_v15  ;;  %v5063_v37 = vpop.f32.mrb[114].mxu1 }
 0x3ed   : > { %v5064_v20 = vpop.f32.mrb[115].mxu1 }
 0x3ee   : > { %v3520_v45 = vadd.f32 %v5062_v1, %v3359_v9  ;;  %v5065_v16 = vadd.f32 %v5064_v20, %v5063_v37  ;;  %v8686_v20 = vld [vmem:[#allocation68_spill] sm:$0xff] }
 0x3f0   : > { %v3523_v27 = vadd.f32 %v5065_v16, %v3362_v4  ;;  %v8105_v23 = vadd.f32 %v8682_v48, %v3520_v45  ;;  %v8688_v16 = vld [vmem:[#allocation36_spill] sm:$0xff]  ;;  %v8690_v48 = vld [vmem:[#allocation66_spill] sm:$0xff] }
 0x3f1   : > { %v3375_v3 = vadd.f32 %v8690_v48, %v7899_v41 }
 0x3f2   : > { %8683 = vst [vmem:[#allocation37_spill] sm:$0xff] %v8105_v23  ;;  %v5066_v30 = vpop.f32.mrb[116].mxu1  ;;  %v8108_v33 = vadd.f32 %v7869_v62, %v3523_v27  ;;  %v8691_v23 = vld [vmem:[#allocation34_spill] sm:$0xff] }
 0x3f3   : > { %v5067_v6 = vpop.f32.mrb[117].mxu1  ;;  %v3378_v53 = vadd.f32 %v8691_v23, %v7899_v41 }
 0x3f4   : > { %8684 = vst [vmem:[#allocation42_spill] sm:$0xff] %v8108_v33  ;;  %v5068_v15 = vadd.f32 %v5067_v6, %v5066_v30  ;;  %v5069_v56 = vpop.f32.mrb[118].mxu1 }
 0x3f5   : > { %v5070_v61 = vpop.f32.mrb[119].mxu1 }
 0x3f6   : > { %v3528_v9 = vadd.f32 %v5068_v15, %v3367_v44  ;;  %v5071_v1 = vadd.f32 %v5070_v61, %v5069_v56  ;;  %v8692_v61 = vld [vmem:[#allocation41_spill] sm:$0xff] }
 0x3f8   : > { %v3531_v37 = vadd.f32 %v5071_v1, %v3370_v54  ;;  %v8115_v4 = vadd.f32 %v8686_v20, %v3528_v9  ;;  %v8693_v1 = vld [vmem:[#allocation48_spill] sm:$0xff] }
 0x3fa   : > { %8687 = vst [vmem:[#allocation46_spill] sm:$0xff] %v8115_v4  ;;  %v5072_v45 = vpop.f32.mrb[120].mxu1  ;;  %v8118_v62 = vadd.f32 %v8688_v16, %v3531_v37  ;;  %v8694_v16 = vld [vmem:[#allocation38_spill] sm:$0xff]  ;;  %v8695_v4 = vld [vmem:[#allocation45_spill] sm:$0xff] }
 0x3fb   : > { %v5073_v27 = vpop.f32.mrb[121].mxu1  ;;  %v3383_v48 = vadd.f32 %v8694_v16, %v7899_v41  ;;  %v3386_v23 = vadd.f32 %v8695_v4, %v7899_v41 }
 0x3fc   : > { %8689 = vst [vmem:[#allocation43_spill] sm:$0xff] %v8118_v62  ;;  %v5074_v30 = vadd.f32 %v5073_v27, %v5072_v45  ;;  %v5075_v6 = vpop.f32.mrb[122].mxu1 }
 0x3fd   : > { %v5076_v33 = vpop.f32.mrb[123].mxu1 }
 0x3fe   : > { %v3536_v44 = vadd.f32 %v5074_v30, %v3375_v3  ;;  %v5077_v15 = vadd.f32 %v5076_v33, %v5075_v6 }
 0x400   : > { %v3539_v56 = vadd.f32 %v5077_v15, %v3378_v53  ;;  %v8125_v54 = vadd.f32 %v8692_v61, %v3536_v44 }
 0x402   : > { %v5078_v9 = vpop.f32.mrb[124].mxu1  ;;  %v8128_v37 = vadd.f32 %v8693_v1, %v3539_v56 }
 0x403   : > { %v5079_v20 = vpop.f32.mrb[125].mxu1 }
 0x404   : > { %v5080_v45 = vadd.f32 %v5079_v20, %v5078_v9  ;;  %v5081_v27 = vpop.f32.mrb[126].mxu1 }
 0x405   : > { %v5082_v62 = vpop.f32.mrb[127].mxu1 }
 0x406   : > { %v3544_v3 = vadd.f32 %v5080_v45, %v3383_v48  ;;  %v5083_v33 = vadd.f32 %v5082_v62, %v5081_v27 }
 0x408   : > { %v3547_v30 = vadd.f32 %v5083_v33, %v3386_v23  ;;  %v8135_v6 = vadd.f32 %v7903_v47, %v3544_v3 }
 0x40a   : > { %v5212_v53 = vpop.f32.mrb[128].mxu1  ;;  %v8138_v44 = vadd.f32 %v7907_v49, %v3547_v30 }
 0x40b   : > { %v5213_v15 = vpop.f32.mrb[129].mxu1 }
 0x40c   : > { %v5214_v56 = vadd.f32 %v5213_v15, %v5212_v53  ;;  %v5215_v61 = vpop.f32.mrb[130].mxu1 }
 0x40d   : > { %v5216_v1 = vpop.f32.mrb[131].mxu1 }
 0x40e   : > { %v3746_v9 = vadd.f32 %v5214_v56, %v7914_v42  ;;  %v5217_v20 = vadd.f32 %v5216_v1, %v5215_v61 }
 0x410   : > { %v3907_v16 = vadd.f32 %v7921_v13, %v3746_v9  ;;  %v3749_v41 = vadd.f32 %v5217_v20, %v7919_v11 }
 0x412   : > { %v3910_v4 = vadd.f32 %v7927_v29, %v3749_v41  ;;  %v5218_v62 = vpop.f32.mrb[132].mxu1  ;;  %v4033_v48 = vmax.f32 %v3907_v16, 0.0 }
 0x413   : > { %v5219_v47 = vpop.f32.mrb[133].mxu1 }
 0x414   : > { %v4034_v45 = vmax.f32 %v3910_v4, 0.0  ;;  %v5220_v27 = vadd.f32 %v5219_v47, %v5218_v62  ;;  %v5221_v49 = vpop.f32.mrb[134].mxu1 }
 0x415   : > { %v5222_v23 = vpop.f32.mrb[135].mxu1 }
 0x416   : > { %v3754_v3 = vadd.f32 %v5220_v27, %v7936_v2  ;;  %v5223_v33 = vadd.f32 %v5222_v23, %v5221_v49  ;;  %v4065_v30 = vpack.c.bf16 %v4034_v45, %v4033_v48 }
 0x418   : > { %v3915_v42 = vadd.f32 %v7916_v59, %v3754_v3  ;;  %v3757_v53 = vadd.f32 %v5223_v33, %v7941_v35  ;;  %5512 = vmatprep.mubr.bf16.mxu0 %v4065_v30 }
 0x41a   : > { %v3918_v11 = vadd.f32 %v7925_v50, %v3757_v53  ;;  %v5224_v13 = vpop.f32.mrb[136].mxu1  ;;  %v4035_v15 = vmax.f32 %v3915_v42, 0.0 }
 0x41b   : > { %v5225_v29 = vpop.f32.mrb[137].mxu1 }
 0x41c   : > { %v4036_v56 = vmax.f32 %v3918_v11, 0.0  ;;  %v5226_v61 = vadd.f32 %v5225_v29, %v5224_v13  ;;  %v5227_v1 = vpop.f32.mrb[138].mxu1 }
 0x41d   : > { %v5228_v9 = vpop.f32.mrb[139].mxu1 }
 0x41e   : > { %v4066_v20 = vpack.c.bf16 %v4036_v56, %v4035_v15  ;;  %v3762_v16 = vadd.f32 %v5226_v61, %v7958_v55  ;;  %v5229_v2 = vadd.f32 %v5228_v9, %v5227_v1 }
 0x420   : > { %v3923_v41 = vadd.f32 %v7943_v36, %v3762_v16  ;;  %v3765_v59 = vadd.f32 %v5229_v2, %v7963_v46  ;;  %5513 = vmatmul.mubr.bf16.vlgmr.msra.gmra.mrb[168].mxu0 %v4066_v20 }
 0x422   : > { %v3926_v35 = vadd.f32 %v7949_v14, %v3765_v59  ;;  %v5230_v4 = vpop.f32.mrb[140].mxu1  ;;  %v4037_v62 = vmax.f32 %v3923_v41, 0.0 }
 0x423   : > { %v5231_v50 = vpop.f32.mrb[141].mxu1 }
 0x424   : > { %v4038_v47 = vmax.f32 %v3926_v35, 0.0  ;;  %v5232_v48 = vadd.f32 %v5231_v50, %v5230_v4  ;;  %v5233_v45 = vpop.f32.mrb[142].mxu1 }
 0x425   : > { %v5234_v27 = vpop.f32.mrb[143].mxu1 }
 0x426   : > { %v3770_v49 = vadd.f32 %v5232_v48, %v7980_v12  ;;  %v5235_v23 = vadd.f32 %v5234_v27, %v5233_v45  ;;  %v4067_v3 = vpack.c.bf16 %v4038_v47, %v4037_v62 }
 0x428   : > { %v3931_v55 = vadd.f32 %v7938_v52, %v3770_v49  ;;  %v3773_v36 = vadd.f32 %v5235_v23, %v7985_v7  ;;  %5516 = vmatprep.mubr.bf16.mxu0 %v4067_v3 }
 0x42a   : > { %v3934_v46 = vadd.f32 %v7947_v8, %v3773_v36  ;;  %v5236_v33 = vpop.f32.mrb[144].mxu1  ;;  %v4039_v30 = vmax.f32 %v3931_v55, 0.0 }
 0x42b   : > { %v5237_v14 = vpop.f32.mrb[145].mxu1 }
 0x42c   : > { %v4040_v42 = vmax.f32 %v3934_v46, 0.0  ;;  %v5238_v53 = vadd.f32 %v5237_v14, %v5236_v33  ;;  %v5239_v11 = vpop.f32.mrb[146].mxu1 }
 0x42d   : > { %v5240_v13 = vpop.f32.mrb[147].mxu1 }
 0x42e   : > { %v3778_v29 = vadd.f32 %v5238_v53, %v8000_v31  ;;  %v5241_v15 = vadd.f32 %v5240_v13, %v5239_v11  ;;  %v4068_v12 = vpack.c.bf16 %v4040_v42, %v4039_v30 }
 0x430   : > { %v3939_v56 = vadd.f32 %v7965_v38, %v3778_v29  ;;  %v3781_v52 = vadd.f32 %v5241_v15, %v8005_v26  ;;  %5517 = vmatmul.mubr.bf16.gmra.mrb[172].mxu0 %v4068_v12 }
 0x432   : > { %v3942_v7 = vadd.f32 %v7971_v21, %v3781_v52  ;;  %v5242_v61 = vpop.f32.mrb[148].mxu1  ;;  %v4041_v1 = vmax.f32 %v3939_v56, 0.0 }
 0x433   : > { %v5243_v8 = vpop.f32.mrb[149].mxu1 }
 0x434   : > { %v4042_v9 = vmax.f32 %v3942_v7, 0.0  ;;  %v5244_v20 = vadd.f32 %v5243_v8, %v5242_v61  ;;  %v5245_v16 = vpop.f32.mrb[150].mxu1  ;;  %v8696_v61 = vld [vmem:[#allocation55_spill] sm:$0xff] }
 0x435   : > { %v5246_v2 = vpop.f32.mrb[151].mxu1 }
 0x436   : > { %v3786_v41 = vadd.f32 %v5244_v20, %v8019_v5  ;;  %v5247_v59 = vadd.f32 %v5246_v2, %v5245_v16  ;;  %v4069_v31 = vpack.c.bf16 %v4042_v9, %v4041_v1 }
 0x438   : > { %v3947_v35 = vadd.f32 %v7960_v28, %v3786_v41  ;;  %v3789_v38 = vadd.f32 %v5247_v59, %v8024_v22  ;;  %5520 = vmatprep.mubr.bf16.mxu0 %v4069_v31 }
 0x43a   : > { %v3950_v26 = vadd.f32 %v7969_v39, %v3789_v38  ;;  %v5248_v4 = vpop.f32.mrb[152].mxu1  ;;  %v4043_v50 = vmax.f32 %v3947_v35, 0.0  ;;  %v8698_v38 = vld [vmem:[#allocation52_spill] sm:$0xff] }
 0x43b   : > { %v5249_v21 = vpop.f32.mrb[153].mxu1 }
 0x43c   : > { %v4044_v62 = vmax.f32 %v3950_v26, 0.0  ;;  %v5250_v47 = vadd.f32 %v5249_v21, %v5248_v4  ;;  %v5251_v48 = vpop.f32.mrb[154].mxu1 }
 0x43d   : > { %v5252_v45 = vpop.f32.mrb[155].mxu1 }
 0x43e   : > { %v3794_v27 = vadd.f32 %v5250_v47, %v8037_v24  ;;  %v5253_v49 = vadd.f32 %v5252_v45, %v5251_v48  ;;  %v4070_v5 = vpack.c.bf16 %v4044_v62, %v4043_v50 }
 0x440   : > { %v3955_v23 = vadd.f32 %v7987_v32, %v3794_v27  ;;  %v3797_v28 = vadd.f32 %v5253_v49, %v8042_v0  ;;  %5521 = vmatmul.mubr.bf16.gmra.mrb[176].mxu0 %v4070_v5 }
 0x442   : > { %v3958_v22 = vadd.f32 %v7993_v17, %v3797_v28  ;;  %v5254_v3 = vpop.f32.mrb[156].mxu1  ;;  %v4045_v55 = vmax.f32 %v3955_v23, 0.0  ;;  %v8700_v28 = vld [vmem:[#allocation67_spill] sm:$0xff] }
 0x443   : > { %v5255_v39 = vpop.f32.mrb[157].mxu1 }
 0x444   : > { %v4046_v36 = vmax.f32 %v3958_v22, 0.0  ;;  %v5256_v46 = vadd.f32 %v5255_v39, %v5254_v3  ;;  %v5257_v33 = vpop.f32.mrb[158].mxu1 }
 0x445   : > { %v5258_v14 = vpop.f32.mrb[159].mxu1 }
 0x446   : > { %v3802_v30 = vadd.f32 %v5256_v46, %v8055_v25  ;;  %v5259_v42 = vadd.f32 %v5258_v14, %v5257_v33  ;;  %v4071_v24 = vpack.c.bf16 %v4046_v36, %v4045_v55 }
 0x448   : > { %v3963_v53 = vadd.f32 %v7982_v58, %v3802_v30  ;;  %v3805_v32 = vadd.f32 %v5259_v42, %v8058_v43  ;;  %5524 = vmatprep.mubr.bf16.mxu0 %v4071_v24  ;;  %v8697_v43 = vld [vmem:[#allocation63_spill] sm:$0xff] }
 0x44a   : > { %v3966_v0 = vadd.f32 %v7991_v19, %v3805_v32  ;;  %v5260_v11 = vpop.f32.mrb[160].mxu1  ;;  %v4047_v13 = vmax.f32 %v3963_v53, 0.0  ;;  %v8702_v32 = vld [vmem:[#allocation65_spill] sm:$0xff] }
 0x44b   : > { %v5261_v17 = vpop.f32.mrb[161].mxu1 }
 0x44c   : > { %v4048_v29 = vmax.f32 %v3966_v0, 0.0  ;;  %v5262_v15 = vadd.f32 %v5261_v17, %v5260_v11  ;;  %v5263_v12 = vpop.f32.mrb[162].mxu1 }
 0x44d   : > { %v5264_v56 = vpop.f32.mrb[163].mxu1 }
 0x44e   : > { %v3810_v52 = vadd.f32 %v5262_v15, %v8065_v34  ;;  %v5265_v7 = vadd.f32 %v5264_v56, %v5263_v12  ;;  %v4072_v25 = vpack.c.bf16 %v4048_v29, %v4047_v13 }
 0x450   : > { %v3971_v8 = vadd.f32 %v8696_v61, %v3810_v52  ;;  %v3813_v58 = vadd.f32 %v5265_v7, %v8068_v40  ;;  %5525 = vmatmul.mubr.bf16.gmra.mrb[180].mxu0 %v4072_v25  ;;  %v8699_v40 = vld [vmem:[#allocation57_spill] sm:$0xff] }
 0x451   : > { %v8704_v25 = vld [vmem:[#allocation37_spill] sm:$0xff] }
 0x452   : > { %v3974_v1 = vadd.f32 %v8697_v43, %v3813_v58  ;;  %v5266_v9 = vpop.f32.mrb[164].mxu1  ;;  %v4049_v20 = vmax.f32 %v3971_v8, 0.0  ;;  %v8705_v58 = vld [vmem:[#allocation35_spill] sm:$0xff] }
 0x453   : > { %v5267_v19 = vpop.f32.mrb[165].mxu1 }
 0x454   : > { %v4050_v16 = vmax.f32 %v3974_v1, 0.0  ;;  %v5268_v2 = vadd.f32 %v5267_v19, %v5266_v9  ;;  %v5269_v41 = vpop.f32.mrb[166].mxu1  ;;  %v8706_v1 = vld [vmem:[#allocation42_spill] sm:$0xff] }
 0x455   : > { %v5270_v59 = vpop.f32.mrb[167].mxu1 }
 0x456   : > { %v3818_v31 = vadd.f32 %v5268_v2, %v8075_v63  ;;  %v5271_v35 = vadd.f32 %v5270_v59, %v5269_v41  ;;  %v4073_v34 = vpack.c.bf16 %v4050_v16, %v4049_v20 }
 0x458   : > { %v3979_v26 = vadd.f32 %v8698_v38, %v3818_v31  ;;  %v3821_v4 = vadd.f32 %v5271_v35, %v8078_v18  ;;  %5528 = vmatprep.mubr.bf16.mxu0 %v4073_v34  ;;  %v8701_v18 = vld [vmem:[#allocation62_spill] sm:$0xff] }
 0x459   : > { %v8708_v34 = vld [vmem:[#allocation46_spill] sm:$0xff] }
 0x45a   : > { %v3982_v21 = vadd.f32 %v8699_v40, %v3821_v4  ;;  %v5272_v50 = vpop.f32.mrb[168].mxu1  ;;  %v4051_v47 = vmax.f32 %v3979_v26, 0.0  ;;  %v8709_v40 = vld [vmem:[#allocation39_spill] sm:$0xff] }
 0x45b   : > { %v5273_v62 = vpop.f32.mrb[169].mxu1 }
 0x45c   : > { %v4052_v48 = vmax.f32 %v3982_v21, 0.0  ;;  %v5274_v45 = vadd.f32 %v5273_v62, %v5272_v50  ;;  %v5275_v27 = vpop.f32.mrb[170].mxu1  ;;  %v8710_v50 = vld [vmem:[#allocation43_spill] sm:$0xff] }
 0x45d   : > { %v5276_v49 = vpop.f32.mrb[171].mxu1 }
 0x45e   : > { %v3826_v5 = vadd.f32 %v5274_v45, %v8085_v60  ;;  %v5277_v23 = vadd.f32 %v5276_v49, %v5275_v27  ;;  %v4074_v63 = vpack.c.bf16 %v4052_v48, %v4051_v47  ;;  %v8711_v47 = vld [vmem:[#allocation69_spill] sm:$0xff] }
 0x460   : > { %v3987_v22 = vadd.f32 %v8700_v28, %v3826_v5  ;;  %v3829_v3 = vadd.f32 %v5277_v23, %v8088_v51  ;;  %5529 = vmatmul.mubr.bf16.gmra.mrb[184].mxu0 %v4074_v63  ;;  %v8703_v51 = vld [vmem:[#allocation61_spill] sm:$0xff] }
 0x462   : > { %v3990_v39 = vadd.f32 %v8701_v18, %v3829_v3  ;;  %v5278_v55 = vpop.f32.mrb[172].mxu1  ;;  %v4053_v46 = vmax.f32 %v3987_v22, 0.0 }
 0x463   : > { %v5279_v36 = vpop.f32.mrb[173].mxu1 }
 0x464   : > { %v4054_v33 = vmax.f32 %v3990_v39, 0.0  ;;  %v5280_v14 = vadd.f32 %v5279_v36, %v5278_v55  ;;  %v5281_v30 = vpop.f32.mrb[174].mxu1 }
 0x465   : > { %v5282_v42 = vpop.f32.mrb[175].mxu1 }
 0x466   : > { %v3834_v24 = vadd.f32 %v5280_v14, %v8095_v10  ;;  %v5283_v53 = vadd.f32 %v5282_v42, %v5281_v30  ;;  %v4075_v60 = vpack.c.bf16 %v4054_v33, %v4053_v46 }
 0x468   : > { %v3995_v0 = vadd.f32 %v8702_v32, %v3834_v24  ;;  %v3837_v11 = vadd.f32 %v5283_v53, %v8098_v57  ;;  %5532 = vmatprep.mubr.bf16.mxu0 %v4075_v60  ;;  %v8707_v57 = vld [vmem:[#allocation58_spill] sm:$0xff] }
 0x46a   : > { %v3998_v17 = vadd.f32 %v8703_v51, %v3837_v11  ;;  %v5284_v13 = vpop.f32.mrb[176].mxu1  ;;  %v4055_v15 = vmax.f32 %v3995_v0, 0.0 }
 0x46b   : > { %v5285_v29 = vpop.f32.mrb[177].mxu1 }
 0x46c   : > { %v4056_v12 = vmax.f32 %v3998_v17, 0.0  ;;  %v5286_v56 = vadd.f32 %v5285_v29, %v5284_v13  ;;  %v5287_v52 = vpop.f32.mrb[178].mxu1 }
 0x46d   : > { %v5288_v7 = vpop.f32.mrb[179].mxu1 }
 0x46e   : > { %v3842_v61 = vadd.f32 %v5286_v56, %v8704_v25  ;;  %v5289_v8 = vadd.f32 %v5288_v7, %v5287_v52  ;;  %v4076_v10 = vpack.c.bf16 %v4056_v12, %v4055_v15  ;;  %v5833_v25 = vld [vmem:[%s6628_s19] sm:$0xff]  }
 0x470   : > { %v4003_v43 = vadd.f32 %v8705_v58, %v3842_v61  ;;  %v3845_v9 = vadd.f32 %v5289_v8, %v8706_v1  ;;  %5533 = vmatmul.mubr.bf16.gmra.mrb[188].mxu0 %v4076_v10  ;;  %v4313_v61 = vunpack.c.l.bf16 %v5833_v25 }
 0x472   : > { %v4006_v19 = vadd.f32 %v8707_v57, %v3845_v9  ;;  %v5290_v20 = vpop.f32.mrb[180].mxu1  ;;  %v4057_v2 = vmax.f32 %v4003_v43, 0.0  ;;  %v4314_v9 = vunpack.c.h.bf16 %v5833_v25  ;;  %v5838_v25 = vld [vmem:[%s6628_s19 + $0x38] sm:$0xff]  }
 0x473   : > { %v5291_v16 = vpop.f32.mrb[181].mxu1 }
 0x474   : > { %v4058_v41 = vmax.f32 %v4006_v19, 0.0  ;;  %v5292_v59 = vadd.f32 %v5291_v16, %v5290_v20  ;;  %v5293_v31 = vpop.f32.mrb[182].mxu1 }
 0x475   : > { %v5294_v35 = vpop.f32.mrb[183].mxu1 }
 0x476   : > { %v3850_v38 = vadd.f32 %v5292_v59, %v8708_v34  ;;  %v5295_v26 = vadd.f32 %v5294_v35, %v5293_v31  ;;  %v4077_v4 = vpack.c.bf16 %v4058_v41, %v4057_v2 }
 0x478   : > { %v4011_v21 = vadd.f32 %v8709_v40, %v3850_v38  ;;  %v3853_v62 = vadd.f32 %v5295_v26, %v8710_v50  ;;  %5536 = vmatprep.mubr.bf16.mxu0 %v4077_v4  ;;  %v5834_v26 = vld [vmem:[%s6628_s19 + $0x18] sm:$0xff]  }
 0x479   : > { %v4319_v4 = vunpack.c.l.bf16 %v5834_v26 }
 0x47a   : > { %v4014_v48 = vadd.f32 %v8711_v47, %v3853_v62  ;;  %v5296_v45 = vpop.f32.mrb[184].mxu1  ;;  %v4059_v49 = vmax.f32 %v4011_v21, 0.0  ;;  %v5835_v21 = vld [vmem:[%s6628_s19 + $0x10] sm:$0xff]  }
 0x47b   : > { %v5297_v27 = vpop.f32.mrb[185].mxu1  ;;  %v4317_v50 = vunpack.c.l.bf16 %v5835_v21 }
 0x47c   : > { %v4060_v5 = vmax.f32 %v4014_v48, 0.0  ;;  %v5298_v23 = vadd.f32 %v5297_v27, %v5296_v45  ;;  %v5299_v63 = vpop.f32.mrb[186].mxu1  ;;  %v4320_v48 = vunpack.c.h.bf16 %v5834_v26 }
 0x47d   : > { %v5300_v28 = vpop.f32.mrb[187].mxu1 }
 0x47e   : > { %v5301_v22 = vadd.f32 %v5300_v28, %v5299_v63  ;;  %v4078_v3 = vpack.c.bf16 %v4060_v5, %v4059_v49  ;;  %v3858_v18 = vadd.f32 %v5298_v23, %v8125_v54  ;;  %v4318_v49 = vunpack.c.h.bf16 %v5835_v21  ;;  %v5840_v21 = vld [vmem:[%s6628_s19 + $0x48] sm:$0xff]  }
 0x480   : > { %5537 = vmatmul.mubr.bf16.gmra.mrb[192].mxu0 %v4078_v3  ;;  %v3861_v39 = vadd.f32 %v5301_v22, %v8128_v37 }
 0x482   : > { %v5302_v55 = vpop.f32.mrb[188].mxu1 }
 0x483   : > { %v5303_v36 = vpop.f32.mrb[189].mxu1 }
 0x484   : > { %v5304_v46 = vadd.f32 %v5303_v36, %v5302_v55  ;;  %v5305_v33 = vpop.f32.mrb[190].mxu1 }
 0x485   : > { %v5306_v14 = vpop.f32.mrb[191].mxu1 }
 0x486   : > { %v5307_v30 = vadd.f32 %v5306_v14, %v5305_v33  ;;  %v3866_v42 = vadd.f32 %v5304_v46, %v8135_v6  ;;  %v8200_v6 = vld [vmem:[#allocation17] ss:$0 sm:$0xff]  ;;  %v5836_v33 = vld [vmem:[%s6628_s19 + $0x28] sm:$0xff]  }
 0x487   : > { %v4323_v14 = vunpack.c.l.bf16 %v5836_v33 }
 0x488   : > { %v3869_v24 = vadd.f32 %v5307_v30, %v8138_v44  ;;  %v5832_v44 = vld [vmem:[%s6628_s19 + $0x8] sm:$0xff]  }
 0x489   : > { %v4315_v52 = vunpack.c.l.bf16 %v5832_v44  ;;  %v4316_v58 = vunpack.c.h.bf16 %v5832_v44 }
 0x48a   : > { %v5494_v53 = vpop.f32.mrb[192].mxu1 }
 0x48b   : > { %v4027_v60 = vadd.f32 %v5494_v53, %v3866_v42  ;;  %v4018_v32 = vpop.f32.mrb[193].mxu1  ;;  %v5837_v42 = vld [vmem:[%s6628_s19 + $0x20] sm:$0xff]  }
 0x48c   : > { %v4019_v0 = vadd.f32 %v4018_v32, %v3858_v18  ;;  %v5495_v11 = vpop.f32.mrb[194].mxu1  ;;  %v4324_v32 = vunpack.c.h.bf16 %v5836_v33 }
 0x48d   : > { %v4030_v54 = vadd.f32 %v5495_v11, %v3869_v24  ;;  %v4021_v51 = vpop.f32.mrb[195].mxu1  ;;  %v4063_v17 = vmax.f32 %v4027_v60, 0.0  ;;  %v4321_v24 = vunpack.c.l.bf16 %v5837_v42 }
 0x48e   : > { %v4022_v37 = vadd.f32 %v4021_v51, %v3861_v39  ;;  %v4061_v29 = vmax.f32 %v4019_v0, 0.0 }
 0x48f   : > { %v4064_v13 = vmax.f32 %v4030_v54, 0.0  ;;  %v4322_v54 = vunpack.c.h.bf16 %v5837_v42  ;;  %v5842_v42 = vld [vmem:[%s6628_s19 + $0x58] sm:$0xff]  }
 0x490   : > { %v4062_v15 = vmax.f32 %v4022_v37, 0.0 }
 0x491   : > { %v4080_v12 = vpack.c.bf16 %v4064_v13, %v4063_v17 }
 0x492   : > { %v4079_v56 = vpack.c.bf16 %v4062_v15, %v4061_v29 }
 0x494   : > { %5540 = vmatprep.mubr.bf16.mxu0 %v4079_v56 }
 0x495   : > { %5541 = vmatmul.mubr.bf16.gmra.mrb[196].mxu0 %v4080_v12 }
 0x4f3   : > { %v5514_v7 = vpop.f32.mrb[168].mxu0 }
 0x4f4   : > { %v4195_v8 = vadd.f32 %v5514_v7, %v8200_v6  ;;  %v4186_v10 = vpop.f32.mrb[169].mxu0 }
 0x4f5   : > { %v4187_v43 = vadd.f32 %v8200_v6, %v4186_v10  ;;  %v5515_v1 = vpop.f32.mrb[170].mxu0  ;;  %v5839_v10 = vld [vmem:[%s6628_s19 + $0x30] sm:$0xff]  }
 0x4f6   : > { %v4347_v57 = vadd.f32 %v4315_v52, %v4195_v8  ;;  %v4198_v19 = vadd.f32 %v5515_v1, %v8200_v6  ;;  %v4189_v20 = vpop.f32.mrb[171].mxu0 }
 0x4f7   : > { %v4345_v16 = vadd.f32 %v4313_v61, %v4187_v43  ;;  %v4190_v2 = vadd.f32 %v8200_v6, %v4189_v20  ;;  %v4327_v61 = vunpack.c.l.bf16 %v5838_v25  ;;  %v4326_v20 = vunpack.c.h.bf16 %v5839_v10 }
 0x4f8   : > { %v4379_v41 = vmax.f32 %v4347_v57, 0.0  ;;  %v4348_v59 = vadd.f32 %v4316_v58, %v4198_v19  ;;  %v4325_v58 = vunpack.c.l.bf16 %v5839_v10  ;;  %v5844_v10 = vld [vmem:[%s6628_s19 + $0x68] sm:$0xff]  }
 0x4f9   : > { %v4377_v31 = vmax.f32 %v4345_v16, 0.0  ;;  %v4346_v35 = vadd.f32 %v4314_v9, %v4190_v2  ;;  %v4328_v9 = vunpack.c.h.bf16 %v5838_v25 }
 0x4fa   : > { %4411 = vst [vmem:[%s8209_s27 + $0x10] sm:$0xff] %v4379_v41  ;;  %v4380_v34 = vmax.f32 %v4348_v59, 0.0 }
 0x4fb   : > { %4409 = vst [vmem:[%s8209_s27] sm:$0xff] %v4377_v31  ;;  %v4378_v38 = vmax.f32 %v4346_v35, 0.0 }
 0x4fc   : > { %4412 = vst [vmem:[%s8209_s27 + $0x18] sm:$0xff] %v4380_v34 }
 0x4fd   : > { %4410 = vst [vmem:[%s8209_s27 + $0x8] sm:$0xff] %v4378_v38 }
 0x503   : > { %v5518_v40 = vpop.f32.mrb[172].mxu0 }
 0x504   : > { %v4211_v62 = vadd.f32 %v5518_v40, %v8200_v6  ;;  %v4202_v47 = vpop.f32.mrb[173].mxu0 }
 0x505   : > { %v4203_v45 = vadd.f32 %v8200_v6, %v4202_v47  ;;  %v5519_v27 = vpop.f32.mrb[174].mxu0  ;;  %v5841_v47 = vld [vmem:[%s6628_s19 + $0x40] sm:$0xff]  }
 0x506   : > { %v4351_v5 = vadd.f32 %v4319_v4, %v4211_v62  ;;  %v4214_v23 = vadd.f32 %v5519_v27, %v8200_v6  ;;  %v4205_v63 = vpop.f32.mrb[175].mxu0 }
 0x507   : > { %v4349_v28 = vadd.f32 %v4317_v50, %v4203_v45  ;;  %v4206_v22 = vadd.f32 %v8200_v6, %v4205_v63  ;;  %v4331_v50 = vunpack.c.l.bf16 %v5840_v21  ;;  %v4330_v63 = vunpack.c.h.bf16 %v5841_v47 }
 0x508   : > { %v4383_v3 = vmax.f32 %v4351_v5, 0.0  ;;  %v4352_v18 = vadd.f32 %v4320_v48, %v4214_v23  ;;  %v4329_v48 = vunpack.c.l.bf16 %v5841_v47  ;;  %v5846_v47 = vld [vmem:[%s6628_s19 + $0x78] sm:$0xff]  }
 0x509   : > { %v4381_v39 = vmax.f32 %v4349_v28, 0.0  ;;  %v4350_v55 = vadd.f32 %v4318_v49, %v4206_v22  ;;  %v4332_v49 = vunpack.c.h.bf16 %v5840_v21 }
 0x50a   : > { %4415 = vst [vmem:[%s8209_s27 + $0x30] sm:$0xff] %v4383_v3  ;;  %v4384_v36 = vmax.f32 %v4352_v18, 0.0 }
 0x50b   : > { %4413 = vst [vmem:[%s8209_s27 + $0x20] sm:$0xff] %v4381_v39  ;;  %v4382_v46 = vmax.f32 %v4350_v55, 0.0 }
 0x50c   : > { %4416 = vst [vmem:[%s8209_s27 + $0x38] sm:$0xff] %v4384_v36 }
 0x50d   : > { %4414 = vst [vmem:[%s8209_s27 + $0x28] sm:$0xff] %v4382_v46 }
 0x513   : > { %v5522_v30 = vpop.f32.mrb[176].mxu0 }
 0x514   : > { %v4227_v53 = vadd.f32 %v5522_v30, %v8200_v6  ;;  %v4218_v60 = vpop.f32.mrb[177].mxu0 }
 0x515   : > { %v4219_v0 = vadd.f32 %v8200_v6, %v4218_v60  ;;  %v5523_v11 = vpop.f32.mrb[178].mxu0  ;;  %v5843_v60 = vld [vmem:[%s6628_s19 + $0x50] sm:$0xff]  }
 0x516   : > { %v4355_v51 = vadd.f32 %v4323_v14, %v4227_v53  ;;  %v4230_v37 = vadd.f32 %v5523_v11, %v8200_v6  ;;  %v4221_v17 = vpop.f32.mrb[179].mxu0 }
 0x517   : > { %v4353_v13 = vadd.f32 %v4321_v24, %v4219_v0  ;;  %v4222_v29 = vadd.f32 %v8200_v6, %v4221_v17  ;;  %v4335_v24 = vunpack.c.l.bf16 %v5842_v42  ;;  %v4334_v17 = vunpack.c.h.bf16 %v5843_v60 }
 0x518   : > { %v4387_v15 = vmax.f32 %v4355_v51, 0.0  ;;  %v4356_v12 = vadd.f32 %v4324_v32, %v4230_v37  ;;  %v4333_v32 = vunpack.c.l.bf16 %v5843_v60 }
 0x519   : > { %v4385_v56 = vmax.f32 %v4353_v13, 0.0  ;;  %v4354_v44 = vadd.f32 %v4322_v54, %v4222_v29  ;;  %v4336_v54 = vunpack.c.h.bf16 %v5842_v42 }
 0x51a   : > { %4419 = vst [vmem:[%s8209_s27 + $0x50] sm:$0xff] %v4387_v15  ;;  %v4388_v52 = vmax.f32 %v4356_v12, 0.0 }
 0x51b   : > { %4417 = vst [vmem:[%s8209_s27 + $0x40] sm:$0xff] %v4385_v56  ;;  %v4386_v7 = vmax.f32 %v4354_v44, 0.0 }
 0x51c   : > { %4420 = vst [vmem:[%s8209_s27 + $0x58] sm:$0xff] %v4388_v52 }
 0x51d   : > { %4418 = vst [vmem:[%s8209_s27 + $0x48] sm:$0xff] %v4386_v7 }
 0x523   : > { %v5526_v8 = vpop.f32.mrb[180].mxu0 }
 0x524   : > { %v4243_v43 = vadd.f32 %v5526_v8, %v8200_v6  ;;  %v4234_v1 = vpop.f32.mrb[181].mxu0 }
 0x525   : > { %v4235_v57 = vadd.f32 %v8200_v6, %v4234_v1  ;;  %v5527_v19 = vpop.f32.mrb[182].mxu0  ;;  %v5845_v1 = vld [vmem:[%s6628_s19 + $0x60] sm:$0xff]  }
 0x526   : > { %v4359_v16 = vadd.f32 %v4327_v61, %v4243_v43  ;;  %v4246_v2 = vadd.f32 %v5527_v19, %v8200_v6  ;;  %v4237_v41 = vpop.f32.mrb[183].mxu0 }
 0x527   : > { %v4357_v59 = vadd.f32 %v4325_v58, %v4235_v57  ;;  %v4238_v31 = vadd.f32 %v8200_v6, %v4237_v41  ;;  %v4339_v58 = vunpack.c.l.bf16 %v5844_v10  ;;  %v4338_v41 = vunpack.c.h.bf16 %v5845_v1 }
 0x528   : > { %v4391_v35 = vmax.f32 %v4359_v16, 0.0  ;;  %v4360_v34 = vadd.f32 %v4328_v9, %v4246_v2  ;;  %v4337_v9 = vunpack.c.l.bf16 %v5845_v1 }
 0x529   : > { %v4389_v38 = vmax.f32 %v4357_v59, 0.0  ;;  %v4358_v26 = vadd.f32 %v4326_v20, %v4238_v31  ;;  %v4340_v20 = vunpack.c.h.bf16 %v5844_v10 }
 0x52a   : > { %4423 = vst [vmem:[%s8209_s27 + $0x70] sm:$0xff] %v4391_v35  ;;  %v4392_v4 = vmax.f32 %v4360_v34, 0.0 }
 0x52b   : > { %4421 = vst [vmem:[%s8209_s27 + $0x60] sm:$0xff] %v4389_v38  ;;  %v4390_v40 = vmax.f32 %v4358_v26, 0.0 }
 0x52c   : > { %4424 = vst [vmem:[%s8209_s27 + $0x78] sm:$0xff] %v4392_v4 }
 0x52d   : > { %4422 = vst [vmem:[%s8209_s27 + $0x68] sm:$0xff] %v4390_v40 }
 0x533   : > { %v5530_v62 = vpop.f32.mrb[184].mxu0 }
 0x534   : > { %v4259_v45 = vadd.f32 %v5530_v62, %v8200_v6  ;;  %v4250_v27 = vpop.f32.mrb[185].mxu0 }
 0x535   : > { %v4251_v5 = vadd.f32 %v8200_v6, %v4250_v27  ;;  %v5531_v23 = vpop.f32.mrb[186].mxu0  ;;  %v5847_v27 = vld [vmem:[%s6628_s19 + $0x70] sm:$0xff]  }
 0x536   : > { %v4363_v28 = vadd.f32 %v4331_v50, %v4259_v45  ;;  %v4262_v22 = vadd.f32 %v5531_v23, %v8200_v6  ;;  %v4253_v3 = vpop.f32.mrb[187].mxu0 }
 0x537   : > { %v4361_v18 = vadd.f32 %v4329_v48, %v4251_v5  ;;  %v4254_v39 = vadd.f32 %v8200_v6, %v4253_v3  ;;  %v4343_v48 = vunpack.c.l.bf16 %v5846_v47  ;;  %v4342_v3 = vunpack.c.h.bf16 %v5847_v27 }
 0x538   : > { %v4395_v55 = vmax.f32 %v4363_v28, 0.0  ;;  %v4364_v36 = vadd.f32 %v4332_v49, %v4262_v22  ;;  %v4341_v49 = vunpack.c.l.bf16 %v5847_v27 }
 0x539   : > { %v4393_v46 = vmax.f32 %v4361_v18, 0.0  ;;  %v4362_v33 = vadd.f32 %v4330_v63, %v4254_v39  ;;  %v4344_v63 = vunpack.c.h.bf16 %v5846_v47 }
 0x53a   : > { %4427 = vst [vmem:[%s8209_s27 + $0x90] sm:$0xff] %v4395_v55  ;;  %v4396_v14 = vmax.f32 %v4364_v36, 0.0 }
 0x53b   : > { %4425 = vst [vmem:[%s8209_s27 + $0x80] sm:$0xff] %v4393_v46  ;;  %v4394_v30 = vmax.f32 %v4362_v33, 0.0 }
 0x53c   : > { %4428 = vst [vmem:[%s8209_s27 + $0x98] sm:$0xff] %v4396_v14 }
 0x53d   : > { %4426 = vst [vmem:[%s8209_s27 + $0x88] sm:$0xff] %v4394_v30 }
 0x543   : > { %v5534_v53 = vpop.f32.mrb[188].mxu0 }
 0x544   : > { %v4275_v0 = vadd.f32 %v5534_v53, %v8200_v6  ;;  %v4266_v11 = vpop.f32.mrb[189].mxu0 }
 0x545   : > { %v4267_v51 = vadd.f32 %v8200_v6, %v4266_v11  ;;  %v5535_v37 = vpop.f32.mrb[190].mxu0 }
 0x546   : > { %v4367_v13 = vadd.f32 %v4335_v24, %v4275_v0  ;;  %v4278_v29 = vadd.f32 %v5535_v37, %v8200_v6  ;;  %v4269_v15 = vpop.f32.mrb[191].mxu0 }
 0x547   : > { %v4365_v12 = vadd.f32 %v4333_v32, %v4267_v51  ;;  %v4270_v56 = vadd.f32 %v8200_v6, %v4269_v15 }
 0x548   : > { %v4399_v44 = vmax.f32 %v4367_v13, 0.0  ;;  %v4368_v52 = vadd.f32 %v4336_v54, %v4278_v29 }
 0x549   : > { %v4397_v7 = vmax.f32 %v4365_v12, 0.0  ;;  %v4366_v25 = vadd.f32 %v4334_v17, %v4270_v56 }
 0x54a   : > { %4431 = vst [vmem:[%s8209_s27 + $0xb0] sm:$0xff] %v4399_v44  ;;  %v4400_v61 = vmax.f32 %v4368_v52, 0.0 }
 0x54b   : > { %4429 = vst [vmem:[%s8209_s27 + $0xa0] sm:$0xff] %v4397_v7  ;;  %v4398_v8 = vmax.f32 %v4366_v25, 0.0 }
 0x54c   : > { %4432 = vst [vmem:[%s8209_s27 + $0xb8] sm:$0xff] %v4400_v61 }
 0x54d   : > { %4430 = vst [vmem:[%s8209_s27 + $0xa8] sm:$0xff] %v4398_v8 }
 0x553   : > { %v5538_v43 = vpop.f32.mrb[192].mxu0 }
 0x554   : > { %v4291_v57 = vadd.f32 %v5538_v43, %v8200_v6  ;;  %v4282_v19 = vpop.f32.mrb[193].mxu0 }
 0x555   : > { %v4283_v16 = vadd.f32 %v8200_v6, %v4282_v19  ;;  %v5539_v2 = vpop.f32.mrb[194].mxu0 }
 0x556   : > { %v4371_v59 = vadd.f32 %v4339_v58, %v4291_v57  ;;  %v4294_v31 = vadd.f32 %v5539_v2, %v8200_v6  ;;  %v4285_v35 = vpop.f32.mrb[195].mxu0 }
 0x557   : > { %v4369_v34 = vadd.f32 %v4337_v9, %v4283_v16  ;;  %v4286_v38 = vadd.f32 %v8200_v6, %v4285_v35 }
 0x558   : > { %v4403_v26 = vmax.f32 %v4371_v59, 0.0  ;;  %v4372_v4 = vadd.f32 %v4340_v20, %v4294_v31 }
 0x559   : > { %v4401_v40 = vmax.f32 %v4369_v34, 0.0  ;;  %v4370_v21 = vadd.f32 %v4338_v41, %v4286_v38 }
 0x55a   : > { %4435 = vst [vmem:[%s8209_s27 + $0xd0] sm:$0xff] %v4403_v26  ;;  %v4404_v50 = vmax.f32 %v4372_v4, 0.0 }
 0x55b   : > { %4433 = vst [vmem:[%s8209_s27 + $0xc0] sm:$0xff] %v4401_v40  ;;  %v4402_v62 = vmax.f32 %v4370_v21, 0.0 }
 0x55c   : > { %4436 = vst [vmem:[%s8209_s27 + $0xd8] sm:$0xff] %v4404_v50 }
 0x55d   : > { %4434 = vst [vmem:[%s8209_s27 + $0xc8] sm:$0xff] %v4402_v62 }
 0x568   : > { %v5542_v45 = vpop.f32.mrb[196].mxu0 }
 0x569   : > { %v4307_v5 = vadd.f32 %v5542_v45, %v8200_v6  ;;  %v4298_v23 = vpop.f32.mrb[197].mxu0 }
 0x56a   : > { %v4299_v28 = vadd.f32 %v8200_v6, %v4298_v23  ;;  %v5543_v22 = vpop.f32.mrb[198].mxu0 }
 0x56b   : > { %v4375_v18 = vadd.f32 %v4343_v48, %v4307_v5  ;;  %v4310_v39 = vadd.f32 %v5543_v22, %v8200_v6  ;;  %v4301_v55 = vpop.f32.mrb[199].mxu0 }
 0x56c   : > { %v4373_v36 = vadd.f32 %v4341_v49, %v4299_v28  ;;  %v4302_v46 = vadd.f32 %v8200_v6, %v4301_v55 }
 0x56d   : > { %v4407_v33 = vmax.f32 %v4375_v18, 0.0  ;;  %v4376_v14 = vadd.f32 %v4344_v63, %v4310_v39 }
 0x56e   : > { %v4405_v30 = vmax.f32 %v4373_v36, 0.0  ;;  %v4374_v42 = vadd.f32 %v4342_v3, %v4302_v46 }
 0x56f   : > { %4439 = vst [vmem:[%s8209_s27 + $0xf0] sm:$0xff] %v4407_v33  ;;  %v4408_v24 = vmax.f32 %v4376_v14, 0.0 }
 0x570   : > { %4437 = vst [vmem:[%s8209_s27 + $0xe0] sm:$0xff] %v4405_v30  ;;  %v4406_v6 = vmax.f32 %v4374_v42, 0.0 }
 0x571   : > { %4440 = vst [vmem:[%s8209_s27 + $0xf8] sm:$0xff] %v4408_v24 }
 0x572   : > { %4438 = vst [vmem:[%s8209_s27 + $0xe8] sm:$0xff] %v4406_v6 }
 0x573   : > { %6119 = shalt.err (!%p6116_p0)
}
 0x574   : > { %s6120_s18 = scalar_lea.hbm %s8287_s9, 4096  ;;  %s6124_s7 = scalar_lea.hbm %s8714_s3, 8192 }
 0x575   : > { %p6121_p2 = scmp.ne.s32.totalorder %s8287_s9, %s6120_s18  ;;  %p6125_p4 = scmp.lt.u32.totalorder %s8287_s9, %s8714_s3 }
 0x576   : > { %p6126_p7 = scmp.lt.u32.totalorder %s6124_s7, %s6120_s18  ;;  %p6128_p12 = scmp.lt.u32.totalorder %s6120_s18, %s8287_s9 }
 0x577   : > { %p6122_p3 = pnand %p6121_p2, %p8715_p5 }
 0x578   : > { %p6127_p8 = por %p6126_p7, %p6125_p4 }
 0x579   : > { %p6123_p13 = pneg %p6122_p3 }
 0x57a   : > { %p6129_p1 = por %p6128_p12, %p6127_p8 }
 0x57c   : > { %p6130_p11 = pnand %p6129_p1, %p6123_p13 }
 0x57e   : > { %6133 = shalt.err (!%p6130_p11)
}
 0x57f   : > { %s6222_s13 = smov 128   ;;  %s6223_s17 = smov 8  }
 0x580   : > { %5590 = dma.vmem_to_hbm [thread:$0]  (%p8715_p5), %s8289_s30, 4096, %s8287_s9, %s4442_s22, %s6222_s13, %s6222_s13, %s6223_s17  }
 0x581 PF: > { %s8716_s15 = sld [smem:[#allocation25_spill]]  ;;  %s8717_s27 = sld [smem:[#allocation33_spill]] }
 0x582   : > { %s8718_s26 = sld [smem:[#allocation29_spill]] }
 0x587   : > { %s4473_s25 = sand.u32 1, %s8716_s15   ;;  %p8719_p9 = scmp.ne.s32.totalorder %s8717_s27, 0 }
 0x588   : > { %p8720_p10 = scmp.ge.s32.totalorder %s8718_s26, 2  ;;  %s4474_s20 = scalar_lea.sflag [#allocation5], %s4473_s25 }
 0x58a   : > { %p5622_p6 = pnand %p8720_p10, %p8719_p9 }
 0x58c   : > { %6179 = dma.done.wait (!%p5622_p6), %s4474_s20, 4096  }
 0x58d   : > { %6181 = vsyncadd (!%p5622_p6), %s4474_s20, 4294963200  ;;  %s31_s14 = sadd.s32 1, %s8718_s26   ;;  %s8721_s11 = sld [smem:[#allocation26_spill]] }
 0x58e   : > { %p28_p0 = scmp.ge.s32.totalorder %s31_s14, 4   ;;  %s8722_s5 = sld [smem:[#allocation32_spill]] }
 0x58f   : > { %s8723_s12 = sld [smem:[#allocation28_spill]]  ;;  %s8724_s13 = sld [smem:[#allocation31_spill]] }
 0x590   : > { %s8725_s30 = smov %s6188_s10  ;;  %30 = sbr.rel (!%p28_p0) target bundleno = 17 (0x11), region = 153 }
 0x593   : > { %s8726_s10 = smov %s8721_s11 }
 0x594   : > { %s8727_s11 = smov %s8722_s5 }
 0x597   :  { %4479 = vsyncpa [#allocation4], 1 }
 0x598   :  { %4481 = vsyncpa [#allocation4 + $0x1], 1 }
 0x599   :  { %4482 = vsyncpa [#allocation7], 1 }
 0x59a   :  { %4484 = vsyncpa [#allocation7 + $0x1], 1 }
 0x59b   :  { %4485 = vsyncpa [#allocation10], 1 }
 0x59c   :  { %4486 = vsyncpa [#allocation13], 1 }
 0x59d   :  { %4487 = vsyncpa [#allocation16], 1 }
 0x59e   :  { %4488 = vsyncpa [#allocation5], 1 }
 0x59f   :  { %4490 = vsyncpa [#allocation5 + $0x1], 1 }

</bundles_post_ra>
